<compile_context>
chip_gen: v5e
topology: v5e:2x2
jax: 0.10.0
libtpu: 0.0.40
codegen_flags: <defaults>
</compile_context>

<pallas_src>
import jax
import jax.numpy as jnp
from jax import lax
from jax.experimental import pallas as pl
from jax.experimental.pallas import tpu as pltpu

# --- small, module-consistent hyperparameters (scaled down for the demo) ----
N_EMBD = 64                     # n_embd   (matches the PyTorch module)
N_HEAD = 8                      # n_head   (matches the PyTorch module)
HEAD_SIZE = N_EMBD // N_HEAD    # 8
N_LAYER = 2                     # n_layer  (module uses 8; kept small for demo)
BLOCK_SIZE = 16                 # block_size (module uses 500; kept small)
VOCAB_SIZE = 66                 # vocab_size (defined outside the module)
VOCAB_PAD = int(pl.cdiv(VOCAB_SIZE, 128) * 128)   # lane-dense logits (=128)
LN_EPS = 1e-5                   # PyTorch nn.LayerNorm default


def _layernorm(h, gamma, beta):
    mu = jnp.mean(h, axis=-1, keepdims=True)
    var = jnp.mean((h - mu) ** 2, axis=-1, keepdims=True)
    return (h - mu) * lax.rsqrt(var + LN_EPS) * gamma + beta


def heartgpt_kernel(
    x_ref,                                   # (Bb, T, C)   f32 pre-embedded tokens
    wqkv_ref,                                # (L, C, 3C)   bf16 (q-scale folded in)
    wo_ref, bo_ref,                          # (L, C, C) bf16, (L, C) f32
    ln1g_ref, ln1b_ref, ln2g_ref, ln2b_ref,  # (L, C) f32
    w1_ref, b1_ref,                          # (L, C, 4C) bf16, (L, 4C) f32
    w2_ref, b2_ref,                          # (L, 4C, C) bf16, (L, C) f32
    lnfg_ref, lnfb_ref,                      # (1, C) f32
    wlm_ref, blm_ref,                        # (C, Vpad) bf16, (1, Vpad) f32
    out_ref,                                 # (Bb, T, Vpad) f32
):
    x = x_ref[...].astype(jnp.float32)        # (Bb, T, C) residual stream (f32)
    Bb, T, C = x.shape
    H, D = N_HEAD, HEAD_SIZE

    # Causal mask shared by all layers / heads.  Large finite negative instead
    # of -inf (the diagonal is always unmasked; avoids inf arithmetic edges).
    row = lax.broadcasted_iota(jnp.int32, (T, T), 0)
    col = lax.broadcasted_iota(jnp.int32, (T, T), 1)
    causal = (col <= row)[None, :, :]          # (1, T, T)
    neg_big = jnp.float32(-1e30)

    for l in range(N_LAYER):                   # static unroll over layers
        # ---- multi-head self-attention on LN1(x) ----------------------------
        # Fused QKV: single (Bb*T, C) @ (C, 3C) matmul (scale folded into Wq).
        xn = _layernorm(x, ln1g_ref[l], ln1b_ref[l]).astype(jnp.bfloat16)
        qkv = jnp.dot(xn.reshape(Bb * T, C), wqkv_ref[l],
                      preferred_element_type=jnp.float32)
        qkv = qkv.reshape(Bb, T, 3 * C)        # (Bb, T, 3C) f32

        # Per-head attention (head_size = 8).  Heads stay on the lane axis:
        # Mosaic has no general non-minor 4D transpose, and batched heads on
        # the MXU would be processed serially anyway; these tensors are tiny.
        # TODO(synk): for block_size=500 production runs, tile over queries
        # with online softmax so scores never materialize at (T, T).
        head_out = []
        for h in range(H):
            qh = qkv[:, :, h * D:(h + 1) * D]                  # (Bb, T, D)
            kh = qkv[:, :, C + h * D:C + (h + 1) * D]
            vh = qkv[:, :, 2 * C + h * D:2 * C + (h + 1) * D]
            s = jnp.einsum('btd,bsd->bts', qh, kh,
                           preferred_element_type=jnp.float32)  # scale in Wq
            s = jnp.where(causal, s, neg_big)
            s = s - jnp.max(s, axis=-1, keepdims=True)
            p = jnp.exp(s)
            p = p * pl.reciprocal(jnp.sum(p, axis=-1, keepdims=True))
            # attention dropout == identity in eval mode
            head_out.append(jnp.einsum('bts,bsd->btd', p, vh,
                                       preferred_element_type=jnp.float32))
        att = jnp.concatenate(head_out, axis=-1)               # (Bb, T, C) f32

        # Fused output projection: one (Bb*T, C) @ (C, C) matmul + bias.
        proj = jnp.dot(att.reshape(Bb * T, C).astype(jnp.bfloat16), wo_ref[l],
                       preferred_element_type=jnp.float32) + bo_ref[l]
        x = x + proj.reshape(Bb, T, C)

        # ---- feed-forward on LN2(x): Linear -> ReLU -> Linear ---------------
        xn2 = _layernorm(x, ln2g_ref[l], ln2b_ref[l]).astype(jnp.bfloat16)
        hdn = jnp.dot(xn2.reshape(Bb * T, C), w1_ref[l],
                      preferred_element_type=jnp.float32) + b1_ref[l]
        hdn = jnp.maximum(hdn, 0.0).astype(jnp.bfloat16)        # ReLU
        ff = jnp.dot(hdn, w2_ref[l],
                     preferred_element_type=jnp.float32) + b2_ref[l]
        x = x + ff.reshape(Bb, T, C)

    # ---- final layernorm + lane-padded LM head ------------------------------
    xf = _layernorm(x, lnfg_ref[0], lnfb_ref[0]).astype(jnp.bfloat16)
    logits = jnp.dot(xf.reshape(Bb * T, C), wlm_ref[...],
                     preferred_element_type=jnp.float32) + blm_ref[0]
    out_ref[...] = logits.reshape(Bb, T, VOCAB_PAD).astype(out_ref.dtype)


def make_params(key):
    C, L, V, HID = N_EMBD, N_LAYER, VOCAB_SIZE, 4 * N_EMBD
    ks = jax.random.split(key, 9)
    s = 0.02
    bf = jnp.bfloat16
    # PyTorch Head scales scores by C**-0.5 where C = n_embd; fold it into Wq
    # at parameter-prep time (free) instead of scaling the (T, T) scores.
    scale = C ** -0.5
    wq = s * jax.random.normal(ks[2], (L, C, C), jnp.float32)   # heads on columns
    wk = s * jax.random.normal(ks[3], (L, C, C), jnp.float32)
    wv = s * jax.random.normal(ks[4], (L, C, C), jnp.float32)
    wqkv = jnp.concatenate([wq * scale, wk, wv], axis=-1)       # (L, C, 3C)
    wlm = jnp.zeros((C, VOCAB_PAD), jnp.float32)
    wlm = wlm.at[:, :V].set(s * jax.random.normal(ks[8], (C, V), jnp.float32))
    params = {
        "tok_emb": s * jax.random.normal(ks[0], (V, C), jnp.float32),
        "pos_emb": s * jax.random.normal(ks[1], (BLOCK_SIZE, C), jnp.float32),
        "wqkv": wqkv.astype(bf),
        "wo": (s * jax.random.normal(ks[5], (L, C, C), jnp.float32)).astype(bf),
        "bo": jnp.zeros((L, C), jnp.float32),
        "ln1g": jnp.ones((L, C), jnp.float32),
        "ln1b": jnp.zeros((L, C), jnp.float32),
        "ln2g": jnp.ones((L, C), jnp.float32),
        "ln2b": jnp.zeros((L, C), jnp.float32),
        "w1": (s * jax.random.normal(ks[6], (L, C, HID), jnp.float32)).astype(bf),
        "b1": jnp.zeros((L, HID), jnp.float32),
        "w2": (s * jax.random.normal(ks[7], (L, HID, C), jnp.float32)).astype(bf),
        "b2": jnp.zeros((L, C), jnp.float32),
        "lnfg": jnp.ones((1, C), jnp.float32),
        "lnfb": jnp.zeros((1, C), jnp.float32),
        "wlm": wlm.astype(bf),
        "blm": jnp.zeros((1, VOCAB_PAD), jnp.float32),
    }
    return params


@jax.jit
def heartgpt_forward(idx, params):
    """idx: int32 (B, T) token ids.  Returns (logits (B, T, VOCAB_SIZE), None)."""
    B, T = idx.shape
    assert T <= BLOCK_SIZE, "sequence longer than block_size"
    # embedding lookups (glue: plain JAX gathers outside the kernel)
    # TODO(synk): could fuse the token/pos gather via PrefetchScalarGridSpec.
    tok = jnp.take(params["tok_emb"], idx, axis=0)            # (B, T, C)
    pos = params["pos_emb"][:T]                               # (T, C)
    x = tok + pos[None, :, :]                                 # (B, T, C) f32

    # Grid split only pays on 2-TC chips (v7x) AND when each core gets enough
    # matmul rows to fill the MXU; otherwise it just serializes work and
    # double-buffers every weight.  At demo shapes this yields G=1.
    # TODO(synk): gate on the actual TensorCore count (pltpu.get_tpu_info).
    G = 2 if (B % 2 == 0 and (B // 2) * T >= 256) else 1
    Bb = B // G

    weight_order = ["wqkv", "wo", "bo", "ln1g", "ln1b", "ln2g", "ln2b",
                    "w1", "b1", "w2", "b2", "lnfg", "lnfb", "wlm", "blm"]
    weights = [params[k] for k in weight_order]
    full = lambda a: pl.BlockSpec(a.shape, lambda g: (0,) * a.ndim)

    out = pl.pallas_call(
        heartgpt_kernel,
        out_shape=jax.ShapeDtypeStruct((B, T, VOCAB_PAD), jnp.float32),
        grid=(G,),
        in_specs=[pl.BlockSpec((Bb, T, N_EMBD), lambda g: (g, 0, 0))]
                 + [full(w) for w in weights],
        out_specs=pl.BlockSpec((Bb, T, VOCAB_PAD), lambda g: (g, 0, 0)),
        compiler_params=pltpu.CompilerParams(
            dimension_semantics=("parallel",),
            vmem_limit_bytes=48 * 1024 * 1024),
    )(x, *weights)
    logits = out[..., :VOCAB_SIZE]            # drop lane padding
    return logits, None   # (logits, loss) — targets is None in this run


if __name__ == "__main__":
    key = jax.random.PRNGKey(0)
    pkey, ikey = jax.random.split(key)
    params = make_params(pkey)

    B, T = 2, 8
    idx = jax.random.randint(ikey, (B, T), 0, VOCAB_SIZE, dtype=jnp.int32)

    logits, loss = heartgpt_forward(idx, params)
    logits = jax.block_until_ready(logits)
    assert logits.shape == (B, T, VOCAB_SIZE)
    assert loss is None
    assert bool(jnp.all(jnp.isfinite(logits)))
    print("KERNEL_OK")
</pallas_src>

<mosaic_0001>
module attributes {stable_mosaic.version = 11 : i64} {
  func.func @heartgpt_kernel(%arg0: i32, %arg1: memref<2x8x64xf32, #tpu.memory_space<vmem>>, %arg2: memref<2x64x192xbf16, #tpu.memory_space<vmem>>, %arg3: memref<2x64x64xbf16, #tpu.memory_space<vmem>>, %arg4: memref<2x64xf32, #tpu.memory_space<vmem>>, %arg5: memref<2x64xf32, #tpu.memory_space<vmem>>, %arg6: memref<2x64xf32, #tpu.memory_space<vmem>>, %arg7: memref<2x64xf32, #tpu.memory_space<vmem>>, %arg8: memref<2x64xf32, #tpu.memory_space<vmem>>, %arg9: memref<2x64x256xbf16, #tpu.memory_space<vmem>>, %arg10: memref<2x256xf32, #tpu.memory_space<vmem>>, %arg11: memref<2x256x64xbf16, #tpu.memory_space<vmem>>, %arg12: memref<2x64xf32, #tpu.memory_space<vmem>>, %arg13: memref<1x64xf32, #tpu.memory_space<vmem>>, %arg14: memref<1x64xf32, #tpu.memory_space<vmem>>, %arg15: memref<64x128xbf16, #tpu.memory_space<vmem>>, %arg16: memref<1x128xf32, #tpu.memory_space<vmem>>, %arg17: memref<2x8x128xf32, #tpu.memory_space<vmem>>) attributes {dimension_semantics = [#tpu.dimension_semantics<parallel>], iteration_bounds = array<i64: 1>, scalar_prefetch = 0 : i64, scratch_operands = 0 : i64, tpu.core_type = #tpu.core_type<tc>, window_params = [{transform_indices = @transform_0, window_bounds = array<i64: 2, 8, 64>}, {pipeline_mode = #tpu.pipeline_mode<synchronous>, transform_indices = @transform_1, window_bounds = array<i64: 2, 64, 192>}, {pipeline_mode = #tpu.pipeline_mode<synchronous>, transform_indices = @transform_2, window_bounds = array<i64: 2, 64, 64>}, {pipeline_mode = #tpu.pipeline_mode<synchronous>, transform_indices = @transform_3, window_bounds = array<i64: 2, 64>}, {pipeline_mode = #tpu.pipeline_mode<synchronous>, transform_indices = @transform_4, window_bounds = array<i64: 2, 64>}, {pipeline_mode = #tpu.pipeline_mode<synchronous>, transform_indices = @transform_5, window_bounds = array<i64: 2, 64>}, {pipeline_mode = #tpu.pipeline_mode<synchronous>, transform_indices = @transform_6, window_bounds = array<i64: 2, 64>}, {pipeline_mode = #tpu.pipeline_mode<synchronous>, transform_indices = @transform_7, window_bounds = array<i64: 2, 64>}, {pipeline_mode = #tpu.pipeline_mode<synchronous>, transform_indices = @transform_8, window_bounds = array<i64: 2, 64, 256>}, {pipeline_mode = #tpu.pipeline_mode<synchronous>, transform_indices = @transform_9, window_bounds = array<i64: 2, 256>}, {pipeline_mode = #tpu.pipeline_mode<synchronous>, transform_indices = @transform_10, window_bounds = array<i64: 2, 256, 64>}, {pipeline_mode = #tpu.pipeline_mode<synchronous>, transform_indices = @transform_11, window_bounds = array<i64: 2, 64>}, {pipeline_mode = #tpu.pipeline_mode<synchronous>, transform_indices = @transform_12, window_bounds = array<i64: 1, 64>}, {pipeline_mode = #tpu.pipeline_mode<synchronous>, transform_indices = @transform_13, window_bounds = array<i64: 1, 64>}, {pipeline_mode = #tpu.pipeline_mode<synchronous>, transform_indices = @transform_14, window_bounds = array<i64: 64, 128>}, {pipeline_mode = #tpu.pipeline_mode<synchronous>, transform_indices = @transform_15, window_bounds = array<i64: 1, 128>}, {transform_indices = @transform_16, window_bounds = array<i64: 2, 8, 128>}]} {
    %c0 = arith.constant 0 : index
    %c0_0 = arith.constant 0 : index
    %c0_1 = arith.constant 0 : index
    %0 = vector.load %arg1[%c0, %c0_0, %c0_1] : memref<2x8x64xf32, #tpu.memory_space<vmem>>, vector<2x8x64xf32>
    %1 = tpu.iota {dimensions = array<i32: 0>} : vector<8x8xi32>
    %2 = tpu.iota {dimensions = array<i32: 1>} : vector<8x8xi32>
    %3 = arith.cmpi sle, %2, %1 : vector<8x8xi32>
    %4 = vector.shape_cast %3 : vector<8x8xi1> to vector<1x8x8xi1>
    %c0_2 = arith.constant 0 : index
    %c0_3 = arith.constant 0 : index
    %5 = vector.load %arg5[%c0_2, %c0_3] : memref<2x64xf32, #tpu.memory_space<vmem>>, vector<1x64xf32>
    %6 = vector.shape_cast %5 : vector<1x64xf32> to vector<64xf32>
    %c0_4 = arith.constant 0 : index
    %c0_5 = arith.constant 0 : index
    %7 = vector.load %arg6[%c0_4, %c0_5] : memref<2x64xf32, #tpu.memory_space<vmem>>, vector<1x64xf32>
    %8 = vector.shape_cast %7 : vector<1x64xf32> to vector<64xf32>
    %cst = arith.constant dense<0.000000e+00> : vector<2x8xf32>
    %9 = vector.multi_reduction <add>, %0, %cst [2] : vector<2x8x64xf32> to vector<2x8xf32>
    %10 = vector.shape_cast %9 : vector<2x8xf32> to vector<2x8x1xf32>
    %cst_6 = arith.constant 6.400000e+01 : f32
    %11 = vector.broadcast %cst_6 : f32 to vector<2x8x1xf32>
    %12 = arith.divf %10, %11 : vector<2x8x1xf32>
    %13 = vector.broadcast %12 : vector<2x8x1xf32> to vector<2x8x64xf32>
    %14 = arith.subf %0, %13 : vector<2x8x64xf32>
    %15 = arith.mulf %14, %14 : vector<2x8x64xf32>
    %cst_7 = arith.constant dense<0.000000e+00> : vector<2x8xf32>
    %16 = vector.multi_reduction <add>, %15, %cst_7 [2] : vector<2x8x64xf32> to vector<2x8xf32>
    %17 = vector.shape_cast %16 : vector<2x8xf32> to vector<2x8x1xf32>
    %cst_8 = arith.constant 6.400000e+01 : f32
    %18 = vector.broadcast %cst_8 : f32 to vector<2x8x1xf32>
    %19 = arith.divf %17, %18 : vector<2x8x1xf32>
    %20 = vector.broadcast %12 : vector<2x8x1xf32> to vector<2x8x64xf32>
    %21 = arith.subf %0, %20 : vector<2x8x64xf32>
    %cst_9 = arith.constant 9.99999974E-6 : f32
    %22 = vector.broadcast %cst_9 : f32 to vector<2x8x1xf32>
    %23 = arith.addf %19, %22 : vector<2x8x1xf32>
    %24 = math.rsqrt %23 : vector<2x8x1xf32>
    %25 = vector.broadcast %24 : vector<2x8x1xf32> to vector<2x8x64xf32>
    %26 = arith.mulf %21, %25 : vector<2x8x64xf32>
    %27 = vector.shape_cast %6 : vector<64xf32> to vector<1x1x64xf32>
    %28 = vector.broadcast %27 : vector<1x1x64xf32> to vector<2x8x64xf32>
    %29 = arith.mulf %26, %28 : vector<2x8x64xf32>
    %30 = vector.shape_cast %8 : vector<64xf32> to vector<1x1x64xf32>
    %31 = vector.broadcast %30 : vector<1x1x64xf32> to vector<2x8x64xf32>
    %32 = arith.addf %29, %31 : vector<2x8x64xf32>
    %33 = arith.truncf %32 : vector<2x8x64xf32> to vector<2x8x64xbf16>
    %34 = vector.shape_cast %33 : vector<2x8x64xbf16> to vector<16x64xbf16>
    %c0_10 = arith.constant 0 : index
    %c0_11 = arith.constant 0 : index
    %c0_12 = arith.constant 0 : index
    %35 = vector.load %arg2[%c0_10, %c0_11, %c0_12] : memref<2x64x192xbf16, #tpu.memory_space<vmem>>, vector<1x64x192xbf16>
    %36 = vector.shape_cast %35 : vector<1x64x192xbf16> to vector<64x192xbf16>
    %cst_13 = arith.constant dense<0.000000e+00> : vector<16x192xf32>
    %37 = tpu.matmul %34, %36, %cst_13 {dimension_numbers = #tpu.dot_dimension_numbers<[1], [0], [0], [1], [0, 0, 1, 1], [], []>} : vector<16x64xbf16>, vector<64x192xbf16>, vector<16x192xf32> -> vector<16x192xf32>
    %38 = vector.shape_cast %37 : vector<16x192xf32> to vector<2x8x192xf32>
    %39 = vector.extract_strided_slice %38 {offsets = [0, 0, 0], sizes = [2, 8, 8], strides = [1, 1, 1]} : vector<2x8x192xf32> to vector<2x8x8xf32>
    %40 = vector.extract_strided_slice %38 {offsets = [0, 0, 64], sizes = [2, 8, 8], strides = [1, 1, 1]} : vector<2x8x192xf32> to vector<2x8x8xf32>
    %41 = vector.extract_strided_slice %38 {offsets = [0, 0, 128], sizes = [2, 8, 8], strides = [1, 1, 1]} : vector<2x8x192xf32> to vector<2x8x8xf32>
    "tpu.trace_start"() <{level = 10 : i32, message = "btd,bsd->bts"}> : () -> ()
    %cst_14 = arith.constant dense<0.000000e+00> : vector<2x8x8xf32>
    %42 = tpu.matmul %39, %40, %cst_14 {dimension_numbers = #tpu.dot_dimension_numbers<[2], [2], [1], [1], [0, 0, 0, 1, 1, 1], [0], [0]>} : vector<2x8x8xf32>, vector<2x8x8xf32>, vector<2x8x8xf32> -> vector<2x8x8xf32>
    %cst_15 = arith.constant -1.000000e+30 : f32
    "tpu.trace_stop"() : () -> ()
    %43 = vector.shape_cast %4 : vector<1x8x8xi1> to vector<1x8x8xi1>
    %44 = vector.broadcast %43 : vector<1x8x8xi1> to vector<2x8x8xi1>
    %45 = vector.broadcast %cst_15 : f32 to vector<2x8x8xf32>
    %46 = arith.select %44, %42, %45 : vector<2x8x8xi1>, vector<2x8x8xf32>
    %cst_16 = arith.constant dense<0xFF800000> : vector<2x8xf32>
    %47 = vector.multi_reduction <maximumf>, %46, %cst_16 [2] : vector<2x8x8xf32> to vector<2x8xf32>
    %48 = vector.shape_cast %47 : vector<2x8xf32> to vector<2x8x1xf32>
    %49 = vector.broadcast %48 : vector<2x8x1xf32> to vector<2x8x8xf32>
    %50 = arith.subf %46, %49 : vector<2x8x8xf32>
    %51 = math.exp %50 : vector<2x8x8xf32>
    %cst_17 = arith.constant dense<0.000000e+00> : vector<2x8xf32>
    %52 = vector.multi_reduction <add>, %51, %cst_17 [2] : vector<2x8x8xf32> to vector<2x8xf32>
    %53 = vector.shape_cast %52 : vector<2x8xf32> to vector<2x8x1xf32>
    %54 = tpu.reciprocal %53 : vector<2x8x1xf32> -> vector<2x8x1xf32>
    %55 = vector.broadcast %54 : vector<2x8x1xf32> to vector<2x8x8xf32>
    %56 = arith.mulf %51, %55 : vector<2x8x8xf32>
    "tpu.trace_start"() <{level = 10 : i32, message = "bts,bsd->btd"}> : () -> ()
    %cst_18 = arith.constant dense<0.000000e+00> : vector<2x8x8xf32>
    %57 = tpu.matmul %56, %41, %cst_18 {dimension_numbers = #tpu.dot_dimension_numbers<[2], [1], [1], [2], [0, 0, 0, 1, 1, 2], [0], [0]>} : vector<2x8x8xf32>, vector<2x8x8xf32>, vector<2x8x8xf32> -> vector<2x8x8xf32>
    "tpu.trace_stop"() : () -> ()
    %58 = vector.extract_strided_slice %38 {offsets = [0, 0, 8], sizes = [2, 8, 8], strides = [1, 1, 1]} : vector<2x8x192xf32> to vector<2x8x8xf32>
    %59 = vector.extract_strided_slice %38 {offsets = [0, 0, 72], sizes = [2, 8, 8], strides = [1, 1, 1]} : vector<2x8x192xf32> to vector<2x8x8xf32>
    %60 = vector.extract_strided_slice %38 {offsets = [0, 0, 136], sizes = [2, 8, 8], strides = [1, 1, 1]} : vector<2x8x192xf32> to vector<2x8x8xf32>
    "tpu.trace_start"() <{level = 10 : i32, message = "btd,bsd->bts"}> : () -> ()
    %cst_19 = arith.constant dense<0.000000e+00> : vector<2x8x8xf32>
    %61 = tpu.matmul %58, %59, %cst_19 {dimension_numbers = #tpu.dot_dimension_numbers<[2], [2], [1], [1], [0, 0, 0, 1, 1, 1], [0], [0]>} : vector<2x8x8xf32>, vector<2x8x8xf32>, vector<2x8x8xf32> -> vector<2x8x8xf32>
    %cst_20 = arith.constant -1.000000e+30 : f32
    "tpu.trace_stop"() : () -> ()
    %62 = vector.shape_cast %4 : vector<1x8x8xi1> to vector<1x8x8xi1>
    %63 = vector.broadcast %62 : vector<1x8x8xi1> to vector<2x8x8xi1>
    %64 = vector.broadcast %cst_20 : f32 to vector<2x8x8xf32>
    %65 = arith.select %63, %61, %64 : vector<2x8x8xi1>, vector<2x8x8xf32>
    %cst_21 = arith.constant dense<0xFF800000> : vector<2x8xf32>
    %66 = vector.multi_reduction <maximumf>, %65, %cst_21 [2] : vector<2x8x8xf32> to vector<2x8xf32>
    %67 = vector.shape_cast %66 : vector<2x8xf32> to vector<2x8x1xf32>
    %68 = vector.broadcast %67 : vector<2x8x1xf32> to vector<2x8x8xf32>
    %69 = arith.subf %65, %68 : vector<2x8x8xf32>
    %70 = math.exp %69 : vector<2x8x8xf32>
    %cst_22 = arith.constant dense<0.000000e+00> : vector<2x8xf32>
    %71 = vector.multi_reduction <add>, %70, %cst_22 [2] : vector<2x8x8xf32> to vector<2x8xf32>
    %72 = vector.shape_cast %71 : vector<2x8xf32> to vector<2x8x1xf32>
    %73 = tpu.reciprocal %72 : vector<2x8x1xf32> -> vector<2x8x1xf32>
    %74 = vector.broadcast %73 : vector<2x8x1xf32> to vector<2x8x8xf32>
    %75 = arith.mulf %70, %74 : vector<2x8x8xf32>
    "tpu.trace_start"() <{level = 10 : i32, message = "bts,bsd->btd"}> : () -> ()
    %cst_23 = arith.constant dense<0.000000e+00> : vector<2x8x8xf32>
    %76 = tpu.matmul %75, %60, %cst_23 {dimension_numbers = #tpu.dot_dimension_numbers<[2], [1], [1], [2], [0, 0, 0, 1, 1, 2], [0], [0]>} : vector<2x8x8xf32>, vector<2x8x8xf32>, vector<2x8x8xf32> -> vector<2x8x8xf32>
    "tpu.trace_stop"() : () -> ()
    %77 = vector.extract_strided_slice %38 {offsets = [0, 0, 16], sizes = [2, 8, 8], strides = [1, 1, 1]} : vector<2x8x192xf32> to vector<2x8x8xf32>
    %78 = vector.extract_strided_slice %38 {offsets = [0, 0, 80], sizes = [2, 8, 8], strides = [1, 1, 1]} : vector<2x8x192xf32> to vector<2x8x8xf32>
    %79 = vector.extract_strided_slice %38 {offsets = [0, 0, 144], sizes = [2, 8, 8], strides = [1, 1, 1]} : vector<2x8x192xf32> to vector<2x8x8xf32>
    "tpu.trace_start"() <{level = 10 : i32, message = "btd,bsd->bts"}> : () -> ()
    %cst_24 = arith.constant dense<0.000000e+00> : vector<2x8x8xf32>
    %80 = tpu.matmul %77, %78, %cst_24 {dimension_numbers = #tpu.dot_dimension_numbers<[2], [2], [1], [1], [0, 0, 0, 1, 1, 1], [0], [0]>} : vector<2x8x8xf32>, vector<2x8x8xf32>, vector<2x8x8xf32> -> vector<2x8x8xf32>
    %cst_25 = arith.constant -1.000000e+30 : f32
    "tpu.trace_stop"() : () -> ()
    %81 = vector.shape_cast %4 : vector<1x8x8xi1> to vector<1x8x8xi1>
    %82 = vector.broadcast %81 : vector<1x8x8xi1> to vector<2x8x8xi1>
    %83 = vector.broadcast %cst_25 : f32 to vector<2x8x8xf32>
    %84 = arith.select %82, %80, %83 : vector<2x8x8xi1>, vector<2x8x8xf32>
    %cst_26 = arith.constant dense<0xFF800000> : vector<2x8xf32>
    %85 = vector.multi_reduction <maximumf>, %84, %cst_26 [2] : vector<2x8x8xf32> to vector<2x8xf32>
    %86 = vector.shape_cast %85 : vector<2x8xf32> to vector<2x8x1xf32>
    %87 = vector.broadcast %86 : vector<2x8x1xf32> to vector<2x8x8xf32>
    %88 = arith.subf %84, %87 : vector<2x8x8xf32>
    %89 = math.exp %88 : vector<2x8x8xf32>
    %cst_27 = arith.constant dense<0.000000e+00> : vector<2x8xf32>
    %90 = vector.multi_reduction <add>, %89, %cst_27 [2] : vector<2x8x8xf32> to vector<2x8xf32>
    %91 = vector.shape_cast %90 : vector<2x8xf32> to vector<2x8x1xf32>
    %92 = tpu.reciprocal %91 : vector<2x8x1xf32> -> vector<2x8x1xf32>
    %93 = vector.broadcast %92 : vector<2x8x1xf32> to vector<2x8x8xf32>
    %94 = arith.mulf %89, %93 : vector<2x8x8xf32>
    "tpu.trace_start"() <{level = 10 : i32, message = "bts,bsd->btd"}> : () -> ()
    %cst_28 = arith.constant dense<0.000000e+00> : vector<2x8x8xf32>
    %95 = tpu.matmul %94, %79, %cst_28 {dimension_numbers = #tpu.dot_dimension_numbers<[2], [1], [1], [2], [0, 0, 0, 1, 1, 2], [0], [0]>} : vector<2x8x8xf32>, vector<2x8x8xf32>, vector<2x8x8xf32> -> vector<2x8x8xf32>
    "tpu.trace_stop"() : () -> ()
    %96 = vector.extract_strided_slice %38 {offsets = [0, 0, 24], sizes = [2, 8, 8], strides = [1, 1, 1]} : vector<2x8x192xf32> to vector<2x8x8xf32>
    %97 = vector.extract_strided_slice %38 {offsets = [0, 0, 88], sizes = [2, 8, 8], strides = [1, 1, 1]} : vector<2x8x192xf32> to vector<2x8x8xf32>
    %98 = vector.extract_strided_slice %38 {offsets = [0, 0, 152], sizes = [2, 8, 8], strides = [1, 1, 1]} : vector<2x8x192xf32> to vector<2x8x8xf32>
    "tpu.trace_start"() <{level = 10 : i32, message = "btd,bsd->bts"}> : () -> ()
    %cst_29 = arith.constant dense<0.000000e+00> : vector<2x8x8xf32>
    %99 = tpu.matmul %96, %97, %cst_29 {dimension_numbers = #tpu.dot_dimension_numbers<[2], [2], [1], [1], [0, 0, 0, 1, 1, 1], [0], [0]>} : vector<2x8x8xf32>, vector<2x8x8xf32>, vector<2x8x8xf32> -> vector<2x8x8xf32>
    %cst_30 = arith.constant -1.000000e+30 : f32
    "tpu.trace_stop"() : () -> ()
    %100 = vector.shape_cast %4 : vector<1x8x8xi1> to vector<1x8x8xi1>
    %101 = vector.broadcast %100 : vector<1x8x8xi1> to vector<2x8x8xi1>
    %102 = vector.broadcast %cst_30 : f32 to vector<2x8x8xf32>
    %103 = arith.select %101, %99, %102 : vector<2x8x8xi1>, vector<2x8x8xf32>
    %cst_31 = arith.constant dense<0xFF800000> : vector<2x8xf32>
    %104 = vector.multi_reduction <maximumf>, %103, %cst_31 [2] : vector<2x8x8xf32> to vector<2x8xf32>
    %105 = vector.shape_cast %104 : vector<2x8xf32> to vector<2x8x1xf32>
    %106 = vector.broadcast %105 : vector<2x8x1xf32> to vector<2x8x8xf32>
    %107 = arith.subf %103, %106 : vector<2x8x8xf32>
    %108 = math.exp %107 : vector<2x8x8xf32>
    %cst_32 = arith.constant dense<0.000000e+00> : vector<2x8xf32>
    %109 = vector.multi_reduction <add>, %108, %cst_32 [2] : vector<2x8x8xf32> to vector<2x8xf32>
    %110 = vector.shape_cast %109 : vector<2x8xf32> to vector<2x8x1xf32>
    %111 = tpu.reciprocal %110 : vector<2x8x1xf32> -> vector<2x8x1xf32>
    %112 = vector.broadcast %111 : vector<2x8x1xf32> to vector<2x8x8xf32>
    %113 = arith.mulf %108, %112 : vector<2x8x8xf32>
    "tpu.trace_start"() <{level = 10 : i32, message = "bts,bsd->btd"}> : () -> ()
    %cst_33 = arith.constant dense<0.000000e+00> : vector<2x8x8xf32>
    %114 = tpu.matmul %113, %98, %cst_33 {dimension_numbers = #tpu.dot_dimension_numbers<[2], [1], [1], [2], [0, 0, 0, 1, 1, 2], [0], [0]>} : vector<2x8x8xf32>, vector<2x8x8xf32>, vector<2x8x8xf32> -> vector<2x8x8xf32>
    "tpu.trace_stop"() : () -> ()
    %115 = vector.extract_strided_slice %38 {offsets = [0, 0, 32], sizes = [2, 8, 8], strides = [1, 1, 1]} : vector<2x8x192xf32> to vector<2x8x8xf32>
    %116 = vector.extract_strided_slice %38 {offsets = [0, 0, 96], sizes = [2, 8, 8], strides = [1, 1, 1]} : vector<2x8x192xf32> to vector<2x8x8xf32>
    %117 = vector.extract_strided_slice %38 {offsets = [0, 0, 160], sizes = [2, 8, 8], strides = [1, 1, 1]} : vector<2x8x192xf32> to vector<2x8x8xf32>
    "tpu.trace_start"() <{level = 10 : i32, message = "btd,bsd->bts"}> : () -> ()
    %cst_34 = arith.constant dense<0.000000e+00> : vector<2x8x8xf32>
    %118 = tpu.matmul %115, %116, %cst_34 {dimension_numbers = #tpu.dot_dimension_numbers<[2], [2], [1], [1], [0, 0, 0, 1, 1, 1], [0], [0]>} : vector<2x8x8xf32>, vector<2x8x8xf32>, vector<2x8x8xf32> -> vector<2x8x8xf32>
    %cst_35 = arith.constant -1.000000e+30 : f32
    "tpu.trace_stop"() : () -> ()
    %119 = vector.shape_cast %4 : vector<1x8x8xi1> to vector<1x8x8xi1>
    %120 = vector.broadcast %119 : vector<1x8x8xi1> to vector<2x8x8xi1>
    %121 = vector.broadcast %cst_35 : f32 to vector<2x8x8xf32>
    %122 = arith.select %120, %118, %121 : vector<2x8x8xi1>, vector<2x8x8xf32>
    %cst_36 = arith.constant dense<0xFF800000> : vector<2x8xf32>
    %123 = vector.multi_reduction <maximumf>, %122, %cst_36 [2] : vector<2x8x8xf32> to vector<2x8xf32>
    %124 = vector.shape_cast %123 : vector<2x8xf32> to vector<2x8x1xf32>
    %125 = vector.broadcast %124 : vector<2x8x1xf32> to vector<2x8x8xf32>
    %126 = arith.subf %122, %125 : vector<2x8x8xf32>
    %127 = math.exp %126 : vector<2x8x8xf32>
    %cst_37 = arith.constant dense<0.000000e+00> : vector<2x8xf32>
    %128 = vector.multi_reduction <add>, %127, %cst_37 [2] : vector<2x8x8xf32> to vector<2x8xf32>
    %129 = vector.shape_cast %128 : vector<2x8xf32> to vector<2x8x1xf32>
    %130 = tpu.reciprocal %129 : vector<2x8x1xf32> -> vector<2x8x1xf32>
    %131 = vector.broadcast %130 : vector<2x8x1xf32> to vector<2x8x8xf32>
    %132 = arith.mulf %127, %131 : vector<2x8x8xf32>
    "tpu.trace_start"() <{level = 10 : i32, message = "bts,bsd->btd"}> : () -> ()
    %cst_38 = arith.constant dense<0.000000e+00> : vector<2x8x8xf32>
    %133 = tpu.matmul %132, %117, %cst_38 {dimension_numbers = #tpu.dot_dimension_numbers<[2], [1], [1], [2], [0, 0, 0, 1, 1, 2], [0], [0]>} : vector<2x8x8xf32>, vector<2x8x8xf32>, vector<2x8x8xf32> -> vector<2x8x8xf32>
    "tpu.trace_stop"() : () -> ()
    %134 = vector.extract_strided_slice %38 {offsets = [0, 0, 40], sizes = [2, 8, 8], strides = [1, 1, 1]} : vector<2x8x192xf32> to vector<2x8x8xf32>
    %135 = vector.extract_strided_slice %38 {offsets = [0, 0, 104], sizes = [2, 8, 8], strides = [1, 1, 1]} : vector<2x8x192xf32> to vector<2x8x8xf32>
    %136 = vector.extract_strided_slice %38 {offsets = [0, 0, 168], sizes = [2, 8, 8], strides = [1, 1, 1]} : vector<2x8x192xf32> to vector<2x8x8xf32>
    "tpu.trace_start"() <{level = 10 : i32, message = "btd,bsd->bts"}> : () -> ()
    %cst_39 = arith.constant dense<0.000000e+00> : vector<2x8x8xf32>
    %137 = tpu.matmul %134, %135, %cst_39 {dimension_numbers = #tpu.dot_dimension_numbers<[2], [2], [1], [1], [0, 0, 0, 1, 1, 1], [0], [0]>} : vector<2x8x8xf32>, vector<2x8x8xf32>, vector<2x8x8xf32> -> vector<2x8x8xf32>
    %cst_40 = arith.constant -1.000000e+30 : f32
    "tpu.trace_stop"() : () -> ()
    %138 = vector.shape_cast %4 : vector<1x8x8xi1> to vector<1x8x8xi1>
    %139 = vector.broadcast %138 : vector<1x8x8xi1> to vector<2x8x8xi1>
    %140 = vector.broadcast %cst_40 : f32 to vector<2x8x8xf32>
    %141 = arith.select %139, %137, %140 : vector<2x8x8xi1>, vector<2x8x8xf32>
    %cst_41 = arith.constant dense<0xFF800000> : vector<2x8xf32>
    %142 = vector.multi_reduction <maximumf>, %141, %cst_41 [2] : vector<2x8x8xf32> to vector<2x8xf32>
    %143 = vector.shape_cast %142 : vector<2x8xf32> to vector<2x8x1xf32>
    %144 = vector.broadcast %143 : vector<2x8x1xf32> to vector<2x8x8xf32>
    %145 = arith.subf %141, %144 : vector<2x8x8xf32>
    %146 = math.exp %145 : vector<2x8x8xf32>
    %cst_42 = arith.constant dense<0.000000e+00> : vector<2x8xf32>
    %147 = vector.multi_reduction <add>, %146, %cst_42 [2] : vector<2x8x8xf32> to vector<2x8xf32>
    %148 = vector.shape_cast %147 : vector<2x8xf32> to vector<2x8x1xf32>
    %149 = tpu.reciprocal %148 : vector<2x8x1xf32> -> vector<2x8x1xf32>
    %150 = vector.broadcast %149 : vector<2x8x1xf32> to vector<2x8x8xf32>
    %151 = arith.mulf %146, %150 : vector<2x8x8xf32>
    "tpu.trace_start"() <{level = 10 : i32, message = "bts,bsd->btd"}> : () -> ()
    %cst_43 = arith.constant dense<0.000000e+00> : vector<2x8x8xf32>
    %152 = tpu.matmul %151, %136, %cst_43 {dimension_numbers = #tpu.dot_dimension_numbers<[2], [1], [1], [2], [0, 0, 0, 1, 1, 2], [0], [0]>} : vector<2x8x8xf32>, vector<2x8x8xf32>, vector<2x8x8xf32> -> vector<2x8x8xf32>
    "tpu.trace_stop"() : () -> ()
    %153 = vector.extract_strided_slice %38 {offsets = [0, 0, 48], sizes = [2, 8, 8], strides = [1, 1, 1]} : vector<2x8x192xf32> to vector<2x8x8xf32>
    %154 = vector.extract_strided_slice %38 {offsets = [0, 0, 112], sizes = [2, 8, 8], strides = [1, 1, 1]} : vector<2x8x192xf32> to vector<2x8x8xf32>
    %155 = vector.extract_strided_slice %38 {offsets = [0, 0, 176], sizes = [2, 8, 8], strides = [1, 1, 1]} : vector<2x8x192xf32> to vector<2x8x8xf32>
    "tpu.trace_start"() <{level = 10 : i32, message = "btd,bsd->bts"}> : () -> ()
    %cst_44 = arith.constant dense<0.000000e+00> : vector<2x8x8xf32>
    %156 = tpu.matmul %153, %154, %cst_44 {dimension_numbers = #tpu.dot_dimension_numbers<[2], [2], [1], [1], [0, 0, 0, 1, 1, 1], [0], [0]>} : vector<2x8x8xf32>, vector<2x8x8xf32>, vector<2x8x8xf32> -> vector<2x8x8xf32>
    %cst_45 = arith.constant -1.000000e+30 : f32
    "tpu.trace_stop"() : () -> ()
    %157 = vector.shape_cast %4 : vector<1x8x8xi1> to vector<1x8x8xi1>
    %158 = vector.broadcast %157 : vector<1x8x8xi1> to vector<2x8x8xi1>
    %159 = vector.broadcast %cst_45 : f32 to vector<2x8x8xf32>
    %160 = arith.select %158, %156, %159 : vector<2x8x8xi1>, vector<2x8x8xf32>
    %cst_46 = arith.constant dense<0xFF800000> : vector<2x8xf32>
    %161 = vector.multi_reduction <maximumf>, %160, %cst_46 [2] : vector<2x8x8xf32> to vector<2x8xf32>
    %162 = vector.shape_cast %161 : vector<2x8xf32> to vector<2x8x1xf32>
    %163 = vector.broadcast %162 : vector<2x8x1xf32> to vector<2x8x8xf32>
    %164 = arith.subf %160, %163 : vector<2x8x8xf32>
    %165 = math.exp %164 : vector<2x8x8xf32>
    %cst_47 = arith.constant dense<0.000000e+00> : vector<2x8xf32>
    %166 = vector.multi_reduction <add>, %165, %cst_47 [2] : vector<2x8x8xf32> to vector<2x8xf32>
    %167 = vector.shape_cast %166 : vector<2x8xf32> to vector<2x8x1xf32>
    %168 = tpu.reciprocal %167 : vector<2x8x1xf32> -> vector<2x8x1xf32>
    %169 = vector.broadcast %168 : vector<2x8x1xf32> to vector<2x8x8xf32>
    %170 = arith.mulf %165, %169 : vector<2x8x8xf32>
    "tpu.trace_start"() <{level = 10 : i32, message = "bts,bsd->btd"}> : () -> ()
    %cst_48 = arith.constant dense<0.000000e+00> : vector<2x8x8xf32>
    %171 = tpu.matmul %170, %155, %cst_48 {dimension_numbers = #tpu.dot_dimension_numbers<[2], [1], [1], [2], [0, 0, 0, 1, 1, 2], [0], [0]>} : vector<2x8x8xf32>, vector<2x8x8xf32>, vector<2x8x8xf32> -> vector<2x8x8xf32>
    "tpu.trace_stop"() : () -> ()
    %172 = vector.extract_strided_slice %38 {offsets = [0, 0, 56], sizes = [2, 8, 8], strides = [1, 1, 1]} : vector<2x8x192xf32> to vector<2x8x8xf32>
    %173 = vector.extract_strided_slice %38 {offsets = [0, 0, 120], sizes = [2, 8, 8], strides = [1, 1, 1]} : vector<2x8x192xf32> to vector<2x8x8xf32>
    %174 = vector.extract_strided_slice %38 {offsets = [0, 0, 184], sizes = [2, 8, 8], strides = [1, 1, 1]} : vector<2x8x192xf32> to vector<2x8x8xf32>
    "tpu.trace_start"() <{level = 10 : i32, message = "btd,bsd->bts"}> : () -> ()
    %cst_49 = arith.constant dense<0.000000e+00> : vector<2x8x8xf32>
    %175 = tpu.matmul %172, %173, %cst_49 {dimension_numbers = #tpu.dot_dimension_numbers<[2], [2], [1], [1], [0, 0, 0, 1, 1, 1], [0], [0]>} : vector<2x8x8xf32>, vector<2x8x8xf32>, vector<2x8x8xf32> -> vector<2x8x8xf32>
    %cst_50 = arith.constant -1.000000e+30 : f32
    "tpu.trace_stop"() : () -> ()
    %176 = vector.shape_cast %4 : vector<1x8x8xi1> to vector<1x8x8xi1>
    %177 = vector.broadcast %176 : vector<1x8x8xi1> to vector<2x8x8xi1>
    %178 = vector.broadcast %cst_50 : f32 to vector<2x8x8xf32>
    %179 = arith.select %177, %175, %178 : vector<2x8x8xi1>, vector<2x8x8xf32>
    %cst_51 = arith.constant dense<0xFF800000> : vector<2x8xf32>
    %180 = vector.multi_reduction <maximumf>, %179, %cst_51 [2] : vector<2x8x8xf32> to vector<2x8xf32>
    %181 = vector.shape_cast %180 : vector<2x8xf32> to vector<2x8x1xf32>
    %182 = vector.broadcast %181 : vector<2x8x1xf32> to vector<2x8x8xf32>
    %183 = arith.subf %179, %182 : vector<2x8x8xf32>
    %184 = math.exp %183 : vector<2x8x8xf32>
    %cst_52 = arith.constant dense<0.000000e+00> : vector<2x8xf32>
    %185 = vector.multi_reduction <add>, %184, %cst_52 [2] : vector<2x8x8xf32> to vector<2x8xf32>
    %186 = vector.shape_cast %185 : vector<2x8xf32> to vector<2x8x1xf32>
    %187 = tpu.reciprocal %186 : vector<2x8x1xf32> -> vector<2x8x1xf32>
    %188 = vector.broadcast %187 : vector<2x8x1xf32> to vector<2x8x8xf32>
    %189 = arith.mulf %184, %188 : vector<2x8x8xf32>
    "tpu.trace_start"() <{level = 10 : i32, message = "bts,bsd->btd"}> : () -> ()
    %cst_53 = arith.constant dense<0.000000e+00> : vector<2x8x8xf32>
    %190 = tpu.matmul %189, %174, %cst_53 {dimension_numbers = #tpu.dot_dimension_numbers<[2], [1], [1], [2], [0, 0, 0, 1, 1, 2], [0], [0]>} : vector<2x8x8xf32>, vector<2x8x8xf32>, vector<2x8x8xf32> -> vector<2x8x8xf32>
    "tpu.trace_stop"() : () -> ()
    %191 = tpu.concatenate %57, %76, %95, %114, %133, %152, %171, %190 in 2 : vector<2x8x8xf32>, vector<2x8x8xf32>, vector<2x8x8xf32>, vector<2x8x8xf32>, vector<2x8x8xf32>, vector<2x8x8xf32>, vector<2x8x8xf32>, vector<2x8x8xf32> -> vector<2x8x64xf32>
    %192 = vector.shape_cast %191 : vector<2x8x64xf32> to vector<16x64xf32>
    %193 = arith.truncf %192 : vector<16x64xf32> to vector<16x64xbf16>
    %c0_54 = arith.constant 0 : index
    %c0_55 = arith.constant 0 : index
    %c0_56 = arith.constant 0 : index
    %194 = vector.load %arg3[%c0_54, %c0_55, %c0_56] : memref<2x64x64xbf16, #tpu.memory_space<vmem>>, vector<1x64x64xbf16>
    %195 = vector.shape_cast %194 : vector<1x64x64xbf16> to vector<64x64xbf16>
    %cst_57 = arith.constant dense<0.000000e+00> : vector<16x64xf32>
    %196 = tpu.matmul %193, %195, %cst_57 {dimension_numbers = #tpu.dot_dimension_numbers<[1], [0], [0], [1], [0, 0, 1, 1], [], []>} : vector<16x64xbf16>, vector<64x64xbf16>, vector<16x64xf32> -> vector<16x64xf32>
    %c0_58 = arith.constant 0 : index
    %c0_59 = arith.constant 0 : index
    %197 = vector.load %arg4[%c0_58, %c0_59] : memref<2x64xf32, #tpu.memory_space<vmem>>, vector<1x64xf32>
    %198 = vector.shape_cast %197 : vector<1x64xf32> to vector<64xf32>
    %199 = vector.shape_cast %198 : vector<64xf32> to vector<1x64xf32>
    %200 = vector.broadcast %199 : vector<1x64xf32> to vector<16x64xf32>
    %201 = arith.addf %196, %200 : vector<16x64xf32>
    %202 = vector.shape_cast %201 : vector<16x64xf32> to vector<2x8x64xf32>
    %203 = arith.addf %0, %202 : vector<2x8x64xf32>
    %c0_60 = arith.constant 0 : index
    %c0_61 = arith.constant 0 : index
    %204 = vector.load %arg7[%c0_60, %c0_61] : memref<2x64xf32, #tpu.memory_space<vmem>>, vector<1x64xf32>
    %205 = vector.shape_cast %204 : vector<1x64xf32> to vector<64xf32>
    %c0_62 = arith.constant 0 : index
    %c0_63 = arith.constant 0 : index
    %206 = vector.load %arg8[%c0_62, %c0_63] : memref<2x64xf32, #tpu.memory_space<vmem>>, vector<1x64xf32>
    %207 = vector.shape_cast %206 : vector<1x64xf32> to vector<64xf32>
    %cst_64 = arith.constant dense<0.000000e+00> : vector<2x8xf32>
    %208 = vector.multi_reduction <add>, %203, %cst_64 [2] : vector<2x8x64xf32> to vector<2x8xf32>
    %209 = vector.shape_cast %208 : vector<2x8xf32> to vector<2x8x1xf32>
    %cst_65 = arith.constant 6.400000e+01 : f32
    %210 = vector.broadcast %cst_65 : f32 to vector<2x8x1xf32>
    %211 = arith.divf %209, %210 : vector<2x8x1xf32>
    %212 = vector.broadcast %211 : vector<2x8x1xf32> to vector<2x8x64xf32>
    %213 = arith.subf %203, %212 : vector<2x8x64xf32>
    %214 = arith.mulf %213, %213 : vector<2x8x64xf32>
    %cst_66 = arith.constant dense<0.000000e+00> : vector<2x8xf32>
    %215 = vector.multi_reduction <add>, %214, %cst_66 [2] : vector<2x8x64xf32> to vector<2x8xf32>
    %216 = vector.shape_cast %215 : vector<2x8xf32> to vector<2x8x1xf32>
    %cst_67 = arith.constant 6.400000e+01 : f32
    %217 = vector.broadcast %cst_67 : f32 to vector<2x8x1xf32>
    %218 = arith.divf %216, %217 : vector<2x8x1xf32>
    %219 = vector.broadcast %211 : vector<2x8x1xf32> to vector<2x8x64xf32>
    %220 = arith.subf %203, %219 : vector<2x8x64xf32>
    %cst_68 = arith.constant 9.99999974E-6 : f32
    %221 = vector.broadcast %cst_68 : f32 to vector<2x8x1xf32>
    %222 = arith.addf %218, %221 : vector<2x8x1xf32>
    %223 = math.rsqrt %222 : vector<2x8x1xf32>
    %224 = vector.broadcast %223 : vector<2x8x1xf32> to vector<2x8x64xf32>
    %225 = arith.mulf %220, %224 : vector<2x8x64xf32>
    %226 = vector.shape_cast %205 : vector<64xf32> to vector<1x1x64xf32>
    %227 = vector.broadcast %226 : vector<1x1x64xf32> to vector<2x8x64xf32>
    %228 = arith.mulf %225, %227 : vector<2x8x64xf32>
    %229 = vector.shape_cast %207 : vector<64xf32> to vector<1x1x64xf32>
    %230 = vector.broadcast %229 : vector<1x1x64xf32> to vector<2x8x64xf32>
    %231 = arith.addf %228, %230 : vector<2x8x64xf32>
    %232 = arith.truncf %231 : vector<2x8x64xf32> to vector<2x8x64xbf16>
    %233 = vector.shape_cast %232 : vector<2x8x64xbf16> to vector<16x64xbf16>
    %c0_69 = arith.constant 0 : index
    %c0_70 = arith.constant 0 : index
    %c0_71 = arith.constant 0 : index
    %234 = vector.load %arg9[%c0_69, %c0_70, %c0_71] : memref<2x64x256xbf16, #tpu.memory_space<vmem>>, vector<1x64x256xbf16>
    %235 = vector.shape_cast %234 : vector<1x64x256xbf16> to vector<64x256xbf16>
    %cst_72 = arith.constant dense<0.000000e+00> : vector<16x256xf32>
    %236 = tpu.matmul %233, %235, %cst_72 {dimension_numbers = #tpu.dot_dimension_numbers<[1], [0], [0], [1], [0, 0, 1, 1], [], []>} : vector<16x64xbf16>, vector<64x256xbf16>, vector<16x256xf32> -> vector<16x256xf32>
    %c0_73 = arith.constant 0 : index
    %c0_74 = arith.constant 0 : index
    %237 = vector.load %arg10[%c0_73, %c0_74] : memref<2x256xf32, #tpu.memory_space<vmem>>, vector<1x256xf32>
    %238 = vector.shape_cast %237 : vector<1x256xf32> to vector<256xf32>
    %239 = vector.shape_cast %238 : vector<256xf32> to vector<1x256xf32>
    %240 = vector.broadcast %239 : vector<1x256xf32> to vector<16x256xf32>
    %241 = arith.addf %236, %240 : vector<16x256xf32>
    %cst_75 = arith.constant 0.000000e+00 : f32
    %242 = vector.broadcast %cst_75 : f32 to vector<16x256xf32>
    %243 = arith.maximumf %241, %242 : vector<16x256xf32>
    %244 = arith.truncf %243 : vector<16x256xf32> to vector<16x256xbf16>
    %c0_76 = arith.constant 0 : index
    %c0_77 = arith.constant 0 : index
    %c0_78 = arith.constant 0 : index
    %245 = vector.load %arg11[%c0_76, %c0_77, %c0_78] : memref<2x256x64xbf16, #tpu.memory_space<vmem>>, vector<1x256x64xbf16>
    %246 = vector.shape_cast %245 : vector<1x256x64xbf16> to vector<256x64xbf16>
    %cst_79 = arith.constant dense<0.000000e+00> : vector<16x64xf32>
    %247 = tpu.matmul %244, %246, %cst_79 {dimension_numbers = #tpu.dot_dimension_numbers<[1], [0], [0], [1], [0, 0, 1, 1], [], []>} : vector<16x256xbf16>, vector<256x64xbf16>, vector<16x64xf32> -> vector<16x64xf32>
    %c0_80 = arith.constant 0 : index
    %c0_81 = arith.constant 0 : index
    %248 = vector.load %arg12[%c0_80, %c0_81] : memref<2x64xf32, #tpu.memory_space<vmem>>, vector<1x64xf32>
    %249 = vector.shape_cast %248 : vector<1x64xf32> to vector<64xf32>
    %250 = vector.shape_cast %249 : vector<64xf32> to vector<1x64xf32>
    %251 = vector.broadcast %250 : vector<1x64xf32> to vector<16x64xf32>
    %252 = arith.addf %247, %251 : vector<16x64xf32>
    %253 = vector.shape_cast %252 : vector<16x64xf32> to vector<2x8x64xf32>
    %254 = arith.addf %203, %253 : vector<2x8x64xf32>
    %c1 = arith.constant 1 : index
    %c0_82 = arith.constant 0 : index
    %255 = vector.load %arg5[%c1, %c0_82] : memref<2x64xf32, #tpu.memory_space<vmem>>, vector<1x64xf32>
    %256 = vector.shape_cast %255 : vector<1x64xf32> to vector<64xf32>
    %c1_83 = arith.constant 1 : index
    %c0_84 = arith.constant 0 : index
    %257 = vector.load %arg6[%c1_83, %c0_84] : memref<2x64xf32, #tpu.memory_space<vmem>>, vector<1x64xf32>
    %258 = vector.shape_cast %257 : vector<1x64xf32> to vector<64xf32>
    %cst_85 = arith.constant dense<0.000000e+00> : vector<2x8xf32>
    %259 = vector.multi_reduction <add>, %254, %cst_85 [2] : vector<2x8x64xf32> to vector<2x8xf32>
    %260 = vector.shape_cast %259 : vector<2x8xf32> to vector<2x8x1xf32>
    %cst_86 = arith.constant 6.400000e+01 : f32
    %261 = vector.broadcast %cst_86 : f32 to vector<2x8x1xf32>
    %262 = arith.divf %260, %261 : vector<2x8x1xf32>
    %263 = vector.broadcast %262 : vector<2x8x1xf32> to vector<2x8x64xf32>
    %264 = arith.subf %254, %263 : vector<2x8x64xf32>
    %265 = arith.mulf %264, %264 : vector<2x8x64xf32>
    %cst_87 = arith.constant dense<0.000000e+00> : vector<2x8xf32>
    %266 = vector.multi_reduction <add>, %265, %cst_87 [2] : vector<2x8x64xf32> to vector<2x8xf32>
    %267 = vector.shape_cast %266 : vector<2x8xf32> to vector<2x8x1xf32>
    %cst_88 = arith.constant 6.400000e+01 : f32
    %268 = vector.broadcast %cst_88 : f32 to vector<2x8x1xf32>
    %269 = arith.divf %267, %268 : vector<2x8x1xf32>
    %270 = vector.broadcast %262 : vector<2x8x1xf32> to vector<2x8x64xf32>
    %271 = arith.subf %254, %270 : vector<2x8x64xf32>
    %cst_89 = arith.constant 9.99999974E-6 : f32
    %272 = vector.broadcast %cst_89 : f32 to vector<2x8x1xf32>
    %273 = arith.addf %269, %272 : vector<2x8x1xf32>
    %274 = math.rsqrt %273 : vector<2x8x1xf32>
    %275 = vector.broadcast %274 : vector<2x8x1xf32> to vector<2x8x64xf32>
    %276 = arith.mulf %271, %275 : vector<2x8x64xf32>
    %277 = vector.shape_cast %256 : vector<64xf32> to vector<1x1x64xf32>
    %278 = vector.broadcast %277 : vector<1x1x64xf32> to vector<2x8x64xf32>
    %279 = arith.mulf %276, %278 : vector<2x8x64xf32>
    %280 = vector.shape_cast %258 : vector<64xf32> to vector<1x1x64xf32>
    %281 = vector.broadcast %280 : vector<1x1x64xf32> to vector<2x8x64xf32>
    %282 = arith.addf %279, %281 : vector<2x8x64xf32>
    %283 = arith.truncf %282 : vector<2x8x64xf32> to vector<2x8x64xbf16>
    %284 = vector.shape_cast %283 : vector<2x8x64xbf16> to vector<16x64xbf16>
    %c1_90 = arith.constant 1 : index
    %c0_91 = arith.constant 0 : index
    %c0_92 = arith.constant 0 : index
    %285 = vector.load %arg2[%c1_90, %c0_91, %c0_92] : memref<2x64x192xbf16, #tpu.memory_space<vmem>>, vector<1x64x192xbf16>
    %286 = vector.shape_cast %285 : vector<1x64x192xbf16> to vector<64x192xbf16>
    %cst_93 = arith.constant dense<0.000000e+00> : vector<16x192xf32>
    %287 = tpu.matmul %284, %286, %cst_93 {dimension_numbers = #tpu.dot_dimension_numbers<[1], [0], [0], [1], [0, 0, 1, 1], [], []>} : vector<16x64xbf16>, vector<64x192xbf16>, vector<16x192xf32> -> vector<16x192xf32>
    %288 = vector.shape_cast %287 : vector<16x192xf32> to vector<2x8x192xf32>
    %289 = vector.extract_strided_slice %288 {offsets = [0, 0, 0], sizes = [2, 8, 8], strides = [1, 1, 1]} : vector<2x8x192xf32> to vector<2x8x8xf32>
    %290 = vector.extract_strided_slice %288 {offsets = [0, 0, 64], sizes = [2, 8, 8], strides = [1, 1, 1]} : vector<2x8x192xf32> to vector<2x8x8xf32>
    %291 = vector.extract_strided_slice %288 {offsets = [0, 0, 128], sizes = [2, 8, 8], strides = [1, 1, 1]} : vector<2x8x192xf32> to vector<2x8x8xf32>
    "tpu.trace_start"() <{level = 10 : i32, message = "btd,bsd->bts"}> : () -> ()
    %cst_94 = arith.constant dense<0.000000e+00> : vector<2x8x8xf32>
    %292 = tpu.matmul %289, %290, %cst_94 {dimension_numbers = #tpu.dot_dimension_numbers<[2], [2], [1], [1], [0, 0, 0, 1, 1, 1], [0], [0]>} : vector<2x8x8xf32>, vector<2x8x8xf32>, vector<2x8x8xf32> -> vector<2x8x8xf32>
    %cst_95 = arith.constant -1.000000e+30 : f32
    "tpu.trace_stop"() : () -> ()
    %293 = vector.shape_cast %4 : vector<1x8x8xi1> to vector<1x8x8xi1>
    %294 = vector.broadcast %293 : vector<1x8x8xi1> to vector<2x8x8xi1>
    %295 = vector.broadcast %cst_95 : f32 to vector<2x8x8xf32>
    %296 = arith.select %294, %292, %295 : vector<2x8x8xi1>, vector<2x8x8xf32>
    %cst_96 = arith.constant dense<0xFF800000> : vector<2x8xf32>
    %297 = vector.multi_reduction <maximumf>, %296, %cst_96 [2] : vector<2x8x8xf32> to vector<2x8xf32>
    %298 = vector.shape_cast %297 : vector<2x8xf32> to vector<2x8x1xf32>
    %299 = vector.broadcast %298 : vector<2x8x1xf32> to vector<2x8x8xf32>
    %300 = arith.subf %296, %299 : vector<2x8x8xf32>
    %301 = math.exp %300 : vector<2x8x8xf32>
    %cst_97 = arith.constant dense<0.000000e+00> : vector<2x8xf32>
    %302 = vector.multi_reduction <add>, %301, %cst_97 [2] : vector<2x8x8xf32> to vector<2x8xf32>
    %303 = vector.shape_cast %302 : vector<2x8xf32> to vector<2x8x1xf32>
    %304 = tpu.reciprocal %303 : vector<2x8x1xf32> -> vector<2x8x1xf32>
    %305 = vector.broadcast %304 : vector<2x8x1xf32> to vector<2x8x8xf32>
    %306 = arith.mulf %301, %305 : vector<2x8x8xf32>
    "tpu.trace_start"() <{level = 10 : i32, message = "bts,bsd->btd"}> : () -> ()
    %cst_98 = arith.constant dense<0.000000e+00> : vector<2x8x8xf32>
    %307 = tpu.matmul %306, %291, %cst_98 {dimension_numbers = #tpu.dot_dimension_numbers<[2], [1], [1], [2], [0, 0, 0, 1, 1, 2], [0], [0]>} : vector<2x8x8xf32>, vector<2x8x8xf32>, vector<2x8x8xf32> -> vector<2x8x8xf32>
    "tpu.trace_stop"() : () -> ()
    %308 = vector.extract_strided_slice %288 {offsets = [0, 0, 8], sizes = [2, 8, 8], strides = [1, 1, 1]} : vector<2x8x192xf32> to vector<2x8x8xf32>
    %309 = vector.extract_strided_slice %288 {offsets = [0, 0, 72], sizes = [2, 8, 8], strides = [1, 1, 1]} : vector<2x8x192xf32> to vector<2x8x8xf32>
    %310 = vector.extract_strided_slice %288 {offsets = [0, 0, 136], sizes = [2, 8, 8], strides = [1, 1, 1]} : vector<2x8x192xf32> to vector<2x8x8xf32>
    "tpu.trace_start"() <{level = 10 : i32, message = "btd,bsd->bts"}> : () -> ()
    %cst_99 = arith.constant dense<0.000000e+00> : vector<2x8x8xf32>
    %311 = tpu.matmul %308, %309, %cst_99 {dimension_numbers = #tpu.dot_dimension_numbers<[2], [2], [1], [1], [0, 0, 0, 1, 1, 1], [0], [0]>} : vector<2x8x8xf32>, vector<2x8x8xf32>, vector<2x8x8xf32> -> vector<2x8x8xf32>
    %cst_100 = arith.constant -1.000000e+30 : f32
    "tpu.trace_stop"() : () -> ()
    %312 = vector.shape_cast %4 : vector<1x8x8xi1> to vector<1x8x8xi1>
    %313 = vector.broadcast %312 : vector<1x8x8xi1> to vector<2x8x8xi1>
    %314 = vector.broadcast %cst_100 : f32 to vector<2x8x8xf32>
    %315 = arith.select %313, %311, %314 : vector<2x8x8xi1>, vector<2x8x8xf32>
    %cst_101 = arith.constant dense<0xFF800000> : vector<2x8xf32>
    %316 = vector.multi_reduction <maximumf>, %315, %cst_101 [2] : vector<2x8x8xf32> to vector<2x8xf32>
    %317 = vector.shape_cast %316 : vector<2x8xf32> to vector<2x8x1xf32>
    %318 = vector.broadcast %317 : vector<2x8x1xf32> to vector<2x8x8xf32>
    %319 = arith.subf %315, %318 : vector<2x8x8xf32>
    %320 = math.exp %319 : vector<2x8x8xf32>
    %cst_102 = arith.constant dense<0.000000e+00> : vector<2x8xf32>
    %321 = vector.multi_reduction <add>, %320, %cst_102 [2] : vector<2x8x8xf32> to vector<2x8xf32>
    %322 = vector.shape_cast %321 : vector<2x8xf32> to vector<2x8x1xf32>
    %323 = tpu.reciprocal %322 : vector<2x8x1xf32> -> vector<2x8x1xf32>
    %324 = vector.broadcast %323 : vector<2x8x1xf32> to vector<2x8x8xf32>
    %325 = arith.mulf %320, %324 : vector<2x8x8xf32>
    "tpu.trace_start"() <{level = 10 : i32, message = "bts,bsd->btd"}> : () -> ()
    %cst_103 = arith.constant dense<0.000000e+00> : vector<2x8x8xf32>
    %326 = tpu.matmul %325, %310, %cst_103 {dimension_numbers = #tpu.dot_dimension_numbers<[2], [1], [1], [2], [0, 0, 0, 1, 1, 2], [0], [0]>} : vector<2x8x8xf32>, vector<2x8x8xf32>, vector<2x8x8xf32> -> vector<2x8x8xf32>
    "tpu.trace_stop"() : () -> ()
    %327 = vector.extract_strided_slice %288 {offsets = [0, 0, 16], sizes = [2, 8, 8], strides = [1, 1, 1]} : vector<2x8x192xf32> to vector<2x8x8xf32>
    %328 = vector.extract_strided_slice %288 {offsets = [0, 0, 80], sizes = [2, 8, 8], strides = [1, 1, 1]} : vector<2x8x192xf32> to vector<2x8x8xf32>
    %329 = vector.extract_strided_slice %288 {offsets = [0, 0, 144], sizes = [2, 8, 8], strides = [1, 1, 1]} : vector<2x8x192xf32> to vector<2x8x8xf32>
    "tpu.trace_start"() <{level = 10 : i32, message = "btd,bsd->bts"}> : () -> ()
    %cst_104 = arith.constant dense<0.000000e+00> : vector<2x8x8xf32>
    %330 = tpu.matmul %327, %328, %cst_104 {dimension_numbers = #tpu.dot_dimension_numbers<[2], [2], [1], [1], [0, 0, 0, 1, 1, 1], [0], [0]>} : vector<2x8x8xf32>, vector<2x8x8xf32>, vector<2x8x8xf32> -> vector<2x8x8xf32>
    %cst_105 = arith.constant -1.000000e+30 : f32
    "tpu.trace_stop"() : () -> ()
    %331 = vector.shape_cast %4 : vector<1x8x8xi1> to vector<1x8x8xi1>
    %332 = vector.broadcast %331 : vector<1x8x8xi1> to vector<2x8x8xi1>
    %333 = vector.broadcast %cst_105 : f32 to vector<2x8x8xf32>
    %334 = arith.select %332, %330, %333 : vector<2x8x8xi1>, vector<2x8x8xf32>
    %cst_106 = arith.constant dense<0xFF800000> : vector<2x8xf32>
    %335 = vector.multi_reduction <maximumf>, %334, %cst_106 [2] : vector<2x8x8xf32> to vector<2x8xf32>
    %336 = vector.shape_cast %335 : vector<2x8xf32> to vector<2x8x1xf32>
    %337 = vector.broadcast %336 : vector<2x8x1xf32> to vector<2x8x8xf32>
    %338 = arith.subf %334, %337 : vector<2x8x8xf32>
    %339 = math.exp %338 : vector<2x8x8xf32>
    %cst_107 = arith.constant dense<0.000000e+00> : vector<2x8xf32>
    %340 = vector.multi_reduction <add>, %339, %cst_107 [2] : vector<2x8x8xf32> to vector<2x8xf32>
    %341 = vector.shape_cast %340 : vector<2x8xf32> to vector<2x8x1xf32>
    %342 = tpu.reciprocal %341 : vector<2x8x1xf32> -> vector<2x8x1xf32>
    %343 = vector.broadcast %342 : vector<2x8x1xf32> to vector<2x8x8xf32>
    %344 = arith.mulf %339, %343 : vector<2x8x8xf32>
    "tpu.trace_start"() <{level = 10 : i32, message = "bts,bsd->btd"}> : () -> ()
    %cst_108 = arith.constant dense<0.000000e+00> : vector<2x8x8xf32>
    %345 = tpu.matmul %344, %329, %cst_108 {dimension_numbers = #tpu.dot_dimension_numbers<[2], [1], [1], [2], [0, 0, 0, 1, 1, 2], [0], [0]>} : vector<2x8x8xf32>, vector<2x8x8xf32>, vector<2x8x8xf32> -> vector<2x8x8xf32>
    "tpu.trace_stop"() : () -> ()
    %346 = vector.extract_strided_slice %288 {offsets = [0, 0, 24], sizes = [2, 8, 8], strides = [1, 1, 1]} : vector<2x8x192xf32> to vector<2x8x8xf32>
    %347 = vector.extract_strided_slice %288 {offsets = [0, 0, 88], sizes = [2, 8, 8], strides = [1, 1, 1]} : vector<2x8x192xf32> to vector<2x8x8xf32>
    %348 = vector.extract_strided_slice %288 {offsets = [0, 0, 152], sizes = [2, 8, 8], strides = [1, 1, 1]} : vector<2x8x192xf32> to vector<2x8x8xf32>
    "tpu.trace_start"() <{level = 10 : i32, message = "btd,bsd->bts"}> : () -> ()
    %cst_109 = arith.constant dense<0.000000e+00> : vector<2x8x8xf32>
    %349 = tpu.matmul %346, %347, %cst_109 {dimension_numbers = #tpu.dot_dimension_numbers<[2], [2], [1], [1], [0, 0, 0, 1, 1, 1], [0], [0]>} : vector<2x8x8xf32>, vector<2x8x8xf32>, vector<2x8x8xf32> -> vector<2x8x8xf32>
    %cst_110 = arith.constant -1.000000e+30 : f32
    "tpu.trace_stop"() : () -> ()
    %350 = vector.shape_cast %4 : vector<1x8x8xi1> to vector<1x8x8xi1>
    %351 = vector.broadcast %350 : vector<1x8x8xi1> to vector<2x8x8xi1>
    %352 = vector.broadcast %cst_110 : f32 to vector<2x8x8xf32>
    %353 = arith.select %351, %349, %352 : vector<2x8x8xi1>, vector<2x8x8xf32>
    %cst_111 = arith.constant dense<0xFF800000> : vector<2x8xf32>
    %354 = vector.multi_reduction <maximumf>, %353, %cst_111 [2] : vector<2x8x8xf32> to vector<2x8xf32>
    %355 = vector.shape_cast %354 : vector<2x8xf32> to vector<2x8x1xf32>
    %356 = vector.broadcast %355 : vector<2x8x1xf32> to vector<2x8x8xf32>
    %357 = arith.subf %353, %356 : vector<2x8x8xf32>
    %358 = math.exp %357 : vector<2x8x8xf32>
    %cst_112 = arith.constant dense<0.000000e+00> : vector<2x8xf32>
    %359 = vector.multi_reduction <add>, %358, %cst_112 [2] : vector<2x8x8xf32> to vector<2x8xf32>
    %360 = vector.shape_cast %359 : vector<2x8xf32> to vector<2x8x1xf32>
    %361 = tpu.reciprocal %360 : vector<2x8x1xf32> -> vector<2x8x1xf32>
    %362 = vector.broadcast %361 : vector<2x8x1xf32> to vector<2x8x8xf32>
    %363 = arith.mulf %358, %362 : vector<2x8x8xf32>
    "tpu.trace_start"() <{level = 10 : i32, message = "bts,bsd->btd"}> : () -> ()
    %cst_113 = arith.constant dense<0.000000e+00> : vector<2x8x8xf32>
    %364 = tpu.matmul %363, %348, %cst_113 {dimension_numbers = #tpu.dot_dimension_numbers<[2], [1], [1], [2], [0, 0, 0, 1, 1, 2], [0], [0]>} : vector<2x8x8xf32>, vector<2x8x8xf32>, vector<2x8x8xf32> -> vector<2x8x8xf32>
    "tpu.trace_stop"() : () -> ()
    %365 = vector.extract_strided_slice %288 {offsets = [0, 0, 32], sizes = [2, 8, 8], strides = [1, 1, 1]} : vector<2x8x192xf32> to vector<2x8x8xf32>
    %366 = vector.extract_strided_slice %288 {offsets = [0, 0, 96], sizes = [2, 8, 8], strides = [1, 1, 1]} : vector<2x8x192xf32> to vector<2x8x8xf32>
    %367 = vector.extract_strided_slice %288 {offsets = [0, 0, 160], sizes = [2, 8, 8], strides = [1, 1, 1]} : vector<2x8x192xf32> to vector<2x8x8xf32>
    "tpu.trace_start"() <{level = 10 : i32, message = "btd,bsd->bts"}> : () -> ()
    %cst_114 = arith.constant dense<0.000000e+00> : vector<2x8x8xf32>
    %368 = tpu.matmul %365, %366, %cst_114 {dimension_numbers = #tpu.dot_dimension_numbers<[2], [2], [1], [1], [0, 0, 0, 1, 1, 1], [0], [0]>} : vector<2x8x8xf32>, vector<2x8x8xf32>, vector<2x8x8xf32> -> vector<2x8x8xf32>
    %cst_115 = arith.constant -1.000000e+30 : f32
    "tpu.trace_stop"() : () -> ()
    %369 = vector.shape_cast %4 : vector<1x8x8xi1> to vector<1x8x8xi1>
    %370 = vector.broadcast %369 : vector<1x8x8xi1> to vector<2x8x8xi1>
    %371 = vector.broadcast %cst_115 : f32 to vector<2x8x8xf32>
    %372 = arith.select %370, %368, %371 : vector<2x8x8xi1>, vector<2x8x8xf32>
    %cst_116 = arith.constant dense<0xFF800000> : vector<2x8xf32>
    %373 = vector.multi_reduction <maximumf>, %372, %cst_116 [2] : vector<2x8x8xf32> to vector<2x8xf32>
    %374 = vector.shape_cast %373 : vector<2x8xf32> to vector<2x8x1xf32>
    %375 = vector.broadcast %374 : vector<2x8x1xf32> to vector<2x8x8xf32>
    %376 = arith.subf %372, %375 : vector<2x8x8xf32>
    %377 = math.exp %376 : vector<2x8x8xf32>
    %cst_117 = arith.constant dense<0.000000e+00> : vector<2x8xf32>
    %378 = vector.multi_reduction <add>, %377, %cst_117 [2] : vector<2x8x8xf32> to vector<2x8xf32>
    %379 = vector.shape_cast %378 : vector<2x8xf32> to vector<2x8x1xf32>
    %380 = tpu.reciprocal %379 : vector<2x8x1xf32> -> vector<2x8x1xf32>
    %381 = vector.broadcast %380 : vector<2x8x1xf32> to vector<2x8x8xf32>
    %382 = arith.mulf %377, %381 : vector<2x8x8xf32>
    "tpu.trace_start"() <{level = 10 : i32, message = "bts,bsd->btd"}> : () -> ()
    %cst_118 = arith.constant dense<0.000000e+00> : vector<2x8x8xf32>
    %383 = tpu.matmul %382, %367, %cst_118 {dimension_numbers = #tpu.dot_dimension_numbers<[2], [1], [1], [2], [0, 0, 0, 1, 1, 2], [0], [0]>} : vector<2x8x8xf32>, vector<2x8x8xf32>, vector<2x8x8xf32> -> vector<2x8x8xf32>
    "tpu.trace_stop"() : () -> ()
    %384 = vector.extract_strided_slice %288 {offsets = [0, 0, 40], sizes = [2, 8, 8], strides = [1, 1, 1]} : vector<2x8x192xf32> to vector<2x8x8xf32>
    %385 = vector.extract_strided_slice %288 {offsets = [0, 0, 104], sizes = [2, 8, 8], strides = [1, 1, 1]} : vector<2x8x192xf32> to vector<2x8x8xf32>
    %386 = vector.extract_strided_slice %288 {offsets = [0, 0, 168], sizes = [2, 8, 8], strides = [1, 1, 1]} : vector<2x8x192xf32> to vector<2x8x8xf32>
    "tpu.trace_start"() <{level = 10 : i32, message = "btd,bsd->bts"}> : () -> ()
    %cst_119 = arith.constant dense<0.000000e+00> : vector<2x8x8xf32>
    %387 = tpu.matmul %384, %385, %cst_119 {dimension_numbers = #tpu.dot_dimension_numbers<[2], [2], [1], [1], [0, 0, 0, 1, 1, 1], [0], [0]>} : vector<2x8x8xf32>, vector<2x8x8xf32>, vector<2x8x8xf32> -> vector<2x8x8xf32>
    %cst_120 = arith.constant -1.000000e+30 : f32
    "tpu.trace_stop"() : () -> ()
    %388 = vector.shape_cast %4 : vector<1x8x8xi1> to vector<1x8x8xi1>
    %389 = vector.broadcast %388 : vector<1x8x8xi1> to vector<2x8x8xi1>
    %390 = vector.broadcast %cst_120 : f32 to vector<2x8x8xf32>
    %391 = arith.select %389, %387, %390 : vector<2x8x8xi1>, vector<2x8x8xf32>
    %cst_121 = arith.constant dense<0xFF800000> : vector<2x8xf32>
    %392 = vector.multi_reduction <maximumf>, %391, %cst_121 [2] : vector<2x8x8xf32> to vector<2x8xf32>
    %393 = vector.shape_cast %392 : vector<2x8xf32> to vector<2x8x1xf32>
    %394 = vector.broadcast %393 : vector<2x8x1xf32> to vector<2x8x8xf32>
    %395 = arith.subf %391, %394 : vector<2x8x8xf32>
    %396 = math.exp %395 : vector<2x8x8xf32>
    %cst_122 = arith.constant dense<0.000000e+00> : vector<2x8xf32>
    %397 = vector.multi_reduction <add>, %396, %cst_122 [2] : vector<2x8x8xf32> to vector<2x8xf32>
    %398 = vector.shape_cast %397 : vector<2x8xf32> to vector<2x8x1xf32>
    %399 = tpu.reciprocal %398 : vector<2x8x1xf32> -> vector<2x8x1xf32>
    %400 = vector.broadcast %399 : vector<2x8x1xf32> to vector<2x8x8xf32>
    %401 = arith.mulf %396, %400 : vector<2x8x8xf32>
    "tpu.trace_start"() <{level = 10 : i32, message = "bts,bsd->btd"}> : () -> ()
    %cst_123 = arith.constant dense<0.000000e+00> : vector<2x8x8xf32>
    %402 = tpu.matmul %401, %386, %cst_123 {dimension_numbers = #tpu.dot_dimension_numbers<[2], [1], [1], [2], [0, 0, 0, 1, 1, 2], [0], [0]>} : vector<2x8x8xf32>, vector<2x8x8xf32>, vector<2x8x8xf32> -> vector<2x8x8xf32>
    "tpu.trace_stop"() : () -> ()
    %403 = vector.extract_strided_slice %288 {offsets = [0, 0, 48], sizes = [2, 8, 8], strides = [1, 1, 1]} : vector<2x8x192xf32> to vector<2x8x8xf32>
    %404 = vector.extract_strided_slice %288 {offsets = [0, 0, 112], sizes = [2, 8, 8], strides = [1, 1, 1]} : vector<2x8x192xf32> to vector<2x8x8xf32>
    %405 = vector.extract_strided_slice %288 {offsets = [0, 0, 176], sizes = [2, 8, 8], strides = [1, 1, 1]} : vector<2x8x192xf32> to vector<2x8x8xf32>
    "tpu.trace_start"() <{level = 10 : i32, message = "btd,bsd->bts"}> : () -> ()
    %cst_124 = arith.constant dense<0.000000e+00> : vector<2x8x8xf32>
    %406 = tpu.matmul %403, %404, %cst_124 {dimension_numbers = #tpu.dot_dimension_numbers<[2], [2], [1], [1], [0, 0, 0, 1, 1, 1], [0], [0]>} : vector<2x8x8xf32>, vector<2x8x8xf32>, vector<2x8x8xf32> -> vector<2x8x8xf32>
    %cst_125 = arith.constant -1.000000e+30 : f32
    "tpu.trace_stop"() : () -> ()
    %407 = vector.shape_cast %4 : vector<1x8x8xi1> to vector<1x8x8xi1>
    %408 = vector.broadcast %407 : vector<1x8x8xi1> to vector<2x8x8xi1>
    %409 = vector.broadcast %cst_125 : f32 to vector<2x8x8xf32>
    %410 = arith.select %408, %406, %409 : vector<2x8x8xi1>, vector<2x8x8xf32>
    %cst_126 = arith.constant dense<0xFF800000> : vector<2x8xf32>
    %411 = vector.multi_reduction <maximumf>, %410, %cst_126 [2] : vector<2x8x8xf32> to vector<2x8xf32>
    %412 = vector.shape_cast %411 : vector<2x8xf32> to vector<2x8x1xf32>
    %413 = vector.broadcast %412 : vector<2x8x1xf32> to vector<2x8x8xf32>
    %414 = arith.subf %410, %413 : vector<2x8x8xf32>
    %415 = math.exp %414 : vector<2x8x8xf32>
    %cst_127 = arith.constant dense<0.000000e+00> : vector<2x8xf32>
    %416 = vector.multi_reduction <add>, %415, %cst_127 [2] : vector<2x8x8xf32> to vector<2x8xf32>
    %417 = vector.shape_cast %416 : vector<2x8xf32> to vector<2x8x1xf32>
    %418 = tpu.reciprocal %417 : vector<2x8x1xf32> -> vector<2x8x1xf32>
    %419 = vector.broadcast %418 : vector<2x8x1xf32> to vector<2x8x8xf32>
    %420 = arith.mulf %415, %419 : vector<2x8x8xf32>
    "tpu.trace_start"() <{level = 10 : i32, message = "bts,bsd->btd"}> : () -> ()
    %cst_128 = arith.constant dense<0.000000e+00> : vector<2x8x8xf32>
    %421 = tpu.matmul %420, %405, %cst_128 {dimension_numbers = #tpu.dot_dimension_numbers<[2], [1], [1], [2], [0, 0, 0, 1, 1, 2], [0], [0]>} : vector<2x8x8xf32>, vector<2x8x8xf32>, vector<2x8x8xf32> -> vector<2x8x8xf32>
    "tpu.trace_stop"() : () -> ()
    %422 = vector.extract_strided_slice %288 {offsets = [0, 0, 56], sizes = [2, 8, 8], strides = [1, 1, 1]} : vector<2x8x192xf32> to vector<2x8x8xf32>
    %423 = vector.extract_strided_slice %288 {offsets = [0, 0, 120], sizes = [2, 8, 8], strides = [1, 1, 1]} : vector<2x8x192xf32> to vector<2x8x8xf32>
    %424 = vector.extract_strided_slice %288 {offsets = [0, 0, 184], sizes = [2, 8, 8], strides = [1, 1, 1]} : vector<2x8x192xf32> to vector<2x8x8xf32>
    "tpu.trace_start"() <{level = 10 : i32, message = "btd,bsd->bts"}> : () -> ()
    %cst_129 = arith.constant dense<0.000000e+00> : vector<2x8x8xf32>
    %425 = tpu.matmul %422, %423, %cst_129 {dimension_numbers = #tpu.dot_dimension_numbers<[2], [2], [1], [1], [0, 0, 0, 1, 1, 1], [0], [0]>} : vector<2x8x8xf32>, vector<2x8x8xf32>, vector<2x8x8xf32> -> vector<2x8x8xf32>
    %cst_130 = arith.constant -1.000000e+30 : f32
    "tpu.trace_stop"() : () -> ()
    %426 = vector.shape_cast %4 : vector<1x8x8xi1> to vector<1x8x8xi1>
    %427 = vector.broadcast %426 : vector<1x8x8xi1> to vector<2x8x8xi1>
    %428 = vector.broadcast %cst_130 : f32 to vector<2x8x8xf32>
    %429 = arith.select %427, %425, %428 : vector<2x8x8xi1>, vector<2x8x8xf32>
    %cst_131 = arith.constant dense<0xFF800000> : vector<2x8xf32>
    %430 = vector.multi_reduction <maximumf>, %429, %cst_131 [2] : vector<2x8x8xf32> to vector<2x8xf32>
    %431 = vector.shape_cast %430 : vector<2x8xf32> to vector<2x8x1xf32>
    %432 = vector.broadcast %431 : vector<2x8x1xf32> to vector<2x8x8xf32>
    %433 = arith.subf %429, %432 : vector<2x8x8xf32>
    %434 = math.exp %433 : vector<2x8x8xf32>
    %cst_132 = arith.constant dense<0.000000e+00> : vector<2x8xf32>
    %435 = vector.multi_reduction <add>, %434, %cst_132 [2] : vector<2x8x8xf32> to vector<2x8xf32>
    %436 = vector.shape_cast %435 : vector<2x8xf32> to vector<2x8x1xf32>
    %437 = tpu.reciprocal %436 : vector<2x8x1xf32> -> vector<2x8x1xf32>
    %438 = vector.broadcast %437 : vector<2x8x1xf32> to vector<2x8x8xf32>
    %439 = arith.mulf %434, %438 : vector<2x8x8xf32>
    "tpu.trace_start"() <{level = 10 : i32, message = "bts,bsd->btd"}> : () -> ()
    %cst_133 = arith.constant dense<0.000000e+00> : vector<2x8x8xf32>
    %440 = tpu.matmul %439, %424, %cst_133 {dimension_numbers = #tpu.dot_dimension_numbers<[2], [1], [1], [2], [0, 0, 0, 1, 1, 2], [0], [0]>} : vector<2x8x8xf32>, vector<2x8x8xf32>, vector<2x8x8xf32> -> vector<2x8x8xf32>
    "tpu.trace_stop"() : () -> ()
    %441 = tpu.concatenate %307, %326, %345, %364, %383, %402, %421, %440 in 2 : vector<2x8x8xf32>, vector<2x8x8xf32>, vector<2x8x8xf32>, vector<2x8x8xf32>, vector<2x8x8xf32>, vector<2x8x8xf32>, vector<2x8x8xf32>, vector<2x8x8xf32> -> vector<2x8x64xf32>
    %442 = vector.shape_cast %441 : vector<2x8x64xf32> to vector<16x64xf32>
    %443 = arith.truncf %442 : vector<16x64xf32> to vector<16x64xbf16>
    %c1_134 = arith.constant 1 : index
    %c0_135 = arith.constant 0 : index
    %c0_136 = arith.constant 0 : index
    %444 = vector.load %arg3[%c1_134, %c0_135, %c0_136] : memref<2x64x64xbf16, #tpu.memory_space<vmem>>, vector<1x64x64xbf16>
    %445 = vector.shape_cast %444 : vector<1x64x64xbf16> to vector<64x64xbf16>
    %cst_137 = arith.constant dense<0.000000e+00> : vector<16x64xf32>
    %446 = tpu.matmul %443, %445, %cst_137 {dimension_numbers = #tpu.dot_dimension_numbers<[1], [0], [0], [1], [0, 0, 1, 1], [], []>} : vector<16x64xbf16>, vector<64x64xbf16>, vector<16x64xf32> -> vector<16x64xf32>
    %c1_138 = arith.constant 1 : index
    %c0_139 = arith.constant 0 : index
    %447 = vector.load %arg4[%c1_138, %c0_139] : memref<2x64xf32, #tpu.memory_space<vmem>>, vector<1x64xf32>
    %448 = vector.shape_cast %447 : vector<1x64xf32> to vector<64xf32>
    %449 = vector.shape_cast %448 : vector<64xf32> to vector<1x64xf32>
    %450 = vector.broadcast %449 : vector<1x64xf32> to vector<16x64xf32>
    %451 = arith.addf %446, %450 : vector<16x64xf32>
    %452 = vector.shape_cast %451 : vector<16x64xf32> to vector<2x8x64xf32>
    %453 = arith.addf %254, %452 : vector<2x8x64xf32>
    %c1_140 = arith.constant 1 : index
    %c0_141 = arith.constant 0 : index
    %454 = vector.load %arg7[%c1_140, %c0_141] : memref<2x64xf32, #tpu.memory_space<vmem>>, vector<1x64xf32>
    %455 = vector.shape_cast %454 : vector<1x64xf32> to vector<64xf32>
    %c1_142 = arith.constant 1 : index
    %c0_143 = arith.constant 0 : index
    %456 = vector.load %arg8[%c1_142, %c0_143] : memref<2x64xf32, #tpu.memory_space<vmem>>, vector<1x64xf32>
    %457 = vector.shape_cast %456 : vector<1x64xf32> to vector<64xf32>
    %cst_144 = arith.constant dense<0.000000e+00> : vector<2x8xf32>
    %458 = vector.multi_reduction <add>, %453, %cst_144 [2] : vector<2x8x64xf32> to vector<2x8xf32>
    %459 = vector.shape_cast %458 : vector<2x8xf32> to vector<2x8x1xf32>
    %cst_145 = arith.constant 6.400000e+01 : f32
    %460 = vector.broadcast %cst_145 : f32 to vector<2x8x1xf32>
    %461 = arith.divf %459, %460 : vector<2x8x1xf32>
    %462 = vector.broadcast %461 : vector<2x8x1xf32> to vector<2x8x64xf32>
    %463 = arith.subf %453, %462 : vector<2x8x64xf32>
    %464 = arith.mulf %463, %463 : vector<2x8x64xf32>
    %cst_146 = arith.constant dense<0.000000e+00> : vector<2x8xf32>
    %465 = vector.multi_reduction <add>, %464, %cst_146 [2] : vector<2x8x64xf32> to vector<2x8xf32>
    %466 = vector.shape_cast %465 : vector<2x8xf32> to vector<2x8x1xf32>
    %cst_147 = arith.constant 6.400000e+01 : f32
    %467 = vector.broadcast %cst_147 : f32 to vector<2x8x1xf32>
    %468 = arith.divf %466, %467 : vector<2x8x1xf32>
    %469 = vector.broadcast %461 : vector<2x8x1xf32> to vector<2x8x64xf32>
    %470 = arith.subf %453, %469 : vector<2x8x64xf32>
    %cst_148 = arith.constant 9.99999974E-6 : f32
    %471 = vector.broadcast %cst_148 : f32 to vector<2x8x1xf32>
    %472 = arith.addf %468, %471 : vector<2x8x1xf32>
    %473 = math.rsqrt %472 : vector<2x8x1xf32>
    %474 = vector.broadcast %473 : vector<2x8x1xf32> to vector<2x8x64xf32>
    %475 = arith.mulf %470, %474 : vector<2x8x64xf32>
    %476 = vector.shape_cast %455 : vector<64xf32> to vector<1x1x64xf32>
    %477 = vector.broadcast %476 : vector<1x1x64xf32> to vector<2x8x64xf32>
    %478 = arith.mulf %475, %477 : vector<2x8x64xf32>
    %479 = vector.shape_cast %457 : vector<64xf32> to vector<1x1x64xf32>
    %480 = vector.broadcast %479 : vector<1x1x64xf32> to vector<2x8x64xf32>
    %481 = arith.addf %478, %480 : vector<2x8x64xf32>
    %482 = arith.truncf %481 : vector<2x8x64xf32> to vector<2x8x64xbf16>
    %483 = vector.shape_cast %482 : vector<2x8x64xbf16> to vector<16x64xbf16>
    %c1_149 = arith.constant 1 : index
    %c0_150 = arith.constant 0 : index
    %c0_151 = arith.constant 0 : index
    %484 = vector.load %arg9[%c1_149, %c0_150, %c0_151] : memref<2x64x256xbf16, #tpu.memory_space<vmem>>, vector<1x64x256xbf16>
    %485 = vector.shape_cast %484 : vector<1x64x256xbf16> to vector<64x256xbf16>
    %cst_152 = arith.constant dense<0.000000e+00> : vector<16x256xf32>
    %486 = tpu.matmul %483, %485, %cst_152 {dimension_numbers = #tpu.dot_dimension_numbers<[1], [0], [0], [1], [0, 0, 1, 1], [], []>} : vector<16x64xbf16>, vector<64x256xbf16>, vector<16x256xf32> -> vector<16x256xf32>
    %c1_153 = arith.constant 1 : index
    %c0_154 = arith.constant 0 : index
    %487 = vector.load %arg10[%c1_153, %c0_154] : memref<2x256xf32, #tpu.memory_space<vmem>>, vector<1x256xf32>
    %488 = vector.shape_cast %487 : vector<1x256xf32> to vector<256xf32>
    %489 = vector.shape_cast %488 : vector<256xf32> to vector<1x256xf32>
    %490 = vector.broadcast %489 : vector<1x256xf32> to vector<16x256xf32>
    %491 = arith.addf %486, %490 : vector<16x256xf32>
    %cst_155 = arith.constant 0.000000e+00 : f32
    %492 = vector.broadcast %cst_155 : f32 to vector<16x256xf32>
    %493 = arith.maximumf %491, %492 : vector<16x256xf32>
    %494 = arith.truncf %493 : vector<16x256xf32> to vector<16x256xbf16>
    %c1_156 = arith.constant 1 : index
    %c0_157 = arith.constant 0 : index
    %c0_158 = arith.constant 0 : index
    %495 = vector.load %arg11[%c1_156, %c0_157, %c0_158] : memref<2x256x64xbf16, #tpu.memory_space<vmem>>, vector<1x256x64xbf16>
    %496 = vector.shape_cast %495 : vector<1x256x64xbf16> to vector<256x64xbf16>
    %cst_159 = arith.constant dense<0.000000e+00> : vector<16x64xf32>
    %497 = tpu.matmul %494, %496, %cst_159 {dimension_numbers = #tpu.dot_dimension_numbers<[1], [0], [0], [1], [0, 0, 1, 1], [], []>} : vector<16x256xbf16>, vector<256x64xbf16>, vector<16x64xf32> -> vector<16x64xf32>
    %c1_160 = arith.constant 1 : index
    %c0_161 = arith.constant 0 : index
    %498 = vector.load %arg12[%c1_160, %c0_161] : memref<2x64xf32, #tpu.memory_space<vmem>>, vector<1x64xf32>
    %499 = vector.shape_cast %498 : vector<1x64xf32> to vector<64xf32>
    %500 = vector.shape_cast %499 : vector<64xf32> to vector<1x64xf32>
    %501 = vector.broadcast %500 : vector<1x64xf32> to vector<16x64xf32>
    %502 = arith.addf %497, %501 : vector<16x64xf32>
    %503 = vector.shape_cast %502 : vector<16x64xf32> to vector<2x8x64xf32>
    %504 = arith.addf %453, %503 : vector<2x8x64xf32>
    %c0_162 = arith.constant 0 : index
    %c0_163 = arith.constant 0 : index
    %505 = vector.load %arg13[%c0_162, %c0_163] : memref<1x64xf32, #tpu.memory_space<vmem>>, vector<1x64xf32>
    %506 = vector.shape_cast %505 : vector<1x64xf32> to vector<64xf32>
    %c0_164 = arith.constant 0 : index
    %c0_165 = arith.constant 0 : index
    %507 = vector.load %arg14[%c0_164, %c0_165] : memref<1x64xf32, #tpu.memory_space<vmem>>, vector<1x64xf32>
    %508 = vector.shape_cast %507 : vector<1x64xf32> to vector<64xf32>
    %cst_166 = arith.constant dense<0.000000e+00> : vector<2x8xf32>
    %509 = vector.multi_reduction <add>, %504, %cst_166 [2] : vector<2x8x64xf32> to vector<2x8xf32>
    %510 = vector.shape_cast %509 : vector<2x8xf32> to vector<2x8x1xf32>
    %cst_167 = arith.constant 6.400000e+01 : f32
    %511 = vector.broadcast %cst_167 : f32 to vector<2x8x1xf32>
    %512 = arith.divf %510, %511 : vector<2x8x1xf32>
    %513 = vector.broadcast %512 : vector<2x8x1xf32> to vector<2x8x64xf32>
    %514 = arith.subf %504, %513 : vector<2x8x64xf32>
    %515 = arith.mulf %514, %514 : vector<2x8x64xf32>
    %cst_168 = arith.constant dense<0.000000e+00> : vector<2x8xf32>
    %516 = vector.multi_reduction <add>, %515, %cst_168 [2] : vector<2x8x64xf32> to vector<2x8xf32>
    %517 = vector.shape_cast %516 : vector<2x8xf32> to vector<2x8x1xf32>
    %cst_169 = arith.constant 6.400000e+01 : f32
    %518 = vector.broadcast %cst_169 : f32 to vector<2x8x1xf32>
    %519 = arith.divf %517, %518 : vector<2x8x1xf32>
    %520 = vector.broadcast %512 : vector<2x8x1xf32> to vector<2x8x64xf32>
    %521 = arith.subf %504, %520 : vector<2x8x64xf32>
    %cst_170 = arith.constant 9.99999974E-6 : f32
    %522 = vector.broadcast %cst_170 : f32 to vector<2x8x1xf32>
    %523 = arith.addf %519, %522 : vector<2x8x1xf32>
    %524 = math.rsqrt %523 : vector<2x8x1xf32>
    %525 = vector.broadcast %524 : vector<2x8x1xf32> to vector<2x8x64xf32>
    %526 = arith.mulf %521, %525 : vector<2x8x64xf32>
    %527 = vector.shape_cast %506 : vector<64xf32> to vector<1x1x64xf32>
    %528 = vector.broadcast %527 : vector<1x1x64xf32> to vector<2x8x64xf32>
    %529 = arith.mulf %526, %528 : vector<2x8x64xf32>
    %530 = vector.shape_cast %508 : vector<64xf32> to vector<1x1x64xf32>
    %531 = vector.broadcast %530 : vector<1x1x64xf32> to vector<2x8x64xf32>
    %532 = arith.addf %529, %531 : vector<2x8x64xf32>
    %533 = arith.truncf %532 : vector<2x8x64xf32> to vector<2x8x64xbf16>
    %534 = vector.shape_cast %533 : vector<2x8x64xbf16> to vector<16x64xbf16>
    %c0_171 = arith.constant 0 : index
    %c0_172 = arith.constant 0 : index
    %535 = vector.load %arg15[%c0_171, %c0_172] : memref<64x128xbf16, #tpu.memory_space<vmem>>, vector<64x128xbf16>
    %cst_173 = arith.constant dense<0.000000e+00> : vector<16x128xf32>
    %536 = tpu.matmul %534, %535, %cst_173 {dimension_numbers = #tpu.dot_dimension_numbers<[1], [0], [0], [1], [0, 0, 1, 1], [], []>} : vector<16x64xbf16>, vector<64x128xbf16>, vector<16x128xf32> -> vector<16x128xf32>
    %c0_174 = arith.constant 0 : index
    %c0_175 = arith.constant 0 : index
    %537 = vector.load %arg16[%c0_174, %c0_175] : memref<1x128xf32, #tpu.memory_space<vmem>>, vector<1x128xf32>
    %538 = vector.shape_cast %537 : vector<1x128xf32> to vector<128xf32>
    %539 = vector.shape_cast %538 : vector<128xf32> to vector<1x128xf32>
    %540 = vector.broadcast %539 : vector<1x128xf32> to vector<16x128xf32>
    %541 = arith.addf %536, %540 : vector<16x128xf32>
    %542 = vector.shape_cast %541 : vector<16x128xf32> to vector<2x8x128xf32>
    %c0_176 = arith.constant 0 : index
    %c0_177 = arith.constant 0 : index
    %c0_178 = arith.constant 0 : index
    %543 = vector.load %arg17[%c0_176, %c0_177, %c0_178] : memref<2x8x128xf32, #tpu.memory_space<vmem>>, vector<2x8x128xf32>
    tpu.vector_store %arg17[%c0_176, %c0_177, %c0_178], %542 {strides = array<i32>} : memref<2x8x128xf32, #tpu.memory_space<vmem>>, vector<2x8x128xf32>,
    return
  }
  func.func @transform_0(%arg0: i32) -> (i32, i32, i32) {
    %c0_i32 = arith.constant 0 : i32
    %c0_i32_0 = arith.constant 0 : i32
    %c0_i32_1 = arith.constant 0 : i32
    return %arg0, %c0_i32, %c0_i32_0 : i32, i32, i32
  }
  func.func @transform_1(%arg0: i32) -> (i32, i32, i32) {
    %c0_i32 = arith.constant 0 : i32
    %c0_i32_0 = arith.constant 0 : i32
    %c0_i32_1 = arith.constant 0 : i32
    %c0_i32_2 = arith.constant 0 : i32
    return %c0_i32, %c0_i32_0, %c0_i32_1 : i32, i32, i32
  }
  func.func @transform_2(%arg0: i32) -> (i32, i32, i32) {
    %c0_i32 = arith.constant 0 : i32
    %c0_i32_0 = arith.constant 0 : i32
    %c0_i32_1 = arith.constant 0 : i32
    %c0_i32_2 = arith.constant 0 : i32
    return %c0_i32, %c0_i32_0, %c0_i32_1 : i32, i32, i32
  }
  func.func @transform_3(%arg0: i32) -> (i32, i32) {
    %c0_i32 = arith.constant 0 : i32
    %c0_i32_0 = arith.constant 0 : i32
    %c0_i32_1 = arith.constant 0 : i32
    return %c0_i32, %c0_i32_0 : i32, i32
  }
  func.func @transform_4(%arg0: i32) -> (i32, i32) {
    %c0_i32 = arith.constant 0 : i32
    %c0_i32_0 = arith.constant 0 : i32
    %c0_i32_1 = arith.constant 0 : i32
    return %c0_i32, %c0_i32_0 : i32, i32
  }
  func.func @transform_5(%arg0: i32) -> (i32, i32) {
    %c0_i32 = arith.constant 0 : i32
    %c0_i32_0 = arith.constant 0 : i32
    %c0_i32_1 = arith.constant 0 : i32
    return %c0_i32, %c0_i32_0 : i32, i32
  }
  func.func @transform_6(%arg0: i32) -> (i32, i32) {
    %c0_i32 = arith.constant 0 : i32
    %c0_i32_0 = arith.constant 0 : i32
    %c0_i32_1 = arith.constant 0 : i32
    return %c0_i32, %c0_i32_0 : i32, i32
  }
  func.func @transform_7(%arg0: i32) -> (i32, i32) {
    %c0_i32 = arith.constant 0 : i32
    %c0_i32_0 = arith.constant 0 : i32
    %c0_i32_1 = arith.constant 0 : i32
    return %c0_i32, %c0_i32_0 : i32, i32
  }
  func.func @transform_8(%arg0: i32) -> (i32, i32, i32) {
    %c0_i32 = arith.constant 0 : i32
    %c0_i32_0 = arith.constant 0 : i32
    %c0_i32_1 = arith.constant 0 : i32
    %c0_i32_2 = arith.constant 0 : i32
    return %c0_i32, %c0_i32_0, %c0_i32_1 : i32, i32, i32
  }
  func.func @transform_9(%arg0: i32) -> (i32, i32) {
    %c0_i32 = arith.constant 0 : i32
    %c0_i32_0 = arith.constant 0 : i32
    %c0_i32_1 = arith.constant 0 : i32
    return %c0_i32, %c0_i32_0 : i32, i32
  }
  func.func @transform_10(%arg0: i32) -> (i32, i32, i32) {
    %c0_i32 = arith.constant 0 : i32
    %c0_i32_0 = arith.constant 0 : i32
    %c0_i32_1 = arith.constant 0 : i32
    %c0_i32_2 = arith.constant 0 : i32
    return %c0_i32, %c0_i32_0, %c0_i32_1 : i32, i32, i32
  }
  func.func @transform_11(%arg0: i32) -> (i32, i32) {
    %c0_i32 = arith.constant 0 : i32
    %c0_i32_0 = arith.constant 0 : i32
    %c0_i32_1 = arith.constant 0 : i32
    return %c0_i32, %c0_i32_0 : i32, i32
  }
  func.func @transform_12(%arg0: i32) -> (i32, i32) {
    %c0_i32 = arith.constant 0 : i32
    %c0_i32_0 = arith.constant 0 : i32
    %c0_i32_1 = arith.constant 0 : i32
    return %c0_i32, %c0_i32_0 : i32, i32
  }
  func.func @transform_13(%arg0: i32) -> (i32, i32) {
    %c0_i32 = arith.constant 0 : i32
    %c0_i32_0 = arith.constant 0 : i32
    %c0_i32_1 = arith.constant 0 : i32
    return %c0_i32, %c0_i32_0 : i32, i32
  }
  func.func @transform_14(%arg0: i32) -> (i32, i32) {
    %c0_i32 = arith.constant 0 : i32
    %c0_i32_0 = arith.constant 0 : i32
    %c0_i32_1 = arith.constant 0 : i32
    return %c0_i32, %c0_i32_0 : i32, i32
  }
  func.func @transform_15(%arg0: i32) -> (i32, i32) {
    %c0_i32 = arith.constant 0 : i32
    %c0_i32_0 = arith.constant 0 : i32
    %c0_i32_1 = arith.constant 0 : i32
    return %c0_i32, %c0_i32_0 : i32, i32
  }
  func.func @transform_16(%arg0: i32) -> (i32, i32, i32) {
    %c0_i32 = arith.constant 0 : i32
    %c0_i32_0 = arith.constant 0 : i32
    %c0_i32_1 = arith.constant 0 : i32
    return %arg0, %c0_i32, %c0_i32_0 : i32, i32, i32
  }
}

</mosaic_0001>

<bundles_post_ra>
// kernel: heartgpt_forward.1
= control target key start
LH: loop header
LB: loop body
LE: loop exit
PB: predicated region body
PF: predicated region fallthrough
CT: control target
= control target key end

     0   :  { %s6415_s0 = inlined_call_operand.vmem [shape: f32[2,8,64], index: 0, kind: input, shape index: {}]   ;;  %s6416_s1 = inlined_call_operand.vmem [shape: bf16[2,64,192], index: 1, kind: input, shape index: {}]   ;;  %s6417_s2 = inlined_call_operand.vmem [shape: bf16[2,64,64], index: 2, kind: input, shape index: {}]   ;;  %s6418_s3 = inlined_call_operand.vmem [shape: f32[2,64], index: 3, kind: input, shape index: {}]   ;;  %s6419_s4 = inlined_call_operand.vmem [shape: f32[2,64], index: 4, kind: input, shape index: {}]   ;;  %s6420_s5 = inlined_call_operand.vmem [shape: f32[2,64], index: 5, kind: input, shape index: {}]   ;;  %s6421_s6 = inlined_call_operand.vmem [shape: f32[2,64], index: 6, kind: input, shape index: {}]   ;;  %s6422_s7 = inlined_call_operand.vmem [shape: f32[2,64], index: 7, kind: input, shape index: {}]   ;;  %s6423_s8 = inlined_call_operand.vmem [shape: bf16[2,64,256], index: 8, kind: input, shape index: {}]   ;;  %s6424_s9 = inlined_call_operand.vmem [shape: f32[2,256], index: 9, kind: input, shape index: {}]   ;;  %s6425_s10 = inlined_call_operand.vmem [shape: bf16[2,256,64], index: 10, kind: input, shape index: {}]   ;;  %s6426_s11 = inlined_call_operand.vmem [shape: f32[2,64], index: 11, kind: input, shape index: {}]   ;;  %s6427_s12 = inlined_call_operand.vmem [shape: f32[1,64], index: 12, kind: input, shape index: {}]   ;;  %s6428_s13 = inlined_call_operand.vmem [shape: f32[1,64], index: 13, kind: input, shape index: {}]   ;;  %s6429_s14 = inlined_call_operand.vmem [shape: bf16[64,128], index: 14, kind: input, shape index: {}]   ;;  %s6430_s15 = inlined_call_operand.vmem [shape: f32[1,128], index: 15, kind: input, shape index: {}]   ;;  %s6431_s16 = inlined_call_operand.hbm [shape: f32[2,8,128], index: 16, kind: output, shape index: {}]  }
   0x1   :  { %6454 = sst [smem:[#allocation5_spill]] %s6415_s0 }
   0x2   :  { %s6455_s23 = sld [smem:[#allocation5_spill]]  ;;  %vm6453_vm0 = vcmask 523264  }
   0x8   :  { %v55_v0 = vld [vmem:[%s6455_s23] sm:$0xff]  ;;  %v56_v2 = vld [vmem:[%s6455_s23 + $0x8] sm:$0xff] }
   0x9   :  { %v65_v1 = vsel %vm6453_vm0, %v55_v0, 0.0 }
   0xa   :  { %66 = vadd.xlane.f32.xlu0 %v65_v1 }
   0xb   :  { %21 = vsyncpa [#allocation3], 0  ;;  %v68_v3 = vsel %vm6453_vm0, %v56_v2, 0.0  ;;  %v4775_v4 = vmov 64.0   ;;  %v3906_v21 = vld [vmem:[%s6416_s1 + $0x30] sm:$0xf] }
   0xc   :  { %4597 = vrcp.f32 %v4775_v4  ;;  %v4355_v22 = vld [vmem:[%s6416_s1 + $0x34] sm:$0xf0]  ;;  %v4354_v23 = vld [vmem:[%s6416_s1 + $0x34] sm:$0xf]  ;;  %v3908_v25 = vld [vmem:[%s6416_s1 + $0x38] sm:$0xf0] }
   0xd   :  { %v3907_v24 = vor.u32 %v4355_v22, %v3906_v21  ;;  %v3911_v26 = vor.u32 %v4354_v23, %v3908_v25  ;;  %v3898_v27 = vld [vmem:[%s6416_s1 + $0x20] sm:$0xf]  ;;  %v4353_v28 = vld [vmem:[%s6416_s1 + $0x24] sm:$0xf0]  ;;  %v4352_v29 = vld [vmem:[%s6416_s1 + $0x24] sm:$0xf]  ;;  %v57_v21 = vlaneseq }
   0xe   :  { %v3899_v30 = vor.u32 %v4353_v28, %v3898_v27  ;;  %v3900_v31 = vld [vmem:[%s6416_s1 + $0x28] sm:$0xf0]  ;;  %v3890_v32 = vld [vmem:[%s6416_s1 + $0x10] sm:$0xf]  ;;  %v4351_v33 = vld [vmem:[%s6416_s1 + $0x14] sm:$0xf0] }
   0xf   :  { %184 = vmatpush.bf16.msra.mxu0 %v3907_v24  ;;  %198 = vmatpush.bf16.msra.mxu1 %v3911_v26  ;;  %v3903_v34 = vor.u32 %v4352_v29, %v3900_v31  ;;  %v4350_v35 = vld [vmem:[%s6416_s1 + $0x14] sm:$0xf]  ;;  %v3892_v36 = vld [vmem:[%s6416_s1 + $0x18] sm:$0xf0]  ;;  %v3891_v38 = vor.u32 %v4351_v33, %v3890_v32  ;;  %v3882_v41 = vld [vmem:[%s6416_s1] sm:$0xf] }
  0x10   :  { %v3895_v40 = vor.u32 %v4350_v35, %v3892_v36  ;;  %v4349_v42 = vld [vmem:[%s6416_s1 + $0x4] sm:$0xf0]  ;;  %v4348_v43 = vld [vmem:[%s6416_s1 + $0x4] sm:$0xf]  ;;  %v3884_v44 = vld [vmem:[%s6416_s1 + $0x8] sm:$0xf0] }
  0x11   :  { %v3883_v46 = vor.u32 %v4349_v42, %v3882_v41  ;;  %v3887_v47 = vor.u32 %v4348_v43, %v3884_v44  ;;  %v4582_v62 = vld [vmem:[%s6419_s4] ss:$0 sm:$0xff]  ;;  %s6433_s19 = smov 64   ;;  %vm211_vm8 = vcmask 64512   ;;  %v58_v22 = vshrl.u32 %v57_v21, 7  ;;  %s4777_s20 = smov 56  }
  0x12   :  { %69 = vadd.xlane.f32.xlu0 %v68_v3  ;;  %v4598_v5 = vpop.eup %4597  ;;  %v60_v23 = vand.u32 127, %v57_v21  ;;  %s4778_s21 = smov 120   ;;  %s4779_s22 = smov 112  }
  0x13   :  { %v72_v6 = vmul.f32 64.0, %v4598_v5  ;;  %vm76_vm1 = vweird.f32 %v4598_v5  ;;  %185 = vmatpush.bf16.msra.mxu0 %v3899_v30  ;;  %199 = vmatpush.bf16.msra.mxu1 %v3903_v34  ;;  %s4780_s24 = smov 40   ;;  %s4781_s25 = smov 48  }
  0x14   :  { %vm4980_vm9 = vcmp.le.s32.totalorder %v60_v23, %v58_v22  ;;  %s6451_s26 = smov 104   ;;  %s6449_s27 = smov 96  }
  0x15   :  { %v73_v7 = vsub.f32 1.0, %v72_v6  ;;  %s6447_s28 = smov 24   ;;  %s6445_s29 = smov 16  }
  0x16   :  { %s6443_s30 = smov 80   ;;  %s6441_s0 = smov 72  }
  0x17   :  { %v74_v8 = vmul.f32 %v4598_v5, %v73_v7  ;;  %186 = vmatpush.bf16.msra.mxu0 %v3891_v38  ;;  %200 = vmatpush.bf16.msra.mxu1 %v3895_v40  ;;  %s6439_s17 = smov 32   ;;  %s6437_s18 = smov 88  }
  0x19   :  { %v75_v9 = vadd.f32 %v4598_v5, %v74_v8 }
  0x1b   :  { %v4886_v10 = vsel %vm76_vm1, %v4598_v5, %v75_v9  ;;  %187 = vmatpush.bf16.msra.mxu0 %v3883_v46  ;;  %201 = vmatpush.bf16.msra.mxu1 %v3887_v47 }
  0x7d   :  { %v67_v11 = vpop.xlane.xlu0 %66 }
  0x7e   :  { %v78_v12 = vmul.f32 %v4886_v10, %v67_v11 }
  0x80   :  { %v4889_v13 = vsub.f32 %v55_v0, %v78_v12 }
  0x82   :  { %v82_v14 = vmul.f32 %v4889_v13, %v4889_v13 }
  0x84   :  { %v84_v15 = vsel %vm6453_vm0, %v82_v14, 0.0 }
  0x85   :  { %85 = vadd.xlane.f32.xlu1 %v84_v15  ;;  %v70_v16 = vpop.xlane.xlu0 %69 }
  0x86   :  { %v79_v17 = vmul.f32 %v4886_v10, %v70_v16 }
  0x88   :  { %v4895_v18 = vsub.f32 %v56_v2, %v79_v17  ;;  %v4583_v2 = vld [vmem:[%s6420_s5] ss:$0 sm:$0xff] }
  0x8a   :  { %v83_v19 = vmul.f32 %v4895_v18, %v4895_v18 }
  0x8c   :  { %v87_v20 = vsel %vm6453_vm0, %v83_v19, 0.0 }
  0x8d   :  { %88 = vadd.xlane.f32.xlu1 %v87_v20 }
  0xf8   :  { %v86_v37 = vpop.xlane.xlu1 %85 }
  0xf9   :  { %v90_v39 = vmul.f32 %v86_v37, %v4886_v10 }
  0xfb   :  { %v92_v45 = vadd.f32 1e-05, %v90_v39 }
  0xfd   :  { %4599 = vrsqrt.f32 %v92_v45  ;;  %vm100_vm3 = vweird.f32 %v92_v45 }
 0x100   :  { %v89_v48 = vpop.xlane.xlu1 %88 }
 0x101   :  { %v91_v49 = vmul.f32 %v89_v48, %v4886_v10 }
 0x103   :  { %v4600_v50 = vpop.eup %4599  ;;  %v93_v51 = vadd.f32 1e-05, %v91_v49 }
 0x104   :  { %v95_v52 = vmul.f32 %v4600_v50, %v92_v45  ;;  %vm101_vm2 = vweird.f32 %v4600_v50 }
 0x105   :  { %4601 = vrsqrt.f32 %v93_v51  ;;  %vm102_vm4 = vmor %vm100_vm3, %vm101_vm2  ;;  %vm110_vm6 = vweird.f32 %v93_v51 }
 0x106   :  { %v96_v53 = vmul.f32 %v4600_v50, %v95_v52 }
 0x108   :  { %v97_v54 = vmul.f32 0.5, %v96_v53 }
 0x10a   :  { %v98_v55 = vsub.f32 1.5, %v97_v54 }
 0x10b   :  { %v4602_v56 = vpop.eup %4601 }
 0x10c   :  { %v99_v57 = vmul.f32 %v4600_v50, %v98_v55  ;;  %v105_v58 = vmul.f32 %v4602_v56, %v93_v51  ;;  %vm111_vm5 = vweird.f32 %v4602_v56 }
 0x10d   :  { %vm112_vm7 = vmor %vm110_vm6, %vm111_vm5 }
 0x10e   :  { %v103_v59 = vsel %vm102_vm4, %v4600_v50, %v99_v57  ;;  %v106_v60 = vmul.f32 %v4602_v56, %v105_v58 }
 0x10f   :  { %v114_v61 = vmul.f32 %v103_v59, %v4889_v13 }
 0x110   :  { %v107_v63 = vmul.f32 0.5, %v106_v60 }
 0x111   :  { %v117_v1 = vmul.f32 %v4582_v62, %v114_v61 }
 0x112   :  { %v108_v0 = vsub.f32 1.5, %v107_v63 }
 0x113   :  { %v120_v6 = vadd.f32 %v4583_v2, %v117_v1 }
 0x114   :  { %v109_v3 = vmul.f32 %v4602_v56, %v108_v0 }
 0x115   :  { %v122_v9 = vpack.c.bf16 %v120_v6, %v120_v6 }
 0x116   :  { %v113_v4 = vsel %vm112_vm7, %v4602_v56, %v109_v3 }
 0x117   :  { %v115_v5 = vmul.f32 %v113_v4, %v4895_v18  ;;  %v134_v12 = vunpack.c.l.b16 %v122_v9 }
 0x119   :  { %v118_v7 = vmul.f32 %v4582_v62, %v115_v5 }
 0x11b   :  { %v121_v8 = vadd.f32 %v4583_v2, %v118_v7 }
 0x11d   :  { %v123_v11 = vpack.c.bf16 %v121_v8, %v121_v8 }
 0x11f   :  { %v135_v13 = vunpack.c.l.b16 %v123_v11 }
 0x121   :  { %v136_v14 = vpack.c.b16 %v135_v13, %v134_v12 }
 0x123   :  { %3912 = vmatmul.msk.bf16.vlgmr.msra.gmra.mxu0 %vm6453_vm0, %v136_v14  ;;  %3913 = vmatmul.msk.bf16.vlgmr.msra.gmra.mxu1 %vm6453_vm0, %v136_v14 }
 0x1a0   :  { %v4960_v15 = vpop.f32.mrf.mxu0  ;;  %v4968_v17 = vpop.f32.mrf.mxu1 }
 0x1a1   :  { %209 = vrot.lane.b32.xlu2 %v4960_v15, %s6433_s19 }
 0x1a8   :  { %v4964_v16 = vpop.f32.mrf.mxu0  ;;  %v4974_v20 = vpop.f32.mrf.mxu1 }
 0x1a9   :  { %237 = vrot.lane.b32.xlu2 %v4964_v16, %s6433_s19  ;;  %s6435_s19 = smov 8  }
 0x1fb   :  { %v210_v18 = vpop.permute.xlu2 %209 }
 0x1fc   :  { %3914 = vmatpush.xpose.msk.msra.mxu2 %vm211_vm8, %v210_v18 }
 0x1ff   :  { %3915 = vmatmul.msk.f32.vlgmr.msra.gmra.mxu2 %vm211_vm8, %v4960_v15 }
 0x200   :  { %333 = vmatpush.msrb.mxu2 %v4968_v17 }
 0x203   :  { %v238_v19 = vpop.permute.xlu2 %237 }
 0x204   :  { %3916 = vmatpush.xpose.msk.msra.mxu3 %vm211_vm8, %v238_v19 }
 0x207   :  { %3917 = vmatmul.msk.f32.vlgmr.msra.gmra.mxu3 %vm211_vm8, %v4964_v16 }
 0x208   :  { %356 = vmatpush.msrb.mxu3 %v4974_v20 }
 0x282   :  { %v233_v25 = vpop.f32.mrf.mxu2 }
 0x283   :  { %v265_v26 = vsel %vm4980_vm9, %v233_v25, -1e+30 }
 0x284   :  { %v267_v27 = vsel %vm211_vm8, %v265_v26, -inf }
 0x285   :  { %268 = vmax.xlane.f32.xlu0 %v267_v27 }
 0x28a   :  { %v260_v28 = vpop.f32.mrf.mxu3 }
 0x28b   :  { %v266_v29 = vsel %vm4980_vm9, %v260_v28, -1e+30 }
 0x28c   :  { %v270_v30 = vsel %vm211_vm8, %v266_v29, -inf }
 0x28d   :  { %271 = vmax.xlane.f32.xlu1 %v270_v30 }
 0x299   :  { %391 = vrot.lane.b32.xlu0 %v4964_v16, %s4777_s20 }
 0x2a1   :  { %389 = vrot.lane.b32.xlu0 %v4964_v16, %s4778_s21 }
 0x2a6   :  { %363 = vrot.lane.b32.xlu1 %v4960_v15, %s4777_s20 }
 0x2a9   :  { %521 = vrot.lane.b32.xlu0 %v4960_v15, %s4779_s22 }
 0x2ae   :  { %361 = vrot.lane.b32.xlu1 %v4960_v15, %s4778_s21 }
 0x2b1   :  { %681 = vrot.lane.b32.xlu0 %v4960_v15, %s4780_s24 }
 0x2b6   :  { %523 = vrot.lane.b32.xlu1 %v4960_v15, %s4781_s25 }
 0x2be   :  { %549 = vrot.lane.b32.xlu1 %v4964_v16, %s4779_s22 }
 0x2c6   :  { %709 = vrot.lane.b32.xlu1 %v4964_v16, %s4780_s24 }
 0x2ce   :  { %707 = vrot.lane.b32.xlu1 %v4964_v16, %s6451_s26 }
 0x2d6   :  { %837 = vrot.lane.b32.xlu1 %v4960_v15, %s6449_s27 }
 0x2de   :  { %1025 = vrot.lane.b32.xlu1 %v4964_v16, %s6447_s28 }
 0x2e6   :  { %1155 = vrot.lane.b32.xlu1 %v4960_v15, %s6445_s29 }
 0x2ee   :  { %1181 = vrot.lane.b32.xlu1 %v4964_v16, %s6443_s30 }
 0x2f6   :  { %1311 = vrot.lane.b32.xlu1 %v4960_v15, %s6441_s0 }
 0x2f8   :  { %v269_v31 = vpop.xlane.xlu0 %268 }
 0x2f9   :  { %v273_v32 = vsub.f32 %v265_v26, %v269_v31 }
 0x2fb   :  { %v275_v33 = vmul.f32 1.442695, %v273_v32 }
 0x2fd   :  { %4603 = vpow2.f32 %v275_v33 }
 0x300   :  { %v272_v34 = vpop.xlane.xlu1 %271 }
 0x301   :  { %v274_v35 = vsub.f32 %v266_v29, %v272_v34 }
 0x303   :  { %v5020_v36 = vpop.eup %4603  ;;  %v277_v37 = vmul.f32 1.442695, %v274_v35 }
 0x304   :  { %v279_v38 = vsel %vm211_vm8, %v5020_v36, 0.0 }
 0x305   :  { %4605 = vpow2.f32 %v277_v37  ;;  %280 = vadd.xlane.f32.xlu2 %v279_v38 }
 0x30b   :  { %v5024_v39 = vpop.eup %4605  ;;  %v392_v40 = vpop.permute.xlu0 %391 }
 0x30c   :  { %3922 = vmatpush.xpose.msk.msra.mxu3 %vm211_vm8, %v392_v40  ;;  %v282_v41 = vsel %vm211_vm8, %v5024_v39, 0.0 }
 0x30d   :  { %283 = vadd.xlane.f32.xlu0 %v282_v41 }
 0x313   :  { %v5029_v42 = vpop.permute.xlu0 %389 }
 0x318   :  { %v364_v43 = vpop.permute.xlu1 %363 }
 0x319   :  { %3920 = vmatpush.xpose.msk.msra.mxu2 %vm211_vm8, %v364_v43 }
 0x31b   :  { %v522_v44 = vpop.permute.xlu0 %521 }
 0x31d   :  { %551 = vrot.lane.b32.xlu2 %v4964_v16, %s4781_s25 }
 0x320   :  { %v5034_v45 = vpop.permute.xlu1 %361 }
 0x321   :  { %679 = vrot.lane.b32.xlu0 %v4960_v15, %s6451_s26 }
 0x323   :  { %v682_v47 = vpop.permute.xlu0 %681 }
 0x325   :  { %839 = vrot.lane.b32.xlu2 %v4960_v15, %s6439_s17 }
 0x328   :  { %v524_v46 = vpop.permute.xlu1 %523 }
 0x329   :  { %867 = vrot.lane.b32.xlu0 %v4964_v16, %s6439_s17  ;;  %3926 = vmatpush.xpose.msk.msrb.mxu0 %vm211_vm8, %v524_v46 }
 0x32c   :  { %3927 = vmatmul.msk.f32.vlgmr.msrb.gmra.mxu0 %vm211_vm8, %v522_v44 }
 0x32d   :  { %3932 = vmatpush.xpose.msk.msra.mxu0 %vm211_vm8, %v682_v47  ;;  %865 = vrot.lane.b32.xlu2 %v4964_v16, %s6449_s27 }
 0x330   :  { %v550_v48 = vpop.permute.xlu1 %549 }
 0x331   :  { %997 = vrot.lane.b32.xlu0 %v4960_v15, %s6447_s28 }
 0x335   :  { %995 = vrot.lane.b32.xlu2 %v4960_v15, %s6437_s18 }
 0x338   :  { %v710_v50 = vpop.permute.xlu1 %709 }
 0x339   :  { %1023 = vrot.lane.b32.xlu0 %v4964_v16, %s6437_s18 }
 0x33d   :  { %1183 = vrot.lane.b32.xlu2 %v4964_v16, %s6445_s29 }
 0x340   :  { %v708_v59 = vpop.permute.xlu1 %707 }
 0x341   :  { %1153 = vrot.lane.b32.xlu0 %v4960_v15, %s6443_s30 }
 0x345   :  { %1313 = vrot.lane.b32.xlu2 %v4960_v15, %s6435_s19 }
 0x348   :  { %v838_v11 = vpop.permute.xlu1 %837 }
 0x349   :  { %1341 = vrot.lane.b32.xlu0 %v4964_v16, %s6435_s19 }
 0x34d   :  { %1339 = vrot.lane.b32.xlu2 %v4964_v16, %s6441_s0 }
 0x350   :  { %v1026_v19 = vpop.permute.xlu1 %1025 }
 0x358   :  { %v1156_v25 = vpop.permute.xlu1 %1155 }
 0x360   :  { %v1182_v31 = vpop.permute.xlu1 %1181 }
 0x368   :  { %v1312_v33 = vpop.permute.xlu1 %1311 }
 0x378   :  { %v281_v49 = vpop.xlane.xlu2 %280 }
 0x379   :  { %4607 = vrcp.f32 %v281_v49  ;;  %v296_v56 = vand.u32 2147483648, %v281_v49  ;;  %v294_v58 = vand.u32 2147483647, %v281_v49  ;;  %vm290_vm11 = vweird.f32 %v281_v49 }
 0x37b   :  { %v297_v62 = vor.u32 1.1754944e-38, %v296_v56  ;;  %vm295_vm13 = vcmp.eq.f32.partialorder %v294_v58, 8.507059e+37 }
 0x37f   :  { %v4608_v51 = vpop.eup %4607 }
 0x380   :  { %v286_v52 = vmul.f32 %v4608_v51, %v281_v49  ;;  %v284_v53 = vpop.xlane.xlu0 %283  ;;  %v552_v54 = vpop.permute.xlu2 %551  ;;  %vm291_vm10 = vweird.f32 %v4608_v51 }
 0x381   :  { %4609 = vrcp.f32 %v284_v53  ;;  %3928 = vmatpush.xpose.msk.msrb.mxu1 %vm211_vm8, %v552_v54  ;;  %vm292_vm12 = vmor %vm290_vm11, %vm291_vm10  ;;  %v310_v5 = vand.u32 2147483648, %v284_v53  ;;  %v308_v7 = vand.u32 2147483647, %v284_v53  ;;  %vm304_vm15 = vweird.f32 %v284_v53 }
 0x382   :  { %v287_v55 = vsub.f32 1.0, %v286_v52 }
 0x383   :  { %v311_v9 = vor.u32 1.1754944e-38, %v310_v5  ;;  %vm309_vm2 = vcmp.eq.f32.partialorder %v308_v7, 8.507059e+37 }
 0x384   :  { %v288_v57 = vmul.f32 %v4608_v51, %v287_v55  ;;  %3929 = vmatmul.msk.f32.vlgmr.msrb.gmra.mxu1 %vm211_vm8, %v550_v48 }
 0x385   :  { %3934 = vmatpush.xpose.msk.msra.mxu1 %vm211_vm8, %v710_v50 }
 0x386   :  { %v289_v60 = vadd.f32 %v4608_v51, %v288_v57 }
 0x387   :  { %v4610_v61 = vpop.eup %4609 }
 0x388   :  { %v300_v63 = vmul.f32 %v4610_v61, %v284_v53  ;;  %v840_v0 = vpop.permute.xlu2 %839  ;;  %v293_v1 = vsel %vm292_vm12, %v4608_v51, %v289_v60  ;;  %vm305_vm14 = vweird.f32 %v4610_v61 }
 0x389   :  { %3938 = vmatpush.xpose.msk.msrb.mxu0 %vm211_vm8, %v840_v0  ;;  %v298_v2 = vsel %vm295_vm13, %v297_v62, %v293_v1  ;;  %vm306_vm1 = vmor %vm304_vm15, %vm305_vm14 }
 0x38a   :  { %v301_v3 = vsub.f32 1.0, %v300_v63  ;;  %v313_v4 = vmul.f32 %v5020_v36, %v298_v2 }
 0x38c   :  { %v302_v6 = vmul.f32 %v4610_v61, %v301_v3  ;;  %3918 = vmatmul.msk.f32.vlgmr.msrb.gmra.mxu2 %vm211_vm8, %v313_v4  ;;  %3935 = vmatmul.msk.f32.vlgmr.msra.gmra.mxu1 %vm211_vm8, %v708_v59 }
 0x38e   :  { %v303_v8 = vadd.f32 %v4610_v61, %v302_v6 }
 0x390   :  { %v866_v12 = vpop.permute.xlu2 %865  ;;  %v307_v13 = vsel %vm306_vm1, %v4610_v61, %v303_v8 }
 0x391   :  { %v312_v14 = vsel %vm309_vm2, %v311_v9, %v307_v13 }
 0x392   :  { %v314_v15 = vmul.f32 %v5024_v39, %v312_v14 }
 0x393   :  { %v680_v16 = vpop.permute.xlu0 %679 }
 0x394   :  { %3919 = vmatmul.msk.f32.vlgmr.msrb.gmra.mxu3 %vm211_vm8, %v314_v15  ;;  %3921 = vmatmul.msk.f32.vlgmr.msra.gmra.mxu2 %vm211_vm8, %v5034_v45 }
 0x395   :  { %3933 = vmatmul.msk.f32.vlgmr.msra.gmra.mxu0 %vm211_vm8, %v680_v16 }
 0x398   :  { %v996_v18 = vpop.permute.xlu2 %995 }
 0x39b   :  { %v868_v21 = vpop.permute.xlu0 %867 }
 0x39c   :  { %3923 = vmatmul.msk.f32.vlgmr.msra.gmra.mxu3 %vm211_vm8, %v5029_v42  ;;  %3940 = vmatpush.xpose.msk.msrb.mxu1 %vm211_vm8, %v868_v21 }
 0x39d   :  { %3939 = vmatmul.msk.f32.vlgmr.msrb.gmra.mxu0 %vm211_vm8, %v838_v11 }
 0x39f   :  { %3941 = vmatmul.msk.f32.vlgmr.msrb.gmra.mxu1 %vm211_vm8, %v866_v12 }
 0x3a0   :  { %3946 = vmatpush.xpose.msk.msra.mxu1 %vm211_vm8, %v1026_v19  ;;  %v1184_v22 = vpop.permute.xlu2 %1183 }
 0x3a3   :  { %v998_v23 = vpop.permute.xlu0 %997 }
 0x3a4   :  { %3952 = vmatpush.xpose.msk.msrb.mxu1 %vm211_vm8, %v1184_v22  ;;  %3944 = vmatpush.xpose.msk.msra.mxu0 %vm211_vm8, %v998_v23 }
 0x3a7   :  { %3945 = vmatmul.msk.f32.vlgmr.msra.gmra.mxu0 %vm211_vm8, %v996_v18 }
 0x3a8   :  { %3950 = vmatpush.xpose.msk.msrb.mxu0 %vm211_vm8, %v1156_v25  ;;  %v1314_v26 = vpop.permute.xlu2 %1313 }
 0x3a9   :  { %v546_v27 = vpop.f32.mrf.mxu0 }
 0x3aa   :  { %v577_v28 = vsel %vm4980_vm9, %v546_v27, -1e+30 }
 0x3ab   :  { %v1024_v29 = vpop.permute.xlu0 %1023  ;;  %v579_v30 = vsel %vm211_vm8, %v577_v28, -inf }
 0x3ac   :  { %3956 = vmatpush.xpose.msk.msra.mxu0 %vm211_vm8, %v1314_v26  ;;  %580 = vmax.xlane.f32.xlu2 %v579_v30 }
 0x3ad   :  { %3947 = vmatmul.msk.f32.vlgmr.msra.gmra.mxu1 %vm211_vm8, %v1024_v29 }
 0x3b0   :  { %v1340_v35 = vpop.permute.xlu2 %1339 }
 0x3b3   :  { %v1154_v32 = vpop.permute.xlu0 %1153 }
 0x3b4   :  { %3951 = vmatmul.msk.f32.vlgmr.msrb.gmra.mxu0 %vm211_vm8, %v1154_v32 }
 0x3b5   :  { %3953 = vmatmul.msk.f32.vlgmr.msrb.gmra.mxu1 %vm211_vm8, %v1182_v31 }
 0x3bb   :  { %v1342_v34 = vpop.permute.xlu0 %1341 }
 0x3bc   :  { %3957 = vmatmul.msk.f32.vlgmr.msra.gmra.mxu0 %vm211_vm8, %v1312_v33  ;;  %3958 = vmatpush.xpose.msk.msra.mxu1 %vm211_vm8, %v1342_v34 }
 0x3bf   :  { %3959 = vmatmul.msk.f32.vlgmr.msra.gmra.mxu1 %vm211_vm8, %v1340_v35 }
 0x401   :  { %v574_v36 = vpop.f32.mrf.mxu1 }
 0x402   :  { %v578_v37 = vsel %vm4980_vm9, %v574_v36, -1e+30 }
 0x403   :  { %v582_v38 = vsel %vm211_vm8, %v578_v37, -inf }
 0x404   :  { %583 = vmax.xlane.f32.xlu0 %v582_v38 }
 0x409   :  { %v732_v39 = vpop.f32.mrf.mxu1 }
 0x40a   :  { %v736_v40 = vsel %vm4980_vm9, %v732_v39, -1e+30 }
 0x40b   :  { %v740_v41 = vsel %vm211_vm8, %v736_v40, -inf }
 0x40c   :  { %741 = vmax.xlane.f32.xlu1 %v740_v41 }
 0x40f   :  { %v5172_v31 = vpop.f32.mrf.mxu2 }
 0x412   :  { %v704_v42 = vpop.f32.mrf.mxu0 }
 0x413   :  { %v735_v43 = vsel %vm4980_vm9, %v704_v42, -1e+30 }
 0x414   :  { %v737_v44 = vsel %vm211_vm8, %v735_v43, -inf }
 0x415   :  { %738 = vmax.xlane.f32.xlu2 %v737_v44 }
 0x417   :  { %v5156_v14 = vpop.f32.mrf.mxu3  ;;  %v386_v39 = vpop.f32.mrf.mxu2 }
 0x418   :  { %v417_v41 = vsel %vm4980_vm9, %v386_v39, -1e+30 }
 0x419   :  { %v419_v44 = vsel %vm211_vm8, %v417_v41, -inf }
 0x41a   :  { %v862_v45 = vpop.f32.mrf.mxu0 }
 0x41b   :  { %v5106_v46 = vsel %vm4980_vm9, %v862_v45, -1e+30 }
 0x41c   :  { %v895_v47 = vsel %vm211_vm8, %v5106_v46, -inf  ;;  %v890_v48 = vpop.f32.mrf.mxu1 }
 0x41d   :  { %896 = vmax.xlane.f32.xlu0 %v895_v47  ;;  %v5112_v49 = vsel %vm4980_vm9, %v890_v48, -1e+30 }
 0x41e   :  { %v898_v50 = vsel %vm211_vm8, %v5112_v49, -inf }
 0x41f   :  { %899 = vmax.xlane.f32.xlu2 %v898_v50  ;;  %v581_v59 = vpop.xlane.xlu2 %580  ;;  %v414_v22 = vpop.f32.mrf.mxu3 }
 0x420   :  { %v585_v0 = vsub.f32 %v577_v28, %v581_v59  ;;  %v5164_v23 = vsel %vm4980_vm9, %v414_v22, -1e+30 }
 0x421   :  { %v422_v29 = vsel %vm211_vm8, %v5164_v23, -inf }
 0x422   :  { %v587_v1 = vmul.f32 1.442695, %v585_v0 }
 0x424   :  { %v1020_v51 = vpop.f32.mrf.mxu0  ;;  %4611 = vpow2.f32 %v587_v1 }
 0x425   :  { %v5118_v52 = vsel %vm4980_vm9, %v1020_v51, -1e+30 }
 0x426   :  { %v1053_v53 = vsel %vm211_vm8, %v5118_v52, -inf }
 0x427   :  { %1054 = vmax.xlane.f32.xlu1 %v1053_v53 }
 0x42a   :  { %v1048_v54 = vpop.f32.mrf.mxu1  ;;  %v5152_v8 = vpop.eup %4611 }
 0x42b   :  { %v5124_v55 = vsel %vm4980_vm9, %v1048_v54, -1e+30  ;;  %v591_v9 = vsel %vm211_vm8, %v5152_v8, 0.0 }
 0x42c   :  { %v1056_v56 = vsel %vm211_vm8, %v5124_v55, -inf }
 0x42d   :  { %1057 = vmax.xlane.f32.xlu0 %v1056_v56 }
 0x431   :  { %v1178_v57 = vpop.f32.mrf.mxu0 }
 0x432   :  { %v1206_v58 = vpop.f32.mrf.mxu1  ;;  %v5130_v60 = vsel %vm4980_vm9, %v1178_v57, -1e+30 }
 0x433   :  { %v5134_v61 = vsel %vm4980_vm9, %v1206_v58, -1e+30  ;;  %v1211_v62 = vsel %vm211_vm8, %v5130_v60, -inf }
 0x434   :  { %v1214_v63 = vsel %vm211_vm8, %v5134_v61, -inf  ;;  %1212 = vmax.xlane.f32.xlu2 %v1211_v62 }
 0x435   :  { %1215 = vmax.xlane.f32.xlu1 %v1214_v63 }
 0x439   :  { %v1336_v2 = vpop.f32.mrf.mxu0 }
 0x43a   :  { %v5142_v3 = vsel %vm4980_vm9, %v1336_v2, -1e+30 }
 0x43b   :  { %v1369_v4 = vsel %vm211_vm8, %v5142_v3, -inf }
 0x43c   :  { %1370 = vmax.xlane.f32.xlu0 %v1369_v4  ;;  %v1364_v5 = vpop.f32.mrf.mxu1 }
 0x43d   :  { %v5148_v6 = vsel %vm4980_vm9, %v1364_v5, -1e+30 }
 0x43e   :  { %v1372_v7 = vsel %vm211_vm8, %v5148_v6, -inf }
 0x43f   :  { %1373 = vmax.xlane.f32.xlu2 %v1372_v7 }
 0x447   :  { %592 = vadd.xlane.f32.xlu2 %v591_v9 }
 0x477   :  { %v584_v11 = vpop.xlane.xlu0 %583 }
 0x478   :  { %v586_v12 = vsub.f32 %v578_v37, %v584_v11 }
 0x47a   :  { %v589_v13 = vmul.f32 1.442695, %v586_v12 }
 0x47c   :  { %4613 = vpow2.f32 %v589_v13 }
 0x47f   :  { %v742_v15 = vpop.xlane.xlu1 %741 }
 0x480   :  { %v744_v16 = vsub.f32 %v736_v40, %v742_v15 }
 0x482   :  { %v5158_v18 = vpop.eup %4613  ;;  %v747_v19 = vmul.f32 1.442695, %v744_v16 }
 0x483   :  { %v594_v21 = vsel %vm211_vm8, %v5158_v18, 0.0 }
 0x484   :  { %4615 = vpow2.f32 %v747_v19  ;;  %595 = vadd.xlane.f32.xlu1 %v594_v21 }
 0x488   :  { %v739_v25 = vpop.xlane.xlu2 %738 }
 0x489   :  { %v743_v26 = vsub.f32 %v735_v43, %v739_v25 }
 0x48a   :  { %v5166_v27 = vpop.eup %4615 }
 0x48b   :  { %v745_v28 = vmul.f32 1.442695, %v743_v26  ;;  %v752_v30 = vsel %vm211_vm8, %v5166_v27, 0.0 }
 0x48c   :  { %423 = vmax.xlane.f32.xlu1 %v422_v29  ;;  %753 = vadd.xlane.f32.xlu2 %v752_v30 }
 0x48d   :  { %4617 = vpow2.f32 %v745_v28 }
 0x490   :  { %v897_v32 = vpop.xlane.xlu0 %896 }
 0x491   :  { %v901_v35 = vsub.f32 %v5106_v46, %v897_v32 }
 0x492   :  { %v900_v33 = vpop.xlane.xlu2 %899 }
 0x493   :  { %v5174_v34 = vpop.eup %4617  ;;  %v902_v36 = vsub.f32 %v5112_v49, %v900_v33  ;;  %v903_v40 = vmul.f32 1.442695, %v901_v35 }
 0x494   :  { %v749_v37 = vsel %vm211_vm8, %v5174_v34, 0.0 }
 0x495   :  { %v905_v38 = vmul.f32 1.442695, %v902_v36  ;;  %750 = vadd.xlane.f32.xlu0 %v749_v37 }
 0x497   :  { %4619 = vpow2.f32 %v905_v38 }
 0x498   :  { %4621 = vpow2.f32 %v903_v40 }
 0x49a   :  { %v1055_v42 = vpop.xlane.xlu1 %1054 }
 0x49b   :  { %v1059_v43 = vsub.f32 %v5118_v52, %v1055_v42  ;;  %v4442_v52 = vpack.i.bf16 %v4974_v20, %v4968_v17 }
 0x49d   :  { %v5184_v45 = vpop.eup %4619  ;;  %v1061_v46 = vmul.f32 1.442695, %v1059_v43  ;;  %420 = vmax.xlane.f32.xlu0 %v419_v44 }
 0x49e   :  { %v910_v47 = vsel %vm211_vm8, %v5184_v45, 0.0  ;;  %v5189_v50 = vpop.eup %4621 }
 0x49f   :  { %4623 = vpow2.f32 %v1061_v46  ;;  %911 = vadd.xlane.f32.xlu2 %v910_v47  ;;  %v907_v53 = vsel %vm211_vm8, %v5189_v50, 0.0 }
 0x4a0   :  { %v1058_v48 = vpop.xlane.xlu0 %1057 }
 0x4a1   :  { %v1060_v49 = vsub.f32 %v5124_v55, %v1058_v48 }
 0x4a3   :  { %v1063_v51 = vmul.f32 1.442695, %v1060_v49 }
 0x4a5   :  { %v5195_v54 = vpop.eup %4623  ;;  %4625 = vpow2.f32 %v1063_v51  ;;  %908 = vadd.xlane.f32.xlu0 %v907_v53  ;;  %4443 = vrot.lane.b32.xlu1 %v4442_v52, %s4778_s21 }
 0x4a6   :  { %v1065_v56 = vsel %vm211_vm8, %v5195_v54, 0.0 }
 0x4a7   :  { %1066 = vadd.xlane.f32.xlu2 %v1065_v56  ;;  %v1213_v26 = vpop.xlane.xlu2 %1212 }
 0x4a8   :  { %v1216_v57 = vpop.xlane.xlu1 %1215  ;;  %v1217_v28 = vsub.f32 %v5130_v60, %v1213_v26 }
 0x4a9   :  { %v1218_v55 = vsub.f32 %v5134_v61, %v1216_v57 }
 0x4aa   :  { %v1219_v29 = vmul.f32 1.442695, %v1217_v28 }
 0x4ab   :  { %v1221_v58 = vmul.f32 1.442695, %v1218_v55  ;;  %v5201_v59 = vpop.eup %4625 }
 0x4ac   :  { %v1068_v17 = vsel %vm211_vm8, %v5201_v59, 0.0 }
 0x4ad   :  { %4627 = vpow2.f32 %v1221_v58 }
 0x4af   :  { %v1371_v20 = vpop.xlane.xlu0 %1370  ;;  %1069 = vadd.xlane.f32.xlu2 %v1068_v17 }
 0x4b0   :  { %v1375_v62 = vsub.f32 %v5142_v3, %v1371_v20 }
 0x4b2   :  { %v1377_v63 = vmul.f32 1.442695, %v1375_v62  ;;  %v1374_v33 = vpop.xlane.xlu2 %1373 }
 0x4b3   :  { %v5206_v0 = vpop.eup %4627  ;;  %v1376_v35 = vsub.f32 %v5148_v6, %v1374_v33 }
 0x4b4   :  { %4629 = vpow2.f32 %v1377_v63  ;;  %v1226_v1 = vsel %vm211_vm8, %v5206_v0, 0.0 }
 0x4b5   :  { %v1379_v36 = vmul.f32 1.442695, %v1376_v35 }
 0x4b7   :  { %1227 = vadd.xlane.f32.xlu2 %v1226_v1 }
 0x4ba   :  { %v5210_v61 = vpop.eup %4629  ;;  %v5241_v60 = vpop.xlane.xlu2 %592 }
 0x4bb   :  { %v1381_v2 = vsel %vm211_vm8, %v5210_v61, 0.0 }
 0x4bf   :  { %1382 = vadd.xlane.f32.xlu2 %v1381_v2 }
 0x4d7   :  { %4463 = vrot.lane.b32.xlu2 %v4442_v52, %s6437_s18  ;;  %s6481_s18 = smov 32  }
 0x4df   :  { %4468 = vrot.lane.b32.xlu2 %v4442_v52, %s6443_s30  ;;  %s6477_s30 = smov 24  }
 0x4f7   :  { %v5216_v4 = vpop.xlane.xlu1 %595 }
 0x4f8   :  { %vm616_vm10 = vweird.f32 %v5216_v4 }
 0x4ff   :  { %v424_v3 = vpop.xlane.xlu1 %423  ;;  %v5245_v39 = vpop.xlane.xlu2 %753 }
 0x500   :  { %v426_v5 = vsub.f32 %v5164_v23, %v424_v3 }
 0x502   :  { %v429_v7 = vmul.f32 1.442695, %v426_v5  ;;  %v622_v5 = vand.u32 2147483648, %v5216_v4 }
 0x504   :  { %4631 = vpow2.f32 %v429_v7  ;;  %v620_v7 = vand.u32 2147483647, %v5216_v4 }
 0x506   :  { %vm621_vm12 = vcmp.eq.f32.partialorder %v620_v7, 8.507059e+37 }
 0x508   :  { %v5219_v9 = vpop.xlane.xlu0 %750 }
 0x50a   :  { %v5221_v11 = vpop.eup %4631 }
 0x50b   :  { %v434_v12 = vsel %vm211_vm8, %v5221_v11, 0.0 }
 0x50c   :  { %435 = vadd.xlane.f32.xlu0 %v434_v12 }
 0x510   :  { %v421_v13 = vpop.xlane.xlu0 %420 }
 0x511   :  { %v425_v15 = vsub.f32 %v417_v41, %v421_v13 }
 0x512   :  { %v5247_v40 = vpop.xlane.xlu2 %911 }
 0x513   :  { %v427_v16 = vmul.f32 1.442695, %v425_v15 }
 0x515   :  { %4633 = vpow2.f32 %v427_v16 }
 0x516   :  { %4635 = vpow2.f32 %v1219_v29 }
 0x517   :  { %v4444_v19 = vpop.permute.xlu1 %4443  ;;  %4637 = vpow2.f32 %v1379_v36 }
 0x518   :  { %v4446_v21 = vunpack.i.h.bf16 %v4444_v19  ;;  %v4445_v22 = vunpack.i.l.bf16 %v4444_v19  ;;  %v5249_v41 = vpop.xlane.xlu0 %908  ;;  %4639 = vrcp.f32 %v5216_v4 }
 0x51a   :  { %489 = vmatpush.msrb.mxu2 %v4445_v22  ;;  %516 = vmatpush.msrb.mxu3 %v4446_v21  ;;  %v5252_v6 = vpop.xlane.xlu2 %1066 }
 0x51b   :  { %v5225_v23 = vpop.eup %4633 }
 0x51c   :  { %v431_v25 = vsel %vm211_vm8, %v5225_v23, 0.0  ;;  %v5233_v30 = vpop.eup %4635 }
 0x51d   :  { %432 = vadd.xlane.f32.xlu1 %v431_v25  ;;  %v1223_v32 = vsel %vm211_vm8, %v5233_v30, 0.0  ;;  %v5239_v37 = vpop.eup %4637  ;;  %v623_v25 = vor.u32 1.1754944e-38, %v622_v5 }
 0x51e   :  { %v1384_v38 = vsel %vm211_vm8, %v5239_v37, 0.0  ;;  %v4640_v43 = vpop.eup %4639 }
 0x51f   :  { %v612_v44 = vmul.f32 %v4640_v43, %v5216_v4  ;;  %vm617_vm7 = vweird.f32 %v4640_v43 }
 0x520   :  { %4448 = vrot.lane.b32.xlu0 %v4442_v52, %s4779_s22  ;;  %vm618_vm11 = vmor %vm616_vm10, %vm617_vm7 }
 0x521   :  { %v613_v48 = vsub.f32 1.0, %v612_v44 }
 0x522   :  { %v5256_v49 = vpop.xlane.xlu2 %1069 }
 0x523   :  { %v614_v57 = vmul.f32 %v4640_v43, %v613_v48 }
 0x525   :  { %v615_v62 = vadd.f32 %v4640_v43, %v614_v57 }
 0x527   :  { %v619_v21 = vsel %vm618_vm11, %v4640_v43, %v615_v62 }
 0x52a   :  { %v5271_v15 = vpop.xlane.xlu2 %1227 }
 0x536   :  { %4453 = vrot.lane.b32.xlu1 %v4442_v52, %s6451_s26 }
 0x53e   :  { %4458 = vrot.lane.b32.xlu1 %v4442_v52, %s6449_s27 }
 0x54a   :  { %1224 = vadd.xlane.f32.xlu0 %v1223_v32 }
 0x55e   :  { %4473 = vrot.lane.b32.xlu0 %v4442_v52, %s6441_s0  ;;  %s6478_s0 = smov 16  }
 0x568   :  { %1385 = vadd.xlane.f32.xlu1 %v1384_v38 }
 0x57f   :  { %v436_v42 = vpop.xlane.xlu0 %435 }
 0x580   :  { %4641 = vrcp.f32 %v436_v42  ;;  %v462_v52 = vand.u32 2147483648, %v436_v42  ;;  %v460_v56 = vand.u32 2147483647, %v436_v42  ;;  %vm456_vm4 = vweird.f32 %v436_v42 }
 0x581   :  { %4643 = vrcp.f32 %v5241_v60 }
 0x582   :  { %4645 = vrcp.f32 %v5245_v39  ;;  %v463_v17 = vor.u32 1.1754944e-38, %v462_v52  ;;  %vm461_vm6 = vcmp.eq.f32.partialorder %v460_v56, 8.507059e+37 }
 0x583   :  { %4647 = vrcp.f32 %v5219_v9 }
 0x586   :  { %v4642_v46 = vpop.eup %4641 }
 0x587   :  { %v452_v47 = vmul.f32 %v4642_v46, %v436_v42  ;;  %vm457_vm3 = vweird.f32 %v4642_v46  ;;  %v5259_v58 = vpop.eup %4643 }
 0x588   :  { %vm458_vm5 = vmor %vm456_vm4, %vm457_vm3  ;;  %v5262_v2 = vpop.eup %4645  ;;  %v598_v3 = vmul.f32 %v5259_v58, %v5241_v60  ;;  %vm603_vm14 = vweird.f32 %v5259_v58  ;;  %vm602_vm4 = vweird.f32 %v5241_v60 }
 0x589   :  { %v453_v51 = vsub.f32 1.0, %v452_v47  ;;  %v770_v22 = vmul.f32 %v5262_v2, %v5245_v39  ;;  %v5276_v4 = vpop.eup %4647  ;;  %vm775_vm2 = vweird.f32 %v5262_v2 }
 0x58a   :  { %v599_v26 = vsub.f32 1.0, %v598_v3  ;;  %v756_v42 = vmul.f32 %v5276_v4, %v5219_v9  ;;  %v780_v3 = vand.u32 2147483648, %v5245_v39 }
 0x58b   :  { %v454_v53 = vmul.f32 %v4642_v46, %v453_v51  ;;  %v771_v32 = vsub.f32 1.0, %v770_v22  ;;  %v5290_v51 = vpop.xlane.xlu2 %1382 }
 0x58c   :  { %v600_v35 = vmul.f32 %v5259_v58, %v599_v26  ;;  %v757_v56 = vsub.f32 1.0, %v756_v42 }
 0x58d   :  { %v455_v55 = vadd.f32 %v4642_v46, %v454_v53 }
 0x58e   :  { %v601_v53 = vadd.f32 %v5259_v58, %v600_v35  ;;  %v764_v35 = vand.u32 2147483647, %v5219_v9 }
 0x58f   :  { %v459_v20 = vsel %vm458_vm5, %v4642_v46, %v455_v55  ;;  %v772_v46 = vmul.f32 %v5262_v2, %v771_v32  ;;  %vm5306_vm5 = vmor %vm602_vm4, %vm603_vm14 }
 0x590   :  { %v464_v63 = vsel %vm461_vm6, %v463_v17, %v459_v20  ;;  %v433_v1 = vpop.xlane.xlu1 %432  ;;  %vm774_vm6 = vweird.f32 %v5245_v39 }
 0x591   :  { %4649 = vrcp.f32 %v433_v1  ;;  %v466_v13 = vmul.f32 %v5221_v11, %v464_v63  ;;  %v624_v11 = vsel %vm621_vm12, %v623_v25, %v619_v21  ;;  %v448_v44 = vand.u32 2147483648, %v433_v1  ;;  %vm5317_vm7 = vmor %vm774_vm6, %vm775_vm2 }
 0x592   :  { %4651 = vrcp.f32 %v5247_v40  ;;  %v4449_v12 = vpop.permute.xlu0 %4448  ;;  %v626_v38 = vmul.f32 %v5158_v18, %v624_v11  ;;  %v446_v48 = vand.u32 2147483647, %v433_v1  ;;  %v608_v18 = vand.u32 2147483648, %v5241_v60 }
 0x593   :  { %v4451_v16 = vunpack.i.h.bf16 %v4449_v12  ;;  %v4450_v19 = vunpack.i.l.bf16 %v4449_v12  ;;  %3925 = vmatmul.msk.f32.vlgmr.msrb.gmra.mxu3 %vm211_vm8, %v466_v13  ;;  %4653 = vrcp.f32 %v5249_v41  ;;  %vm442_vm15 = vweird.f32 %v433_v1  ;;  %v5337_v32 = vpop.permute.xlu2 %4463 }
 0x594   :  { %4655 = vrcp.f32 %v5256_v49  ;;  %v449_v55 = vor.u32 1.1754944e-38, %v448_v44  ;;  %v773_v20 = vadd.f32 %v5262_v2, %v772_v46  ;;  %vm447_vm3 = vcmp.eq.f32.partialorder %v446_v48, 8.507059e+37 }
 0x595   :  { %648 = vmatpush.msra.mxu2 %v4450_v19  ;;  %674 = vmatpush.msra.mxu3 %v4451_v16  ;;  %v778_v12 = vand.u32 2147483647, %v5245_v39  ;;  %4657 = vrcp.f32 %v5252_v6  ;;  %v758_v19 = vmul.f32 %v5276_v4, %v757_v56  ;;  %v609_v22 = vor.u32 1.1754944e-38, %v608_v18 }
 0x596   :  { %4659 = vrcp.f32 %v5271_v15  ;;  %v777_v39 = vsel %vm5317_vm7, %v5262_v2, %v773_v20  ;;  %v781_v25 = vor.u32 1.1754944e-38, %v780_v3  ;;  %vm760_vm12 = vweird.f32 %v5219_v9 }
 0x597   :  { %v4650_v28 = vpop.eup %4649  ;;  %vm779_vm11 = vcmp.eq.f32.partialorder %v778_v12, 8.507059e+37  ;;  %v759_v11 = vadd.f32 %v5276_v4, %v758_v19  ;;  %v922_v3 = vand.u32 2147483647, %v5249_v41  ;;  %v924_v16 = vand.u32 2147483648, %v5249_v41 }
 0x598   :  { %v5278_v29 = vpop.eup %4651  ;;  %v438_v33 = vmul.f32 %v4650_v28, %v433_v1  ;;  %vm443_vm13 = vweird.f32 %v4650_v28  ;;  %v606_v1 = vand.u32 2147483647, %v5241_v60  ;;  %v605_v60 = vsel %vm5306_vm5, %v5259_v58, %v601_v53 }
 0x599   :  { %v928_v43 = vmul.f32 %v5278_v29, %v5247_v40  ;;  %vm444_vm1 = vmor %vm442_vm15, %vm443_vm13  ;;  %v5295_v17 = vpop.eup %4653  ;;  %vm761_vm13 = vweird.f32 %v5276_v4  ;;  %vm933_vm14 = vweird.f32 %v5278_v29  ;;  %vm918_vm5 = vweird.f32 %v5249_v41 }
 0x59a   :  { %v439_v36 = vsub.f32 1.0, %v438_v33  ;;  %v5299_v63 = vpop.eup %4655  ;;  %vm607_vm10 = vcmp.eq.f32.partialorder %v606_v1, 8.507059e+37  ;;  %vm5345_vm15 = vmor %vm760_vm12, %vm761_vm13  ;;  %vm919_vm6 = vweird.f32 %v5295_v17  ;;  %v1096_v19 = vand.u32 2147483648, %v5256_v49 }
 0x59b   :  { %3931 = vmatmul.msk.f32.vlgmr.msra.gmra.mxu3 %vm211_vm8, %v626_v38  ;;  %v929_v57 = vsub.f32 1.0, %v928_v43  ;;  %v1086_v58 = vmul.f32 %v5299_v63, %v5256_v49  ;;  %v610_v26 = vsel %vm607_vm10, %v609_v22, %v605_v60  ;;  %v5339_v33 = vpop.eup %4657  ;;  %vm1091_vm7 = vweird.f32 %v5299_v63  ;;  %vm5382_vm10 = vmor %vm918_vm5, %vm919_vm6 }
 0x59c   :  { %v440_v47 = vmul.f32 %v4650_v28, %v439_v36  ;;  %v766_v36 = vand.u32 2147483648, %v5219_v9  ;;  %v5343_v44 = vpop.eup %4659  ;;  %v936_v9 = vand.u32 2147483647, %v5247_v40  ;;  %v625_v53 = vmul.f32 %v5152_v8, %v610_v26 }
 0x59d   :  { %v930_v21 = vmul.f32 %v5278_v29, %v929_v57  ;;  %v1087_v42 = vsub.f32 1.0, %v1086_v58  ;;  %v763_v57 = vsel %vm5345_vm15, %v5276_v4, %v759_v11  ;;  %v1072_v20 = vmul.f32 %v5339_v33, %v5252_v6 }
 0x59e   :  { %v441_v52 = vadd.f32 %v4650_v28, %v440_v47  ;;  %v938_v47 = vand.u32 2147483648, %v5247_v40  ;;  %vm937_vm4 = vcmp.eq.f32.partialorder %v936_v9, 8.507059e+37  ;;  %v1094_v58 = vand.u32 2147483647, %v5256_v49 }
 0x59f   :  { %v931_v2 = vadd.f32 %v5278_v29, %v930_v21  ;;  %v1088_v8 = vmul.f32 %v5299_v63, %v1087_v42  ;;  %v4469_v21 = vpop.permute.xlu2 %4468  ;;  %vm923_vm13 = vcmp.eq.f32.partialorder %v922_v3, 8.507059e+37  ;;  %vm1077_vm15 = vweird.f32 %v5339_v33 }
 0x5a0   :  { %v445_v62 = vsel %vm444_vm1, %v4650_v28, %v441_v52  ;;  %v782_v28 = vsel %vm779_vm11, %v781_v25, %v777_v39  ;;  %vm932_vm1 = vweird.f32 %v5247_v40  ;;  %v939_v4 = vor.u32 1.1754944e-38, %v938_v47 }
 0x5a1   :  { %v450_v5 = vsel %vm447_vm3, %v449_v55, %v445_v62  ;;  %vm5351_vm2 = vmor %vm932_vm1, %vm933_vm14  ;;  %v784_v56 = vmul.f32 %v5166_v27, %v782_v28  ;;  %v767_v62 = vor.u32 1.1754944e-38, %v766_v36  ;;  %v1244_v27 = vmul.f32 %v5343_v44, %v5271_v15 }
 0x5a2   :  { %v465_v13 = vmul.f32 %v5225_v23, %v450_v5  ;;  %v914_v23 = vmul.f32 %v5295_v17, %v5249_v41  ;;  %v935_v55 = vsel %vm5351_vm2, %v5278_v29, %v931_v2  ;;  %vm765_vm3 = vcmp.eq.f32.partialorder %v764_v35, 8.507059e+37 }
 0x5a3   :  { %v768_v29 = vsel %vm765_vm3, %v767_v62, %v763_v57  ;;  %v940_v1 = vsel %vm937_vm4, %v939_v4, %v935_v55  ;;  %v1073_v5 = vsub.f32 1.0, %v1072_v20  ;;  %v1089_v12 = vadd.f32 %v5299_v63, %v1088_v8 }
 0x5a4   :  { %3924 = vmatmul.msk.f32.vlgmr.msrb.gmra.mxu2 %vm211_vm8, %v465_v13  ;;  %v915_v38 = vsub.f32 1.0, %v914_v23  ;;  %v1245_v13 = vsub.f32 1.0, %v1244_v27  ;;  %vm1090_vm11 = vweird.f32 %v5256_v49  ;;  %v783_v25 = vmul.f32 %v5174_v34, %v768_v29 }
 0x5a5   :  { %v942_v26 = vmul.f32 %v5184_v45, %v940_v1  ;;  %v1074_v28 = vmul.f32 %v5339_v33, %v1073_v5  ;;  %vm5391_vm12 = vmor %vm1090_vm11, %vm1091_vm7  ;;  %v4466_v41 = vunpack.i.h.bf16 %v5337_v32  ;;  %v4465_v2 = vunpack.i.l.bf16 %v5337_v32 }
 0x5a6   :  { %v916_v40 = vmul.f32 %v5295_v17, %v915_v38  ;;  %v1093_v34 = vsel %vm5391_vm12, %v5299_v63, %v1089_v12  ;;  %v1246_v45 = vmul.f32 %v5343_v44, %v1245_v13  ;;  %v4471_v35 = vunpack.i.h.bf16 %v4469_v21 }
 0x5a7   :  { %v925_v36 = vor.u32 1.1754944e-38, %v924_v16  ;;  %v1097_v38 = vor.u32 1.1754944e-38, %v1096_v19  ;;  %vm1095_vm14 = vcmp.eq.f32.partialorder %v1094_v58, 8.507059e+37  ;;  %v1075_v63 = vadd.f32 %v5339_v33, %v1074_v28 }
 0x5a8   :  { %v4454_v43 = vpop.permute.xlu1 %4453  ;;  %v917_v7 = vadd.f32 %v5295_v17, %v916_v40  ;;  %v1247_v42 = vadd.f32 %v5343_v44, %v1246_v45  ;;  %vm1249_vm1 = vweird.f32 %v5343_v44  ;;  %4661 = vrcp.f32 %v5290_v51 }
 0x5a9   :  { %v4456_v48 = vunpack.i.h.bf16 %v4454_v43  ;;  %v4455_v18 = vunpack.i.l.bf16 %v4454_v43  ;;  %vm1076_vm2 = vweird.f32 %v5252_v6  ;;  %v1080_v43 = vand.u32 2147483647, %v5252_v6 }
 0x5aa   :  { %v921_v49 = vsel %vm5382_vm10, %v5295_v17, %v917_v7  ;;  %v1098_v17 = vsel %vm1095_vm14, %v1097_v38, %v1093_v34  ;;  %v1082_v46 = vand.u32 2147483648, %v5252_v6  ;;  %v1254_v47 = vand.u32 2147483648, %v5271_v15  ;;  %vm5415_vm3 = vmor %vm1076_vm2, %vm1077_vm15 }
 0x5ab   :  { %806 = vmatpush.msrb.mxu2 %v4455_v18  ;;  %832 = vmatpush.msrb.mxu3 %v4456_v48  ;;  %v926_v32 = vsel %vm923_vm13, %v925_v36, %v921_v49  ;;  %vm1248_vm4 = vweird.f32 %v5271_v15  ;;  %v1252_v18 = vand.u32 2147483647, %v5271_v15  ;;  %v1100_v9 = vmul.f32 %v5201_v59, %v1098_v17 }
 0x5ac   :  { %3930 = vmatmul.msk.f32.vlgmr.msra.gmra.mxu2 %vm211_vm8, %v625_v53  ;;  %3937 = vmatmul.msk.f32.vlgmr.msrb.gmra.mxu3 %vm211_vm8, %v784_v56  ;;  %v941_v52 = vmul.f32 %v5189_v50, %v926_v32  ;;  %vm5423_vm5 = vmor %vm1248_vm4, %vm1249_vm1  ;;  %v4470_v56 = vunpack.i.l.bf16 %v4469_v21  ;;  %v1079_v6 = vsel %vm5415_vm3, %v5339_v33, %v1075_v63  ;;  %v1083_v50 = vor.u32 1.1754944e-38, %v1082_v46 }
 0x5ad   :  { %v1251_v57 = vsel %vm5423_vm5, %v5343_v44, %v1247_v42  ;;  %v1255_v15 = vor.u32 1.1754944e-38, %v1254_v47  ;;  %vm1081_vm6 = vcmp.eq.f32.partialorder %v1080_v43, 8.507059e+37  ;;  %vm1253_vm7 = vcmp.eq.f32.partialorder %v1252_v18, 8.507059e+37 }
 0x5ae   :  { %v4662_v55 = vpop.eup %4661  ;;  %v1084_v20 = vsel %vm1081_vm6, %v1083_v50, %v1079_v6  ;;  %vm1392_vm15 = vweird.f32 %v5290_v51  ;;  %v1396_v19 = vand.u32 2147483647, %v5290_v51 }
 0x5af   :  { %v1256_v62 = vsel %vm1253_vm7, %v1255_v15, %v1251_v57  ;;  %v1388_v33 = vmul.f32 %v4662_v55, %v5290_v51  ;;  %v1099_v40 = vmul.f32 %v5195_v54, %v1084_v20  ;;  %vm1393_vm13 = vweird.f32 %v4662_v55 }
 0x5b0   :  { %v4459_v60 = vpop.permute.xlu1 %4458  ;;  %v1258_v44 = vmul.f32 %v5206_v0, %v1256_v62  ;;  %vm1394_vm1 = vmor %vm1392_vm15, %vm1393_vm13  ;;  %vm1397_vm2 = vcmp.eq.f32.partialorder %v1396_v19, 8.507059e+37  ;;  %v4359_v62 = vld [vmem:[%s6417_s2 + $0x18] sm:$0xff]  ;;  %vm1527_vm7 = vcmask 130048   ;;  %vm1539_vm13 = vcmask 392192  }
 0x5b1   :  { %v4461_v22 = vunpack.i.h.bf16 %v4459_v60  ;;  %v4460_v39 = vunpack.i.l.bf16 %v4459_v60  ;;  %v1389_v27 = vsub.f32 1.0, %v1388_v33  ;;  %v1398_v60 = vand.u32 2147483648, %v5290_v51  ;;  %1587 = vmatpush.bf16.msrb.mxu0 %v4359_v62  ;;  %v4358_v33 = vld [vmem:[%s6417_s2 + $0x10] sm:$0xff]  ;;  %v4367_v62 = vld [vmem:[%s6423_s8 + $0x34] sm:$0xf0] }
 0x5b3   :  { %964 = vmatpush.msra.mxu2 %v4460_v39  ;;  %990 = vmatpush.msra.mxu3 %v4461_v22  ;;  %v1390_v3 = vmul.f32 %v4662_v55, %v1389_v27 }
 0x5b4   :  { %3936 = vmatmul.msk.f32.vlgmr.msrb.gmra.mxu2 %vm211_vm8, %v783_v25  ;;  %3943 = vmatmul.msk.f32.vlgmr.msra.gmra.mxu3 %vm211_vm8, %v942_v26  ;;  %v1399_v25 = vor.u32 1.1754944e-38, %v1398_v60 }
 0x5b5   :  { %1122 = vmatpush.msrb.mxu2 %v4465_v2  ;;  %1148 = vmatpush.msrb.mxu3 %v4466_v41  ;;  %v1391_v54 = vadd.f32 %v4662_v55, %v1390_v3 }
 0x5b6   :  { %1588 = vmatpush.bf16.msrb.mxu0 %v4358_v33  ;;  %v4366_v33 = vld [vmem:[%s6423_s8 + $0x34] sm:$0xf] }
 0x5b7   :  { %1306 = vmatpush.msra.mxu3 %v4471_v35  ;;  %v1395_v39 = vsel %vm1394_vm1, %v4662_v55, %v1391_v54 }
 0x5b8   :  { %v1400_v26 = vsel %vm1397_vm2, %v1399_v25, %v1395_v39 }
 0x5b9   :  { %v1415_v28 = vmul.f32 %v5210_v61, %v1400_v26 }
 0x5bc   :  { %3942 = vmatmul.msk.f32.vlgmr.msra.gmra.mxu2 %vm211_vm8, %v941_v52  ;;  %3949 = vmatmul.msk.f32.vlgmr.msrb.gmra.mxu3 %vm211_vm8, %v1100_v9 }
 0x5bd   :  { %1280 = vmatpush.msra.mxu2 %v4470_v56  ;;  %v1225_v59 = vpop.xlane.xlu0 %1224 }
 0x5be   :  { %4663 = vrcp.f32 %v1225_v59  ;;  %v1240_v1 = vand.u32 2147483648, %v1225_v59  ;;  %v1238_v7 = vand.u32 2147483647, %v1225_v59  ;;  %vm1234_vm11 = vweird.f32 %v1225_v59 }
 0x5c0   :  { %v1241_v13 = vor.u32 1.1754944e-38, %v1240_v1  ;;  %vm1239_vm14 = vcmp.eq.f32.partialorder %v1238_v7, 8.507059e+37 }
 0x5c4   :  { %v4664_v8 = vpop.eup %4663  ;;  %3948 = vmatmul.msk.f32.vlgmr.msrb.gmra.mxu2 %vm211_vm8, %v1099_v40  ;;  %3955 = vmatmul.msk.f32.vlgmr.msra.gmra.mxu3 %vm211_vm8, %v1258_v44  ;;  %v4357_v40 = vld [vmem:[%s6417_s2 + $0x8] sm:$0xff]  ;;  %v4356_v44 = vld [vmem:[%s6417_s2] sm:$0xff] }
 0x5c5   :  { %v1230_v4 = vmul.f32 %v4664_v8, %v1225_v59  ;;  %vm1235_vm10 = vweird.f32 %v4664_v8  ;;  %1589 = vmatpush.bf16.msrb.mxu0 %v4357_v40 }
 0x5c6   :  { %vm1236_vm12 = vmor %vm1234_vm11, %vm1235_vm10  ;;  %vm1530_vm10 = vcmask 195584   ;;  %vm1533_vm11 = vcmask 261120  }
 0x5c7   :  { %v1231_v29 = vsub.f32 1.0, %v1230_v4 }
 0x5c9   :  { %v1232_v5 = vmul.f32 %v4664_v8, %v1231_v29  ;;  %1590 = vmatpush.bf16.msrb.mxu0 %v4356_v44  ;;  %v4007_v44 = vld [vmem:[%s6423_s8 + $0x38] sm:$0xf0] }
 0x5cb   :  { %v1233_v12 = vadd.f32 %v4664_v8, %v1232_v5 }
 0x5cd   :  { %v1237_v0 = vsel %vm1236_vm12, %v4664_v8, %v1233_v12  ;;  %vm1536_vm12 = vcmask 326656  }
 0x5ce   :  { %v1242_v16 = vsel %vm1239_vm14, %v1241_v13, %v1237_v0  ;;  %vm1542_vm14 = vcmask 457728  }
 0x5cf   :  { %v1257_v21 = vmul.f32 %v5233_v30, %v1242_v16 }
 0x5d0   :  { %v4474_v22 = vpop.permute.xlu0 %4473 }
 0x5d1   :  { %v4476_v23 = vunpack.i.h.bf16 %v4474_v22  ;;  %v4475_v58 = vunpack.i.l.bf16 %v4474_v22  ;;  %3954 = vmatmul.msk.f32.vlgmr.msra.gmra.mxu2 %vm211_vm8, %v1257_v21 }
 0x5d3   :  { %1438 = vmatpush.msrb.mxu2 %v4475_v58  ;;  %1464 = vmatpush.msrb.mxu3 %v4476_v23 }
 0x5d9   :  { %3960 = vmatmul.msk.f32.vlgmr.msrb.gmra.mxu2 %vm211_vm8, %v1415_v28 }
 0x5db   :  { %v1386_v11 = vpop.xlane.xlu1 %1385 }
 0x5dc   :  { %4665 = vrcp.f32 %v1386_v11  ;;  %v1412_v2 = vand.u32 2147483648, %v1386_v11  ;;  %v1410_v34 = vand.u32 2147483647, %v1386_v11  ;;  %vm1406_vm4 = vweird.f32 %v1386_v11 }
 0x5de   :  { %v1413_v35 = vor.u32 1.1754944e-38, %v1412_v2  ;;  %vm1411_vm6 = vcmp.eq.f32.partialorder %v1410_v34, 8.507059e+37 }
 0x5e2   :  { %v4666_v51 = vpop.eup %4665 }
 0x5e3   :  { %v1402_v30 = vmul.f32 %v4666_v51, %v1386_v11  ;;  %vm1407_vm3 = vweird.f32 %v4666_v51 }
 0x5e4   :  { %vm1408_vm5 = vmor %vm1406_vm4, %vm1407_vm3 }
 0x5e5   :  { %v1403_v41 = vsub.f32 1.0, %v1402_v30 }
 0x5e7   :  { %v1404_v49 = vmul.f32 %v4666_v51, %v1403_v41 }
 0x5e9   :  { %v1405_v45 = vadd.f32 %v4666_v51, %v1404_v49 }
 0x5eb   :  { %v1409_v36 = vsel %vm1408_vm5, %v4666_v51, %v1405_v45 }
 0x5ec   :  { %v1414_v38 = vsel %vm1411_vm6, %v1413_v35, %v1409_v36 }
 0x5ed   :  { %v1416_v61 = vmul.f32 %v5239_v37, %v1414_v38 }
 0x5ef   :  { %3961 = vmatmul.msk.f32.vlgmr.msrb.gmra.mxu3 %vm211_vm8, %v1416_v61  ;;  %v4584_v61 = vld [vmem:[%s6418_s3] ss:$0 sm:$0xff] }
 0x616   :  { %v518_v32 = vpop.f32.mrf.mxu3 }
 0x61e   :  { %v676_v42 = vpop.f32.mrf.mxu3 }
 0x627   :  { %v491_v17 = vpop.f32.mrf.mxu2 }
 0x628   :  { %v4477_v63 = vpack.i.bf16 %v518_v32, %v491_v17 }
 0x62a   :  { %4478 = vrot.lane.b32.xlu2 %v4477_v63, %s6435_s19  ;;  %v4747_v63 = vld [vmem:[%s6455_s23] sm:$0xff]  ;;  %s6482_s19 = smov 88  }
 0x62f   :  { %v650_v43 = vpop.f32.mrf.mxu2  ;;  %v834_v47 = vpop.f32.mrf.mxu3 }
 0x630   :  { %v4482_v46 = vpack.i.bf16 %v676_v42, %v650_v43 }
 0x632   :  { %4483 = vrot.lane.b32.xlu1 %v4482_v46, %s6445_s29  ;;  %s6476_s29 = smov 96  }
 0x637   :  { %v808_v48 = vpop.f32.mrf.mxu2  ;;  %v992_v52 = vpop.f32.mrf.mxu3 }
 0x638   :  { %v4487_v18 = vpack.i.bf16 %v834_v47, %v808_v48  ;;  %v4748_v48 = vld [vmem:[%s6455_s23 + $0x8] sm:$0xff]  ;;  %s6479_s23 = smov 80  }
 0x63a   :  { %4488 = vrot.lane.b32.xlu2 %v4487_v18, %s6447_s28 }
 0x63f   :  { %v966_v9 = vpop.f32.mrf.mxu2  ;;  %v1150_v53 = vpop.f32.mrf.mxu3 }
 0x640   :  { %v4492_v37 = vpack.i.bf16 %v992_v52, %v966_v9 }
 0x642   :  { %4493 = vrot.lane.b32.xlu0 %v4492_v37, %s6439_s17  ;;  %s6480_s17 = smov 72  }
 0x647   :  { %v1124_v56 = vpop.f32.mrf.mxu2  ;;  %v1308_v57 = vpop.f32.mrf.mxu3 }
 0x648   :  { %v4497_v6 = vpack.i.bf16 %v1150_v53, %v1124_v56 }
 0x64a   :  { %4498 = vrot.lane.b32.xlu2 %v4497_v6, %s4780_s24 }
 0x654   :  { %v1282_v50 = vpop.f32.mrf.mxu2 }
 0x655   :  { %v4502_v15 = vpack.i.bf16 %v1308_v57, %v1282_v50 }
 0x657   :  { %4503 = vrot.lane.b32.xlu0 %v4502_v15, %s4781_s25 }
 0x65c   :  { %v1440_v59 = vpop.f32.mrf.mxu2 }
 0x672   :  { %v1466_v55 = vpop.f32.mrf.mxu3 }
 0x673   :  { %v4507_v20 = vpack.i.bf16 %v1466_v55, %v1440_v59 }
 0x675   :  { %4508 = vrot.lane.b32.xlu2 %v4507_v20, %s4777_s20  ;;  %v4005_v20 = vld [vmem:[%s6423_s8 + $0x30] sm:$0xf] }
 0x676   :  { %v4006_v40 = vor.u32 %v4367_v62, %v4005_v20 }
 0x678   :  { %1719 = vmatpush.bf16.msrb.mxu1 %v4006_v40 }
 0x684   :  { %v4479_v8 = vpop.permute.xlu2 %4478 }
 0x685   :  { %v4481_v1 = vunpack.i.h.bf16 %v4479_v8  ;;  %v4480_v3 = vunpack.i.l.bf16 %v4479_v8  ;;  %v4010_v8 = vor.u32 %v4366_v33, %v4007_v44 }
 0x687   :  { %v1526_v13 = vsel %vm211_vm8, %v5156_v14, %v4481_v1  ;;  %v1525_v54 = vsel %vm211_vm8, %v5172_v31, %v4480_v3  ;;  %1733 = vmatpush.bf16.msra.mxu0 %v4010_v8  ;;  %v3999_v3 = vld [vmem:[%s6423_s8 + $0x28] sm:$0xf0] }
 0x694   :  { %v4489_v27 = vpop.permute.xlu2 %4488 }
 0x695   :  { %v4491_v21 = vunpack.i.h.bf16 %v4489_v27  ;;  %v4490_v22 = vunpack.i.l.bf16 %v4489_v27  ;;  %v3997_v27 = vld [vmem:[%s6423_s8 + $0x20] sm:$0xf] }
 0x6a4   :  { %v4484_v4 = vpop.permute.xlu1 %4483  ;;  %v4499_v12 = vpop.permute.xlu2 %4498 }
 0x6a5   :  { %v4486_v5 = vunpack.i.h.bf16 %v4484_v4  ;;  %v4485_v7 = vunpack.i.l.bf16 %v4484_v4  ;;  %v4501_v28 = vunpack.i.h.bf16 %v4499_v12  ;;  %v4500_v11 = vunpack.i.l.bf16 %v4499_v12  ;;  %v4365_v4 = vld [vmem:[%s6423_s8 + $0x24] sm:$0xf0] }
 0x6a6   :  { %v3998_v1 = vor.u32 %v4365_v4, %v3997_v27  ;;  %v4371_v27 = vld [vmem:[%s6425_s10 + $0x18] sm:$0xff] }
 0x6a7   :  { %v1528_v0 = vsel %vm1527_vm7, %v1525_v54, %v4485_v7  ;;  %v1529_v60 = vsel %vm1527_vm7, %v1526_v13, %v4486_v5  ;;  %v3989_v13 = vld [vmem:[%s6423_s8 + $0x10] sm:$0xf]  ;;  %v4363_v54 = vld [vmem:[%s6423_s8 + $0x14] sm:$0xf0] }
 0x6a8   :  { %v1531_v23 = vsel %vm1530_vm10, %v1528_v0, %v4490_v22  ;;  %v1532_v58 = vsel %vm1530_vm10, %v1529_v60, %v4491_v21  ;;  %1720 = vmatpush.bf16.msrb.mxu1 %v3998_v1  ;;  %v4362_v0 = vld [vmem:[%s6423_s8 + $0x14] sm:$0xf]  ;;  %v3981_v22 = vld [vmem:[%s6423_s8] sm:$0xf]  ;;  %v4379_v4 = vld [vmem:[%s6425_s10 + $0x58] sm:$0xff] }
 0x6a9   :  { %v4369_v1 = vld [vmem:[%s6425_s10 + $0x8] sm:$0xff] }
 0x6b4   :  { %v4494_v29 = vpop.permute.xlu0 %4493 }
 0x6b5   :  { %v4496_v16 = vunpack.i.h.bf16 %v4494_v29  ;;  %v4495_v19 = vunpack.i.l.bf16 %v4494_v29  ;;  %v4364_v29 = vld [vmem:[%s6423_s8 + $0x24] sm:$0xf] }
 0x6b6   :  { %v4002_v7 = vor.u32 %v4364_v29, %v3999_v3  ;;  %v4378_v29 = vld [vmem:[%s6425_s10 + $0x50] sm:$0xff]  ;;  %v4377_v3 = vld [vmem:[%s6425_s10 + $0x48] sm:$0xff] }
 0x6b7   :  { %v1534_v14 = vsel %vm1533_vm11, %v1531_v23, %v4495_v19  ;;  %v1535_v31 = vsel %vm1533_vm11, %v1532_v58, %v4496_v16  ;;  %v3990_v16 = vor.u32 %v4363_v54, %v3989_v13  ;;  %v3991_v19 = vld [vmem:[%s6423_s8 + $0x18] sm:$0xf0]  ;;  %v4360_v23 = vld [vmem:[%s6423_s8 + $0x4] sm:$0xf] }
 0x6b8   :  { %v1537_v30 = vsel %vm1536_vm12, %v1534_v14, %v4500_v11  ;;  %v1538_v41 = vsel %vm1536_vm12, %v1535_v31, %v4501_v28  ;;  %1734 = vmatpush.bf16.msra.mxu0 %v4002_v7  ;;  %v3994_v21 = vor.u32 %v4362_v0, %v3991_v19  ;;  %v3983_v14 = vld [vmem:[%s6423_s8 + $0x8] sm:$0xf0]  ;;  %v4376_v7 = vld [vmem:[%s6425_s10 + $0x40] sm:$0xff] }
 0x6b9   :  { %1721 = vmatpush.bf16.msrb.mxu1 %v3990_v16  ;;  %v3986_v31 = vor.u32 %v4360_v23, %v3983_v14 }
 0x6bc   :  { %1735 = vmatpush.bf16.msra.mxu0 %v3994_v21 }
 0x6c0   :  { %1736 = vmatpush.bf16.msra.mxu0 %v3986_v31 }
 0x6c9   :  { %v4504_v39 = vpop.permute.xlu0 %4503 }
 0x6ca   :  { %v4506_v25 = vunpack.i.h.bf16 %v4504_v39  ;;  %v4505_v26 = vunpack.i.l.bf16 %v4504_v39  ;;  %v4361_v39 = vld [vmem:[%s6423_s8 + $0x4] sm:$0xf0] }
 0x6cb   :  { %v3982_v58 = vor.u32 %v4361_v39, %v3981_v22 }
 0x6cc   :  { %v1541_v34 = vsel %vm1539_vm13, %v1538_v41, %v4506_v25  ;;  %v1540_v45 = vsel %vm1539_vm13, %v1537_v30, %v4505_v26  ;;  %v4383_v30 = vld [vmem:[%s6425_s10 + $0x78] sm:$0xff] }
 0x6cd   :  { %1722 = vmatpush.bf16.msrb.mxu1 %v3982_v58 }
 0x6cf   :  { %v4509_v51 = vpop.permute.xlu2 %4508 }
 0x6d0   :  { %v4511_v2 = vunpack.i.h.bf16 %v4509_v51  ;;  %v4510_v49 = vunpack.i.l.bf16 %v4509_v51  ;;  %v4375_v51 = vld [vmem:[%s6425_s10 + $0x38] sm:$0xff] }
 0x6d1   :  { %1879 = vmatpush.bf16.msra.mxu3 %v4375_v51 }
 0x6d2   :  { %v1544_v35 = vsel %vm1542_vm14, %v1541_v34, %v4511_v2  ;;  %v1543_v36 = vsel %vm1542_vm14, %v1540_v45, %v4510_v49  ;;  %v4374_v2 = vld [vmem:[%s6425_s10 + $0x30] sm:$0xff] }
 0x6d3   :  { %v1545_v38 = vpack.c.bf16 %v1544_v35, %v1543_v36  ;;  %v4382_v49 = vld [vmem:[%s6425_s10 + $0x70] sm:$0xff]  ;;  %v4373_v35 = vld [vmem:[%s6425_s10 + $0x28] sm:$0xff] }
 0x6d4   :  { %v4381_v36 = vld [vmem:[%s6425_s10 + $0x68] sm:$0xff] }
 0x6d5   :  { %3978 = vmatmul.msk.bf16.vlgmr.msrb.gmra.mxu0 %vm6453_vm0, %v1545_v38  ;;  %1880 = vmatpush.bf16.msra.mxu3 %v4374_v2 }
 0x6d6   :  { %1893 = vmatpush.bf16.msrb.mxu0 %v4383_v30 }
 0x6d9   :  { %1881 = vmatpush.bf16.msra.mxu3 %v4373_v35 }
 0x6da   :  { %1894 = vmatpush.bf16.msrb.mxu0 %v4382_v49 }
 0x6de   :  { %1895 = vmatpush.bf16.msrb.mxu0 %v4381_v36 }
 0x752   :  { %v1592_v32 = vpop.f32.mrf.mxu0 }
 0x753   :  { %v1593_v17 = vadd.f32 %v4584_v61, %v1592_v32 }
 0x755   :  { %v5491_v42 = vadd.f32 %v4747_v63, %v1593_v17  ;;  %v4372_v63 = vld [vmem:[%s6425_s10 + $0x20] sm:$0xff] }
 0x756   :  { %1882 = vmatpush.bf16.msra.mxu3 %v4372_v63 }
 0x757   :  { %v1601_v43 = vsel %vm6453_vm0, %v5491_v42, 0.0 }
 0x758   :  { %1602 = vadd.xlane.f32.xlu1 %v1601_v43  ;;  %v4380_v43 = vld [vmem:[%s6425_s10 + $0x60] sm:$0xff] }
 0x759   :  { %1896 = vmatpush.bf16.msrb.mxu0 %v4380_v43 }
 0x75a   :  { %v1594_v46 = vpop.f32.mrf.mxu0  ;;  %1883 = vmatpush.bf16.msra.mxu3 %v4371_v27  ;;  %v4095_v27 = vld [vmem:[%s6416_s1 + $0x50] sm:$0xf] }
 0x75b   :  { %v1595_v47 = vadd.f32 %v4584_v61, %v1594_v46 }
 0x75d   :  { %v5498_v18 = vadd.f32 %v4748_v48, %v1595_v47  ;;  %v4585_v48 = vld [vmem:[%s6421_s6] ss:$0 sm:$0xff]  ;;  %1897 = vmatpush.bf16.msrb.mxu0 %v4379_v4  ;;  %v4387_v4 = vld [vmem:[%s6416_s1 + $0x54] sm:$0xf0] }
 0x75f   :  { %v1604_v52 = vsel %vm6453_vm0, %v5498_v18, 0.0 }
 0x760   :  { %1605 = vadd.xlane.f32.xlu0 %v1604_v52 }
 0x761   :  { %1898 = vmatpush.bf16.msrb.mxu0 %v4378_v29 }
 0x765   :  { %1899 = vmatpush.bf16.msrb.mxu0 %v4377_v3  ;;  %v4097_v3 = vld [vmem:[%s6416_s1 + $0x58] sm:$0xf0] }
 0x769   :  { %1900 = vmatpush.bf16.msrb.mxu0 %v4376_v7  ;;  %v4087_v7 = vld [vmem:[%s6416_s1 + $0x40] sm:$0xf] }
 0x7cb   :  { %v1603_v9 = vpop.xlane.xlu1 %1602 }
 0x7cc   :  { %v1607_v37 = vmul.f32 %v1603_v9, %v4886_v10 }
 0x7ce   :  { %v5504_v53 = vsub.f32 %v5491_v42, %v1607_v37 }
 0x7d0   :  { %v1611_v56 = vmul.f32 %v5504_v53, %v5504_v53 }
 0x7d2   :  { %v1613_v6 = vsel %vm6453_vm0, %v1611_v56, 0.0  ;;  %v4586_v56 = vld [vmem:[%s6422_s7] ss:$0 sm:$0xff] }
 0x7d3   :  { %v1606_v57 = vpop.xlane.xlu0 %1605  ;;  %1614 = vadd.xlane.f32.xlu2 %v1613_v6 }
 0x7d4   :  { %v1608_v50 = vmul.f32 %v1606_v57, %v4886_v10 }
 0x7d6   :  { %v5511_v15 = vsub.f32 %v5498_v18, %v1608_v50 }
 0x7d8   :  { %v1612_v59 = vmul.f32 %v5511_v15, %v5511_v15 }
 0x7da   :  { %v1616_v55 = vsel %vm6453_vm0, %v1612_v59, 0.0 }
 0x7db   :  { %1617 = vadd.xlane.f32.xlu1 %v1616_v55 }
 0x846   :  { %v1615_v5 = vpop.xlane.xlu2 %1614 }
 0x847   :  { %v1619_v12 = vmul.f32 %v1615_v5, %v4886_v10  ;;  %v4368_v5 = vld [vmem:[%s6425_s10] sm:$0xff] }
 0x849   :  { %v1621_v60 = vadd.f32 1e-05, %v1619_v12  ;;  %v1661_v12 = vld [vmem:[%s6424_s9] ss:$2 sm:$0x3] }
 0x84a   :  { %v1663_v0 = vperm.slane %v1661_v12, 0 }
 0x84b   :  { %4667 = vrsqrt.f32 %v1621_v60  ;;  %vm1629_vm1 = vweird.f32 %v1621_v60 }
 0x84e   :  { %v1618_v25 = vpop.xlane.xlu1 %1617 }
 0x84f   :  { %v1620_v26 = vmul.f32 %v1618_v25, %v4886_v10 }
 0x851   :  { %v4668_v28 = vpop.eup %4667  ;;  %v1622_v11 = vadd.f32 1e-05, %v1620_v26 }
 0x852   :  { %v1624_v41 = vmul.f32 %v4668_v28, %v1621_v60  ;;  %vm1630_vm15 = vweird.f32 %v4668_v28  ;;  %v1664_v60 = vperm.slane %v1661_v12, 1  ;;  %v4385_v12 = vld [vmem:[%s6416_s1 + $0x44] sm:$0xf0] }
 0x853   :  { %4669 = vrsqrt.f32 %v1622_v11  ;;  %vm1631_vm2 = vmor %vm1629_vm1, %vm1630_vm15  ;;  %vm1639_vm4 = vweird.f32 %v1622_v11 }
 0x854   :  { %v1625_v34 = vmul.f32 %v4668_v28, %v1624_v41 }
 0x856   :  { %v1626_v45 = vmul.f32 0.5, %v1625_v34 }
 0x858   :  { %v1627_v38 = vsub.f32 1.5, %v1626_v45 }
 0x859   :  { %v4670_v61 = vpop.eup %4669 }
 0x85a   :  { %v1628_v32 = vmul.f32 %v4668_v28, %v1627_v38  ;;  %v1634_v17 = vmul.f32 %v4670_v61, %v1622_v11  ;;  %vm1640_vm3 = vweird.f32 %v4670_v61  ;;  %v4587_v11 = vld [vmem:[%s6426_s11] ss:$0 sm:$0xff] }
 0x85b   :  { %vm1641_vm5 = vmor %vm1639_vm4, %vm1640_vm3 }
 0x85c   :  { %v1632_v46 = vsel %vm1631_vm2, %v4668_v28, %v1628_v32  ;;  %v1635_v47 = vmul.f32 %v4670_v61, %v1634_v17 }
 0x85d   :  { %v1643_v52 = vmul.f32 %v1632_v46, %v5504_v53 }
 0x85e   :  { %v1636_v9 = vmul.f32 0.5, %v1635_v47 }
 0x85f   :  { %v1646_v6 = vmul.f32 %v4585_v48, %v1643_v52 }
 0x860   :  { %v1637_v37 = vsub.f32 1.5, %v1636_v9 }
 0x861   :  { %v1649_v59 = vadd.f32 %v4586_v56, %v1646_v6  ;;  %v4390_v6 = vld [vmem:[%s6416_s1 + $0x74] sm:$0xf] }
 0x862   :  { %v1638_v57 = vmul.f32 %v4670_v61, %v1637_v37  ;;  %v4111_v37 = vld [vmem:[%s6416_s1 + $0x70] sm:$0xf] }
 0x863   :  { %v1651_v62 = vpack.c.bf16 %v1649_v59, %v1649_v59 }
 0x864   :  { %v1642_v50 = vsel %vm1641_vm5, %v4670_v61, %v1638_v57 }
 0x865   :  { %v1644_v55 = vmul.f32 %v1642_v50, %v5511_v15  ;;  %v1669_v40 = vunpack.c.l.b16 %v1651_v62  ;;  %v4370_v15 = vld [vmem:[%s6425_s10 + $0x10] sm:$0xff]  ;;  %v4113_v50 = vld [vmem:[%s6416_s1 + $0x78] sm:$0xf0]  ;;  %v4388_v62 = vld [vmem:[%s6416_s1 + $0x64] sm:$0xf] }
 0x866   :  { %1884 = vmatpush.bf16.msra.mxu3 %v4370_v15  ;;  %v4116_v59 = vor.u32 %v4390_v6, %v4113_v50  ;;  %v4386_v15 = vld [vmem:[%s6416_s1 + $0x54] sm:$0xf] }
 0x867   :  { %v1647_v20 = vmul.f32 %v4585_v48, %v1644_v55  ;;  %v4103_v55 = vld [vmem:[%s6416_s1 + $0x60] sm:$0xf] }
 0x868   :  { %2038 = vmatpush.bf16.msra.mxu2 %v4116_v59 }
 0x869   :  { %v1650_v53 = vadd.f32 %v4586_v56, %v1647_v20  ;;  %v4391_v56 = vld [vmem:[%s6416_s1 + $0x74] sm:$0xf0]  ;;  %v4389_v20 = vld [vmem:[%s6416_s1 + $0x64] sm:$0xf0] }
 0x86a   :  { %1885 = vmatpush.bf16.msra.mxu3 %v4369_v1  ;;  %v4112_v57 = vor.u32 %v4391_v56, %v4111_v37  ;;  %v4096_v1 = vor.u32 %v4387_v4, %v4095_v27 }
 0x86b   :  { %v1652_v33 = vpack.c.bf16 %v1650_v53, %v1650_v53  ;;  %v4104_v53 = vor.u32 %v4389_v20, %v4103_v55 }
 0x86c   :  { %2024 = vmatpush.bf16.msra.mxu1 %v4112_v57 }
 0x86d   :  { %v1670_v44 = vunpack.c.l.b16 %v1652_v33  ;;  %v4105_v33 = vld [vmem:[%s6416_s1 + $0x68] sm:$0xf0] }
 0x86e   :  { %1886 = vmatpush.bf16.msra.mxu3 %v4368_v5  ;;  %v4100_v5 = vor.u32 %v4386_v15, %v4097_v3 }
 0x86f   :  { %v1671_v8 = vpack.c.b16 %v1670_v44, %v1669_v40  ;;  %v4108_v44 = vor.u32 %v4388_v62, %v4105_v33 }
 0x870   :  { %2025 = vmatpush.bf16.msra.mxu1 %v4104_v53 }
 0x871   :  { %4011 = vmatmul.msk.bf16.vlgmr.msrb.gmra.mxu1 %vm6453_vm0, %v1671_v8  ;;  %4012 = vmatmul.msk.bf16.vlgmr.msra.gmra.mxu0 %vm6453_vm0, %v1671_v8 }
 0x872   :  { %2039 = vmatpush.bf16.msra.mxu2 %v4108_v44 }
 0x874   :  { %2026 = vmatpush.bf16.msra.mxu1 %v4096_v1 }
 0x876   :  { %2040 = vmatpush.bf16.msra.mxu2 %v4100_v5 }
 0x8ee   :  { %v1724_v13 = vpop.f32.mrf.mxu1  ;;  %v1738_v54 = vpop.f32.mrf.mxu0 }
 0x8ef   :  { %v1725_v16 = vadd.f32 %v1724_v13, %v1663_v0  ;;  %v1739_v19 = vadd.f32 %v1738_v54, %v1664_v60  ;;  %v4384_v13 = vld [vmem:[%s6416_s1 + $0x44] sm:$0xf]  ;;  %v4088_v54 = vor.u32 %v4385_v12, %v4087_v7 }
 0x8f1   :  { %v1743_v58 = vmax.f32 %v1725_v16, 0.0  ;;  %v1744_v14 = vmax.f32 %v1739_v19, 0.0  ;;  %2027 = vmatpush.bf16.msra.mxu1 %v4088_v54 }
 0x8f6   :  { %v1726_v21 = vpop.f32.mrf.mxu1  ;;  %v1740_v22 = vpop.f32.mrf.mxu0 }
 0x8f7   :  { %v1727_v39 = vadd.f32 %v1726_v21, %v1663_v0  ;;  %v1741_v23 = vadd.f32 %v1740_v22, %v1664_v60  ;;  %v4089_v0 = vld [vmem:[%s6416_s1 + $0x48] sm:$0xf0]  ;;  %s6483_s1 = smov 8  }
 0x8f8   :  { %v4092_v60 = vor.u32 %v4384_v13, %v4089_v0 }
 0x8f9   :  { %v1745_v31 = vmax.f32 %v1727_v39, 0.0  ;;  %v1746_v25 = vmax.f32 %v1741_v23, 0.0 }
 0x8fa   :  { %2041 = vmatpush.bf16.msra.mxu2 %v4092_v60 }
 0x8fb   :  { %v1747_v26 = vpack.c.bf16 %v1745_v31, %v1743_v58  ;;  %v1748_v28 = vpack.c.bf16 %v1746_v25, %v1744_v14 }
 0x8fd   :  { %1887 = vmatmul.bf16.vlgmr.msra.gmra.mxu3 %v1747_v26  ;;  %1901 = vmatmul.bf16.vlgmr.msrb.gmra.mxu0 %v1748_v28 }
 0x97a   :  { %v1902_v51 = vpop.f32.mrf.mxu0 }
 0x980   :  { %v1888_v30 = vpop.f32.mrf.mxu3 }
 0x981   :  { %v1889_v41 = vadd.f32 %v4587_v11, %v1888_v30 }
 0x982   :  { %v1904_v36 = vpop.f32.mrf.mxu0 }
 0x983   :  { %v1903_v2 = vadd.f32 %v1902_v51, %v1889_v41  ;;  %v4588_v51 = vld [vmem:[%s6419_s4 + $0x1] ss:$0 sm:$0xff]  ;;  %s6474_s4 = smov 64  }
 0x985   :  { %v5631_v49 = vadd.f32 %v1903_v2, %v5491_v42 }
 0x987   :  { %v1911_v34 = vsel %vm6453_vm0, %v5631_v49, 0.0 }
 0x988   :  { %v1890_v45 = vpop.f32.mrf.mxu3  ;;  %1912 = vadd.xlane.f32.xlu0 %v1911_v34  ;;  %v4589_v34 = vld [vmem:[%s6420_s5 + $0x1] ss:$0 sm:$0xff]  ;;  %s6475_s5 = smov 104  }
 0x989   :  { %v1891_v35 = vadd.f32 %v4587_v11, %v1890_v45 }
 0x98b   :  { %v1905_v38 = vadd.f32 %v1904_v36, %v1891_v35 }
 0x98d   :  { %v5636_v61 = vadd.f32 %v1905_v38, %v5498_v18 }
 0x98f   :  { %v1914_v32 = vsel %vm6453_vm0, %v5636_v61, 0.0 }
 0x990   :  { %1915 = vadd.xlane.f32.xlu2 %v1914_v32 }
 0x9fb   :  { %v1913_v17 = vpop.xlane.xlu0 %1912 }
 0x9fc   :  { %v1917_v63 = vmul.f32 %v1913_v17, %v4886_v10 }
 0x9fe   :  { %v5642_v42 = vsub.f32 %v5631_v49, %v1917_v63 }
 0xa00   :  { %v1921_v43 = vmul.f32 %v5642_v42, %v5642_v42 }
 0xa02   :  { %v1923_v46 = vsel %vm6453_vm0, %v1921_v43, 0.0 }
 0xa03   :  { %v1916_v47 = vpop.xlane.xlu2 %1915  ;;  %1924 = vadd.xlane.f32.xlu1 %v1923_v46 }
 0xa04   :  { %v1918_v18 = vmul.f32 %v1916_v47, %v4886_v10 }
 0xa06   :  { %v5649_v48 = vsub.f32 %v5636_v61, %v1918_v18 }
 0xa08   :  { %v1922_v52 = vmul.f32 %v5649_v48, %v5649_v48 }
 0xa0a   :  { %v1926_v9 = vsel %vm6453_vm0, %v1922_v52, 0.0 }
 0xa0b   :  { %1927 = vadd.xlane.f32.xlu0 %v1926_v9 }
 0xa76   :  { %v1925_v40 = vpop.xlane.xlu1 %1924 }
 0xa77   :  { %v1929_v8 = vmul.f32 %v1925_v40, %v4886_v10 }
 0xa79   :  { %v1931_v29 = vadd.f32 1e-05, %v1929_v8 }
 0xa7b   :  { %4671 = vrsqrt.f32 %v1931_v29  ;;  %vm1939_vm15 = vweird.f32 %v1931_v29 }
 0xa7e   :  { %v1928_v16 = vpop.xlane.xlu0 %1927 }
 0xa7f   :  { %v1930_v19 = vmul.f32 %v1928_v16, %v4886_v10 }
 0xa81   :  { %v4672_v21 = vpop.eup %4671  ;;  %v1932_v22 = vadd.f32 1e-05, %v1930_v19 }
 0xa82   :  { %v1934_v39 = vmul.f32 %v4672_v21, %v1931_v29  ;;  %vm1940_vm6 = vweird.f32 %v4672_v21 }
 0xa83   :  { %4673 = vrsqrt.f32 %v1932_v22  ;;  %vm1941_vm1 = vmor %vm1939_vm15, %vm1940_vm6  ;;  %vm1949_vm3 = vweird.f32 %v1932_v22 }
 0xa84   :  { %v1935_v23 = vmul.f32 %v4672_v21, %v1934_v39 }
 0xa86   :  { %v1936_v58 = vmul.f32 0.5, %v1935_v23 }
 0xa88   :  { %v1937_v14 = vsub.f32 1.5, %v1936_v58 }
 0xa89   :  { %v4674_v31 = vpop.eup %4673 }
 0xa8a   :  { %v1938_v25 = vmul.f32 %v4672_v21, %v1937_v14  ;;  %v1944_v26 = vmul.f32 %v4674_v31, %v1932_v22  ;;  %vm1950_vm2 = vweird.f32 %v4674_v31 }
 0xa8b   :  { %vm1951_vm4 = vmor %vm1949_vm3, %vm1950_vm2 }
 0xa8c   :  { %v1942_v28 = vsel %vm1941_vm1, %v4672_v21, %v1938_v25  ;;  %v1945_v11 = vmul.f32 %v4674_v31, %v1944_v26 }
 0xa8d   :  { %v1953_v30 = vmul.f32 %v1942_v28, %v5642_v42 }
 0xa8e   :  { %v1946_v41 = vmul.f32 0.5, %v1945_v11 }
 0xa8f   :  { %v1956_v45 = vmul.f32 %v4588_v51, %v1953_v30 }
 0xa90   :  { %v1947_v2 = vsub.f32 1.5, %v1946_v41 }
 0xa91   :  { %v1959_v38 = vadd.f32 %v4589_v34, %v1956_v45 }
 0xa92   :  { %v1948_v35 = vmul.f32 %v4674_v31, %v1947_v2 }
 0xa93   :  { %v1961_v63 = vpack.c.bf16 %v1959_v38, %v1959_v38 }
 0xa94   :  { %v1952_v36 = vsel %vm1951_vm4, %v4674_v31, %v1948_v35 }
 0xa95   :  { %v1954_v32 = vmul.f32 %v1952_v36, %v5649_v48  ;;  %v1974_v42 = vunpack.c.l.b16 %v1961_v63 }
 0xa97   :  { %v1957_v17 = vmul.f32 %v4588_v51, %v1954_v32 }
 0xa99   :  { %v1960_v43 = vadd.f32 %v4589_v34, %v1957_v17 }
 0xa9b   :  { %v1962_v46 = vpack.c.bf16 %v1960_v43, %v1960_v43 }
 0xa9d   :  { %v1975_v47 = vunpack.c.l.b16 %v1962_v46 }
 0xa9f   :  { %v1976_v18 = vpack.c.b16 %v1975_v47, %v1974_v42 }
 0xaa1   :  { %4117 = vmatmul.msk.bf16.vlgmr.msra.gmra.mxu1 %vm6453_vm0, %v1976_v18  ;;  %4118 = vmatmul.msk.bf16.vlgmr.msra.gmra.mxu2 %vm6453_vm0, %v1976_v18 }
 0xb1e   :  { %v5714_v52 = vpop.f32.mrf.mxu1 }
 0xb1f   :  { %2200 = vrot.lane.b32.xlu0 %v5714_v52, %s4777_s20  ;;  %2049 = vrot.lane.b32.xlu2 %v5714_v52, %s6474_s4 }
 0xb24   :  { %v5720_v48 = vpop.f32.mrf.mxu2 }
 0xb25   :  { %2170 = vmatpush.msrb.mxu3 %v5720_v48 }
 0xb26   :  { %v5723_v9 = vpop.f32.mrf.mxu1 }
 0xb27   :  { %2226 = vrot.lane.b32.xlu0 %v5723_v9, %s4778_s21  ;;  %2228 = vrot.lane.b32.xlu2 %v5723_v9, %s4777_s20 }
 0xb2c   :  { %v5751_v56 = vpop.f32.mrf.mxu2 }
 0xb2f   :  { %2358 = vrot.lane.b32.xlu0 %v5714_v52, %s4779_s22  ;;  %2198 = vrot.lane.b32.xlu2 %v5714_v52, %s4778_s21 }
 0xb37   :  { %2546 = vrot.lane.b32.xlu0 %v5723_v9, %s4780_s24  ;;  %2388 = vrot.lane.b32.xlu2 %v5723_v9, %s4781_s25 }
 0xb3f   :  { %2518 = vrot.lane.b32.xlu2 %v5714_v52, %s4780_s24 }
 0xb47   :  { %2544 = vrot.lane.b32.xlu2 %v5723_v9, %s6475_s5 }
 0xb4f   :  { %2674 = vrot.lane.b32.xlu2 %v5714_v52, %s6476_s29 }
 0xb57   :  { %2862 = vrot.lane.b32.xlu2 %v5723_v9, %s6477_s30 }
 0xb5f   :  { %2992 = vrot.lane.b32.xlu2 %v5714_v52, %s6478_s0 }
 0xb67   :  { %3018 = vrot.lane.b32.xlu2 %v5723_v9, %s6479_s23 }
 0xb6f   :  { %3148 = vrot.lane.b32.xlu2 %v5714_v52, %s6480_s17 }
 0xb79   :  { %v2050_v37 = vpop.permute.xlu2 %2049 }
 0xb7a   :  { %4119 = vmatpush.xpose.msk.msrb.mxu1 %vm211_vm8, %v2050_v37 }
 0xb7d   :  { %4120 = vmatmul.msk.f32.vlgmr.msrb.gmra.mxu1 %vm211_vm8, %v5714_v52 }
 0xb7e   :  { %2193 = vmatpush.msra.mxu1 %v5751_v56 }
 0xb81   :  { %v2229_v6 = vpop.permute.xlu2 %2228 }
 0xb82   :  { %4127 = vmatpush.xpose.msk.msra.mxu3 %vm211_vm8, %v2229_v6 }
 0xb89   :  { %v2199_v40 = vpop.permute.xlu2 %2198 }
 0xb91   :  { %v2201_v44 = vpop.permute.xlu0 %2200  ;;  %v2389_v27 = vpop.permute.xlu2 %2388 }
 0xb99   :  { %v2227_v15 = vpop.permute.xlu0 %2226  ;;  %v2519_v29 = vpop.permute.xlu2 %2518 }
 0xba1   :  { %v2359_v3 = vpop.permute.xlu0 %2358  ;;  %v2545_v12 = vpop.permute.xlu2 %2544 }
 0xba9   :  { %v2547_v7 = vpop.permute.xlu0 %2546  ;;  %v2675_v54 = vpop.permute.xlu2 %2674 }
 0xbb1   :  { %v2863_v23 = vpop.permute.xlu2 %2862 }
 0xbb9   :  { %v2993_v51 = vpop.permute.xlu2 %2992 }
 0xbc1   :  { %v3019_v43 = vpop.permute.xlu2 %3018 }
 0xbfa   :  { %v2072_v57 = vpop.f32.mrf.mxu1 }
 0xbfb   :  { %v2102_v50 = vsel %vm4980_vm9, %v2072_v57, -1e+30 }
 0xbfc   :  { %v2104_v59 = vsel %vm211_vm8, %v2102_v50, -inf }
 0xbfd   :  { %2105 = vmax.xlane.f32.xlu1 %v2104_v59 }
 0xc16   :  { %2076 = vrot.lane.b32.xlu1 %v5723_v9, %s6474_s4 }
 0xc1e   :  { %2360 = vrot.lane.b32.xlu1 %v5714_v52, %s4781_s25 }
 0xc26   :  { %2386 = vrot.lane.b32.xlu1 %v5723_v9, %s4779_s22 }
 0xc2e   :  { %2516 = vrot.lane.b32.xlu1 %v5714_v52, %s6475_s5 }
 0xc36   :  { %2704 = vrot.lane.b32.xlu1 %v5723_v9, %s6481_s18 }
 0xc3e   :  { %2834 = vrot.lane.b32.xlu1 %v5714_v52, %s6477_s30 }
 0xc46   :  { %2860 = vrot.lane.b32.xlu1 %v5723_v9, %s6482_s19 }
 0xc4e   :  { %2990 = vrot.lane.b32.xlu1 %v5714_v52, %s6479_s23 }
 0xc56   :  { %3178 = vrot.lane.b32.xlu1 %v5723_v9, %s6483_s1 }
 0xc70   :  { %v2106_v55 = vpop.xlane.xlu1 %2105 }
 0xc71   :  { %v2110_v20 = vsub.f32 %v2102_v50, %v2106_v55 }
 0xc73   :  { %v2112_v62 = vmul.f32 1.442695, %v2110_v20 }
 0xc75   :  { %4675 = vpow2.f32 %v2112_v62 }
 0xc7b   :  { %v4676_v53 = vpop.eup %4675 }
 0xc7c   :  { %v2116_v33 = vsel %vm211_vm8, %v4676_v53, 0.0 }
 0xc7d   :  { %2117 = vadd.xlane.f32.xlu0 %v2116_v33 }
 0xc88   :  { %v2077_v8 = vpop.permute.xlu1 %2076 }
 0xc89   :  { %4121 = vmatpush.xpose.msk.msrb.mxu2 %vm211_vm8, %v2077_v8 }
 0xc8c   :  { %4122 = vmatmul.msk.f32.vlgmr.msrb.gmra.mxu2 %vm211_vm8, %v5723_v9 }
 0xc8d   :  { %4125 = vmatpush.xpose.msk.msra.mxu2 %vm211_vm8, %v2201_v44 }
 0xc90   :  { %v2361_v4 = vpop.permute.xlu1 %2360 }
 0xc91   :  { %2676 = vrot.lane.b32.xlu0 %v5714_v52, %s6481_s18  ;;  %4131 = vmatpush.xpose.msk.msrb.mxu2 %vm211_vm8, %v2361_v4 }
 0xc94   :  { %4126 = vmatmul.msk.f32.vlgmr.msra.gmra.mxu2 %vm211_vm8, %v2199_v40 }
 0xc95   :  { %4137 = vmatpush.xpose.msk.msra.mxu2 %vm211_vm8, %v2519_v29 }
 0xc98   :  { %v2387_v1 = vpop.permute.xlu1 %2386 }
 0xc99   :  { %2702 = vrot.lane.b32.xlu0 %v5723_v9, %s6476_s29 }
 0xc9c   :  { %4132 = vmatmul.msk.f32.vlgmr.msrb.gmra.mxu2 %vm211_vm8, %v2359_v3 }
 0xca0   :  { %v2517_v5 = vpop.permute.xlu1 %2516 }
 0xca1   :  { %2832 = vrot.lane.b32.xlu0 %v5714_v52, %s6482_s19 }
 0xca4   :  { %4138 = vmatmul.msk.f32.vlgmr.msra.gmra.mxu2 %vm211_vm8, %v2517_v5 }
 0xca8   :  { %v2705_v16 = vpop.permute.xlu1 %2704 }
 0xca9   :  { %3020 = vrot.lane.b32.xlu0 %v5723_v9, %s6478_s0 }
 0xcb0   :  { %v2835_v11 = vpop.permute.xlu1 %2834 }
 0xcb1   :  { %3150 = vrot.lane.b32.xlu0 %v5714_v52, %s6483_s1  ;;  %v3149_v52 = vpop.permute.xlu2 %3148 }
 0xcb8   :  { %v2861_v34 = vpop.permute.xlu1 %2860 }
 0xcb9   :  { %3176 = vrot.lane.b32.xlu0 %v5723_v9, %s6480_s17 }
 0xcc0   :  { %v2991_v17 = vpop.permute.xlu1 %2990 }
 0xcc8   :  { %v3179_v57 = vpop.permute.xlu1 %3178 }
 0xcf0   :  { %v2118_v13 = vpop.xlane.xlu0 %2117 }
 0xcf1   :  { %4677 = vrcp.f32 %v2118_v13  ;;  %v2133_v21 = vand.u32 2147483648, %v2118_v13  ;;  %v2131_v39 = vand.u32 2147483647, %v2118_v13  ;;  %vm2127_vm6 = vweird.f32 %v2118_v13 }
 0xcf3   :  { %v2134_v14 = vor.u32 1.1754944e-38, %v2133_v21  ;;  %vm2132_vm1 = vcmp.eq.f32.partialorder %v2131_v39, 8.507059e+37 }
 0xcf7   :  { %v4678_v0 = vpop.eup %4677 }
 0xcf8   :  { %v2123_v60 = vmul.f32 %v4678_v0, %v2118_v13  ;;  %vm2128_vm5 = vweird.f32 %v4678_v0 }
 0xcf9   :  { %vm2129_vm15 = vmor %vm2127_vm6, %vm2128_vm5 }
 0xcfa   :  { %v2124_v19 = vsub.f32 1.0, %v2123_v60  ;;  %v5869_v60 = vpack.i.bf16 %v5751_v56, %v5720_v48 }
 0xcfc   :  { %v2125_v22 = vmul.f32 %v4678_v0, %v2124_v19 }
 0xcfe   :  { %v2126_v58 = vadd.f32 %v4678_v0, %v2125_v22 }
 0xd00   :  { %v2130_v31 = vsel %vm2129_vm15, %v4678_v0, %v2126_v58 }
 0xd01   :  { %v2135_v25 = vsel %vm2132_vm1, %v2134_v14, %v2130_v31 }
 0xd02   :  { %v2150_v26 = vmul.f32 %v4676_v53, %v2135_v25 }
 0xd03   :  { %v2677_v28 = vpop.permute.xlu0 %2676 }
 0xd04   :  { %4123 = vmatmul.msk.f32.vlgmr.msrb.gmra.mxu3 %vm211_vm8, %v2150_v26  ;;  %4143 = vmatpush.xpose.msk.msrb.mxu2 %vm211_vm8, %v2677_v28 }
 0xd05   :  { %4133 = vmatpush.xpose.msk.msrb.mxu3 %vm211_vm8, %v2389_v27 }
 0xd07   :  { %4144 = vmatmul.msk.f32.vlgmr.msrb.gmra.mxu2 %vm211_vm8, %v2675_v54 }
 0xd08   :  { %4149 = vmatpush.xpose.msk.msra.mxu2 %vm211_vm8, %v2835_v11 }
 0xd0b   :  { %v2703_v30 = vpop.permute.xlu0 %2702 }
 0xd0c   :  { %4155 = vmatpush.xpose.msk.msrb.mxu2 %vm211_vm8, %v2993_v51  ;;  %4128 = vmatmul.msk.f32.vlgmr.msra.gmra.mxu3 %vm211_vm8, %v2227_v15 }
 0xd0d   :  { %4139 = vmatpush.xpose.msk.msra.mxu3 %vm211_vm8, %v2547_v7 }
 0xd0f   :  { %v2099_v41 = vpop.f32.mrf.mxu2 }
 0xd10   :  { %v5811_v2 = vsel %vm4980_vm9, %v2099_v41, -1e+30 }
 0xd11   :  { %v2107_v45 = vsel %vm211_vm8, %v5811_v2, -inf }
 0xd12   :  { %2108 = vmax.xlane.f32.xlu1 %v2107_v45 }
 0xd13   :  { %v2833_v35 = vpop.permute.xlu0 %2832 }
 0xd14   :  { %4134 = vmatmul.msk.f32.vlgmr.msrb.gmra.mxu3 %vm211_vm8, %v2387_v1  ;;  %4150 = vmatmul.msk.f32.vlgmr.msra.gmra.mxu2 %vm211_vm8, %v2833_v35 }
 0xd15   :  { %4145 = vmatpush.xpose.msk.msrb.mxu3 %vm211_vm8, %v2705_v16 }
 0xd17   :  { %v2223_v36 = vpop.f32.mrf.mxu2 }
 0xd18   :  { %v5820_v38 = vsel %vm4980_vm9, %v2223_v36, -1e+30 }
 0xd19   :  { %v2256_v32 = vsel %vm211_vm8, %v5820_v38, -inf }
 0xd1a   :  { %2257 = vmax.xlane.f32.xlu2 %v2256_v32 }
 0xd1b   :  { %v3021_v63 = vpop.permute.xlu0 %3020 }
 0xd1c   :  { %4140 = vmatmul.msk.f32.vlgmr.msra.gmra.mxu3 %vm211_vm8, %v2545_v12  ;;  %4156 = vmatmul.msk.f32.vlgmr.msrb.gmra.mxu2 %vm211_vm8, %v2991_v17 }
 0xd1d   :  { %4151 = vmatpush.xpose.msk.msra.mxu3 %vm211_vm8, %v2863_v23 }
 0xd1f   :  { %v2383_v46 = vpop.f32.mrf.mxu2 }
 0xd20   :  { %v2414_v42 = vsel %vm4980_vm9, %v2383_v46, -1e+30 }
 0xd21   :  { %v2416_v47 = vsel %vm211_vm8, %v2414_v42, -inf }
 0xd22   :  { %2417 = vmax.xlane.f32.xlu1 %v2416_v47 }
 0xd23   :  { %v3151_v18 = vpop.permute.xlu0 %3150 }
 0xd24   :  { %4146 = vmatmul.msk.f32.vlgmr.msrb.gmra.mxu3 %vm211_vm8, %v2703_v30  ;;  %4161 = vmatpush.xpose.msk.msra.mxu2 %vm211_vm8, %v3151_v18 }
 0xd25   :  { %4157 = vmatpush.xpose.msk.msrb.mxu3 %vm211_vm8, %v3021_v63 }
 0xd27   :  { %v2541_v9 = vpop.f32.mrf.mxu2  ;;  %4162 = vmatmul.msk.f32.vlgmr.msra.gmra.mxu2 %vm211_vm8, %v3149_v52 }
 0xd28   :  { %v2572_v37 = vsel %vm4980_vm9, %v2541_v9, -1e+30 }
 0xd29   :  { %v2574_v6 = vsel %vm211_vm8, %v2572_v37, -inf }
 0xd2a   :  { %2575 = vmax.xlane.f32.xlu0 %v2574_v6 }
 0xd2b   :  { %v3177_v50 = vpop.permute.xlu0 %3176 }
 0xd2c   :  { %4152 = vmatmul.msk.f32.vlgmr.msra.gmra.mxu3 %vm211_vm8, %v2861_v34 }
 0xd2d   :  { %4163 = vmatpush.xpose.msk.msra.mxu3 %vm211_vm8, %v3179_v57 }
 0xd34   :  { %4158 = vmatmul.msk.f32.vlgmr.msrb.gmra.mxu3 %vm211_vm8, %v3019_v43 }
 0xd3c   :  { %4164 = vmatmul.msk.f32.vlgmr.msra.gmra.mxu3 %vm211_vm8, %v3177_v50 }
 0xd85   :  { %v2109_v53 = vpop.xlane.xlu1 %2108 }
 0xd86   :  { %v2111_v28 = vsub.f32 %v5811_v2, %v2109_v53 }
 0xd87   :  { %v5841_v59 = vpop.f32.mrf.mxu3 }
 0xd88   :  { %v2114_v51 = vmul.f32 1.442695, %v2111_v28 }
 0xd8a   :  { %v2699_v55 = vpop.f32.mrf.mxu2 }
 0xd8b   :  { %v5845_v20 = vsel %vm4980_vm9, %v2699_v55, -1e+30 }
 0xd8c   :  { %v2732_v62 = vsel %vm211_vm8, %v5845_v20, -inf }
 0xd8d   :  { %2733 = vmax.xlane.f32.xlu2 %v2732_v62  ;;  %v2258_v41 = vpop.xlane.xlu2 %2257 }
 0xd8e   :  { %v2262_v45 = vsub.f32 %v5820_v38, %v2258_v41 }
 0xd8f   :  { %v5849_v33 = vpop.f32.mrf.mxu3 }
 0xd90   :  { %v2264_v35 = vmul.f32 1.442695, %v2262_v45 }
 0xd95   :  { %v2418_v40 = vpop.xlane.xlu1 %2417 }
 0xd96   :  { %v2422_v44 = vsub.f32 %v2414_v42, %v2418_v40 }
 0xd97   :  { %v2411_v8 = vpop.f32.mrf.mxu3  ;;  %v2857_v27 = vpop.f32.mrf.mxu2 }
 0xd98   :  { %v2424_v4 = vmul.f32 1.442695, %v2422_v44  ;;  %v5853_v15 = vsel %vm4980_vm9, %v2857_v27, -1e+30  ;;  %v5913_v63 = vsel %vm4980_vm9, %v2411_v8, -1e+30 }
 0xd99   :  { %v2890_v29 = vsel %vm211_vm8, %v5853_v15, -inf  ;;  %v2419_v38 = vsel %vm211_vm8, %v5913_v63, -inf }
 0xd9a   :  { %4679 = vpow2.f32 %v2424_v4  ;;  %2891 = vmax.xlane.f32.xlu1 %v2890_v29 }
 0xd9d   :  { %v2576_v7 = vpop.xlane.xlu0 %2575 }
 0xd9e   :  { %v2580_v0 = vsub.f32 %v2572_v37, %v2576_v7 }
 0xd9f   :  { %v2569_v1 = vpop.f32.mrf.mxu3  ;;  %v3015_v3 = vpop.f32.mrf.mxu2 }
 0xda0   :  { %v5857_v5 = vpop.eup %4679  ;;  %v5861_v12 = vsel %vm4980_vm9, %v3015_v3, -1e+30  ;;  %v5875_v16 = vsel %vm4980_vm9, %v2569_v1, -1e+30  ;;  %v2582_v19 = vmul.f32 1.442695, %v2580_v0 }
 0xda1   :  { %v3048_v13 = vsel %vm211_vm8, %v5861_v12, -inf  ;;  %v2428_v54 = vsel %vm211_vm8, %v5857_v5, 0.0  ;;  %v2577_v22 = vsel %vm211_vm8, %v5875_v16, -inf }
 0xda2   :  { %3049 = vmax.xlane.f32.xlu0 %v3048_v13  ;;  %2429 = vadd.xlane.f32.xlu1 %v2428_v54  ;;  %4681 = vpow2.f32 %v2582_v19 }
 0xda3   :  { %4683 = vpow2.f32 %v2114_v51 }
 0xda4   :  { %4685 = vpow2.f32 %v2264_v35 }
 0xda5   :  { %4513 = vrot.lane.b32.xlu2 %v5869_v60, %s4778_s21 }
 0xda7   :  { %v2727_v21 = vpop.f32.mrf.mxu3 }
 0xda8   :  { %v5885_v58 = vpop.eup %4681  ;;  %v5946_v27 = vsel %vm4980_vm9, %v2727_v21, -1e+30 }
 0xda9   :  { %v2586_v14 = vsel %vm211_vm8, %v5885_v58, 0.0  ;;  %v5903_v36 = vpop.eup %4683 }
 0xdaa   :  { %v3173_v39 = vpop.f32.mrf.mxu2  ;;  %2578 = vmax.xlane.f32.xlu1 %v2577_v22  ;;  %v2119_v2 = vsel %vm211_vm8, %v5903_v36, 0.0  ;;  %v5907_v32 = vpop.eup %4685 }
 0xdab   :  { %v5881_v23 = vsel %vm4980_vm9, %v3173_v39, -1e+30  ;;  %v2268_v17 = vsel %vm211_vm8, %v5907_v32, 0.0 }
 0xdac   :  { %v3206_v48 = vsel %vm211_vm8, %v5881_v23, -inf }
 0xdad   :  { %3207 = vmax.xlane.f32.xlu0 %v3206_v48 }
 0xdaf   :  { %v2885_v56 = vpop.f32.mrf.mxu3 }
 0xdb0   :  { %v5919_v43 = vsel %vm4980_vm9, %v2885_v56, -1e+30 }
 0xdb1   :  { %v2893_v46 = vsel %vm211_vm8, %v5919_v43, -inf }
 0xdb5   :  { %2587 = vadd.xlane.f32.xlu0 %v2586_v14 }
 0xdb7   :  { %v3043_v31 = vpop.f32.mrf.mxu3 }
 0xdb8   :  { %v5891_v25 = vsel %vm4980_vm9, %v3043_v31, -1e+30 }
 0xdb9   :  { %v3051_v26 = vsel %vm211_vm8, %v5891_v25, -inf }
 0xdba   :  { %3052 = vmax.xlane.f32.xlu1 %v3051_v26 }
 0xdbf   :  { %v3201_v11 = vpop.f32.mrf.mxu3 }
 0xdc0   :  { %v5898_v30 = vsel %vm4980_vm9, %v3201_v11, -1e+30 }
 0xdc1   :  { %v3209_v34 = vsel %vm211_vm8, %v5898_v30, -inf }
 0xdc2   :  { %3210 = vmax.xlane.f32.xlu1 %v3209_v34 }
 0xdce   :  { %2120 = vadd.xlane.f32.xlu2 %v2119_v2 }
 0xdd6   :  { %2269 = vadd.xlane.f32.xlu2 %v2268_v17 }
 0xdde   :  { %2420 = vmax.xlane.f32.xlu2 %v2419_v38 }
 0xde6   :  { %2894 = vmax.xlane.f32.xlu2 %v2893_v46 }
 0xdfe   :  { %4523 = vrot.lane.b32.xlu2 %v5869_v60, %s6475_s5 }
 0xe00   :  { %v2734_v42 = vpop.xlane.xlu2 %2733 }
 0xe01   :  { %v2738_v47 = vsub.f32 %v5845_v20, %v2734_v42  ;;  %v5934_v20 = vsel %vm4980_vm9, %v5849_v33, -1e+30  ;;  %v2735_v33 = vsel %vm211_vm8, %v5946_v27, -inf }
 0xe02   :  { %v2259_v53 = vsel %vm211_vm8, %v5934_v20, -inf }
 0xe03   :  { %v2740_v18 = vmul.f32 1.442695, %v2738_v47 }
 0xe05   :  { %4687 = vpow2.f32 %v2740_v18 }
 0xe08   :  { %v4514_v52 = vpop.permute.xlu2 %4513 }
 0xe09   :  { %v4516_v9 = vunpack.i.h.bf16 %v4514_v52  ;;  %v4515_v37 = vunpack.i.l.bf16 %v4514_v52 }
 0xe0b   :  { %v5926_v6 = vpop.eup %4687  ;;  %2326 = vmatpush.msra.mxu0 %v4515_v37  ;;  %2353 = vmatpush.msrb.mxu1 %v4516_v9 }
 0xe0c   :  { %v2744_v57 = vsel %vm211_vm8, %v5926_v6, 0.0 }
 0xe0d   :  { %2745 = vadd.xlane.f32.xlu0 %v2744_v57  ;;  %v2892_v50 = vpop.xlane.xlu1 %2891 }
 0xe0e   :  { %v2896_v55 = vsub.f32 %v5853_v15, %v2892_v50 }
 0xe10   :  { %v2898_v62 = vmul.f32 1.442695, %v2896_v55 }
 0xe12   :  { %4689 = vpow2.f32 %v2898_v62 }
 0xe15   :  { %2260 = vmax.xlane.f32.xlu0 %v2259_v53  ;;  %v5938_v40 = vpop.xlane.xlu1 %2429  ;;  %v5942_v8 = vpop.xlane.xlu0 %3049 }
 0xe18   :  { %v5940_v44 = vpop.eup %4689 }
 0xe19   :  { %v2902_v4 = vsel %vm211_vm8, %v5940_v44, 0.0 }
 0xe1a   :  { %2903 = vadd.xlane.f32.xlu1 %v2902_v4 }
 0xe1d   :  { %2736 = vmax.xlane.f32.xlu0 %v2735_v33  ;;  %v2579_v15 = vpop.xlane.xlu1 %2578 }
 0xe1e   :  { %v2581_v3 = vsub.f32 %v5875_v16, %v2579_v15 }
 0xe20   :  { %v3208_v29 = vpop.xlane.xlu0 %3207  ;;  %v2584_v13 = vmul.f32 1.442695, %v2581_v3 }
 0xe21   :  { %v3212_v1 = vsub.f32 %v5881_v23, %v3208_v29 }
 0xe23   :  { %v3214_v7 = vmul.f32 1.442695, %v3212_v1 }
 0xe25   :  { %4691 = vpow2.f32 %v3214_v7 }
 0xe26   :  { %4693 = vpow2.f32 %v2584_v13 }
 0xe28   :  { %v5973_v57 = vpop.xlane.xlu0 %2587 }
 0xe2b   :  { %v5954_v24 = vpop.eup %4691 }
 0xe2c   :  { %v3218_v54 = vsel %vm211_vm8, %v5954_v24, 0.0  ;;  %v5958_v0 = vpop.eup %4693 }
 0xe2d   :  { %3219 = vadd.xlane.f32.xlu1 %v3218_v54  ;;  %v2589_v19 = vsel %vm211_vm8, %v5958_v0, 0.0  ;;  %v3053_v50 = vpop.xlane.xlu1 %3052 }
 0xe35   :  { %2590 = vadd.xlane.f32.xlu1 %v2589_v19  ;;  %v3211_v53 = vpop.xlane.xlu1 %3210 }
 0xe36   :  { %v3213_v33 = vsub.f32 %v5898_v30, %v3211_v53 }
 0xe38   :  { %v3216_v15 = vmul.f32 1.442695, %v3213_v33 }
 0xe41   :  { %v2121_v21 = vpop.xlane.xlu2 %2120 }
 0xe42   :  { %4695 = vrcp.f32 %v2121_v21  ;;  %v2147_v48 = vand.u32 2147483648, %v2121_v21  ;;  %v2145_v14 = vand.u32 2147483647, %v2121_v21  ;;  %vm2141_vm2 = vweird.f32 %v2121_v21 }
 0xe44   :  { %v2148_v28 = vor.u32 1.1754944e-38, %v2147_v48  ;;  %vm2146_vm4 = vcmp.eq.f32.partialorder %v2145_v14, 8.507059e+37 }
 0xe48   :  { %v4696_v22 = vpop.eup %4695 }
 0xe49   :  { %v2137_v16 = vmul.f32 %v4696_v22, %v2121_v21  ;;  %v2270_v39 = vpop.xlane.xlu2 %2269  ;;  %vm2142_vm9 = vweird.f32 %v4696_v22 }
 0xe4a   :  { %4697 = vrcp.f32 %v2270_v39  ;;  %vm2143_vm3 = vmor %vm2141_vm2, %vm2142_vm9  ;;  %v2285_v17 = vand.u32 2147483648, %v2270_v39  ;;  %v2283_v42 = vand.u32 2147483647, %v2270_v39  ;;  %vm2279_vm6 = vweird.f32 %v2270_v39 }
 0xe4b   :  { %v2138_v23 = vsub.f32 1.0, %v2137_v16  ;;  %vm2439_vm2 = vweird.f32 %v5938_v40 }
 0xe4c   :  { %v2286_v18 = vor.u32 1.1754944e-38, %v2285_v17  ;;  %vm2284_vm1 = vcmp.eq.f32.partialorder %v2283_v42, 8.507059e+37 }
 0xe4d   :  { %v2139_v56 = vmul.f32 %v4696_v22, %v2138_v23 }
 0xe4f   :  { %v2140_v31 = vadd.f32 %v4696_v22, %v2139_v56  ;;  %v3054_v56 = vsub.f32 %v5861_v12, %v5942_v8 }
 0xe50   :  { %v4698_v26 = vpop.eup %4697 }
 0xe51   :  { %v2144_v11 = vsel %vm2143_vm3, %v4696_v22, %v2140_v31  ;;  %v2275_v51 = vmul.f32 %v4698_v26, %v2270_v39  ;;  %v2421_v41 = vpop.xlane.xlu2 %2420  ;;  %vm2280_vm5 = vweird.f32 %v4698_v26  ;;  %v3055_v22 = vsub.f32 %v5891_v25, %v3053_v50 }
 0xe52   :  { %v2149_v34 = vsel %vm2146_vm4, %v2148_v28, %v2144_v11  ;;  %v2423_v45 = vsub.f32 %v5913_v63, %v2421_v41  ;;  %vm2281_vm15 = vmor %vm2279_vm6, %vm2280_vm5  ;;  %v3056_v14 = vmul.f32 1.442695, %v3054_v56 }
 0xe53   :  { %v2276_v35 = vsub.f32 1.0, %v2275_v51  ;;  %v2151_v2 = vmul.f32 %v5903_v36, %v2149_v34  ;;  %v3058_v16 = vmul.f32 1.442695, %v3055_v22 }
 0xe54   :  { %v2426_v38 = vmul.f32 1.442695, %v2423_v45 }
 0xe55   :  { %v2277_v46 = vmul.f32 %v4698_v26, %v2276_v35  ;;  %4124 = vmatmul.msk.f32.vlgmr.msra.gmra.mxu1 %vm211_vm8, %v2151_v2 }
 0xe56   :  { %4699 = vpow2.f32 %v2426_v38 }
 0xe57   :  { %v2278_v47 = vadd.f32 %v4698_v26, %v2277_v46 }
 0xe59   :  { %v2282_v52 = vsel %vm2281_vm15, %v4698_v26, %v2278_v47  ;;  %v2895_v29 = vpop.xlane.xlu2 %2894  ;;  %vm2597_vm15 = vweird.f32 %v5973_v57 }
 0xe5a   :  { %v2287_v9 = vsel %vm2284_vm1, %v2286_v18, %v2282_v52  ;;  %v2897_v13 = vsub.f32 %v5919_v43, %v2895_v29 }
 0xe5b   :  { %v2302_v63 = vmul.f32 %v5907_v32, %v2287_v9  ;;  %v2445_v9 = vand.u32 2147483648, %v5938_v40 }
 0xe5c   :  { %v5966_v37 = vpop.eup %4699 }
 0xe5d   :  { %4129 = vmatmul.msk.f32.vlgmr.msra.gmra.mxu0 %vm211_vm8, %v2302_v63  ;;  %v2431_v36 = vsel %vm211_vm8, %v5966_v37, 0.0 }
 0xe5e   :  { %2432 = vadd.xlane.f32.xlu2 %v2431_v36 }
 0xe61   :  { %v6018_v12 = vpop.permute.xlu2 %4523 }
 0xe76   :  { %4528 = vrot.lane.b32.xlu2 %v5869_v60, %s6476_s29  ;;  %s4792_s29 = smov 128  }
 0xe80   :  { %v5975_v55 = vpop.xlane.xlu0 %2745 }
 0xe88   :  { %v2261_v62 = vpop.xlane.xlu0 %2260 }
 0xe89   :  { %v2263_v32 = vsub.f32 %v5934_v20, %v2261_v62  ;;  %v2900_v20 = vmul.f32 1.442695, %v2897_v13  ;;  %v2443_v62 = vand.u32 2147483647, %v5938_v40 }
 0xe8b   :  { %v2266_v4 = vmul.f32 1.442695, %v2263_v32  ;;  %vm2444_vm5 = vcmp.eq.f32.partialorder %v2443_v62, 8.507059e+37 }
 0xe8d   :  { %4701 = vpow2.f32 %v2266_v4  ;;  %v6016_v28 = vpop.xlane.xlu1 %2903 }
 0xe8e   :  { %4703 = vpow2.f32 %v3216_v15 }
 0xe90   :  { %v2737_v1 = vpop.xlane.xlu0 %2736 }
 0xe91   :  { %v2739_v3 = vsub.f32 %v5946_v27, %v2737_v1 }
 0xe93   :  { %v5980_v7 = vpop.eup %4701  ;;  %v2742_v54 = vmul.f32 1.442695, %v2739_v3  ;;  %v2446_v3 = vor.u32 1.1754944e-38, %v2445_v9 }
 0xe94   :  { %v2271_v19 = vsel %vm211_vm8, %v5980_v7, 0.0  ;;  %v5985_v21 = vpop.eup %4703 }
 0xe95   :  { %4705 = vpow2.f32 %v2742_v54  ;;  %2272 = vadd.xlane.f32.xlu0 %v2271_v19  ;;  %v3221_v43 = vsel %vm211_vm8, %v5985_v21, 0.0 }
 0xe96   :  { %4707 = vpow2.f32 %v2900_v20 }
 0xe97   :  { %4709 = vpow2.f32 %v3058_v16 }
 0xe98   :  { %4711 = vpow2.f32 %v3056_v14 }
 0xe99   :  { %4713 = vrcp.f32 %v5938_v40 }
 0xe9b   :  { %v5987_v30 = vpop.eup %4705 }
 0xe9c   :  { %v2747_v27 = vsel %vm211_vm8, %v5987_v30, 0.0  ;;  %v5994_v39 = vpop.eup %4707 }
 0xe9d   :  { %2748 = vadd.xlane.f32.xlu1 %v2747_v27  ;;  %v2905_v23 = vsel %vm211_vm8, %v5994_v39, 0.0  ;;  %v5998_v48 = vpop.eup %4709  ;;  %v2601_v27 = vand.u32 2147483647, %v5973_v57 }
 0xe9e   :  { %v3063_v25 = vsel %vm211_vm8, %v5998_v48, 0.0  ;;  %v6010_v31 = vpop.eup %4711 }
 0xe9f   :  { %3222 = vadd.xlane.f32.xlu2 %v3221_v43  ;;  %v3060_v26 = vsel %vm211_vm8, %v6010_v31, 0.0  ;;  %v4714_v11 = vpop.eup %4713 }
 0xea0   :  { %v6021_v8 = vpop.xlane.xlu1 %3219  ;;  %v2435_v41 = vmul.f32 %v4714_v11, %v5938_v40  ;;  %vm2440_vm9 = vweird.f32 %v4714_v11 }
 0xea1   :  { %vm6046_vm3 = vmor %vm2439_vm2, %vm2440_vm9 }
 0xea2   :  { %v2436_v34 = vsub.f32 1.0, %v2435_v41  ;;  %v2603_v41 = vand.u32 2147483648, %v5973_v57 }
 0xea4   :  { %v2437_v17 = vmul.f32 %v4714_v11, %v2436_v34 }
 0xea5   :  { %2906 = vadd.xlane.f32.xlu1 %v2905_v23 }
 0xea6   :  { %v2438_v47 = vadd.f32 %v4714_v11, %v2437_v17 }
 0xea8   :  { %v6028_v45 = vpop.xlane.xlu1 %2590  ;;  %v2442_v4 = vsel %vm6046_vm3, %v4714_v11, %v2438_v47 }
 0xea9   :  { %4518 = vrot.lane.b32.xlu0 %v5869_v60, %s4779_s22  ;;  %v2447_v20 = vsel %vm2444_vm5, %v2446_v3, %v2442_v4  ;;  %v4525_v4 = vunpack.i.l.bf16 %v6018_v12 }
 0xead   :  { %3064 = vadd.xlane.f32.xlu1 %v3063_v25 }
 0xec6   :  { %4533 = vrot.lane.b32.xlu1 %v5869_v60, %s6482_s19 }
 0xece   :  { %4538 = vrot.lane.b32.xlu1 %v5869_v60, %s6479_s23 }
 0xed1   :  { %v6023_v51 = vpop.xlane.xlu2 %2432 }
 0xed2   :  { %4715 = vrcp.f32 %v6023_v51  ;;  %v2459_v34 = vand.u32 2147483648, %v6023_v51 }
 0xed3   :  { %3061 = vadd.xlane.f32.xlu0 %v3060_v26  ;;  %4717 = vrcp.f32 %v5973_v57 }
 0xed8   :  { %v6030_v35 = vpop.eup %4715 }
 0xed9   :  { %v6032_v2 = vpop.eup %4717  ;;  %v2449_v38 = vmul.f32 %v6030_v35, %v6023_v51  ;;  %vm2454_vm2 = vweird.f32 %v6030_v35 }
 0xeda   :  { %v2593_v46 = vmul.f32 %v6032_v2, %v5973_v57  ;;  %vm2598_vm3 = vweird.f32 %v6032_v2 }
 0xedb   :  { %v2450_v63 = vsub.f32 1.0, %v2449_v38 }
 0xedc   :  { %v2594_v53 = vsub.f32 1.0, %v2593_v46  ;;  %v4526_v46 = vunpack.i.h.bf16 %v6018_v12 }
 0xedd   :  { %v2451_v54 = vmul.f32 %v6030_v35, %v2450_v63 }
 0xede   :  { %v2595_v40 = vmul.f32 %v6032_v2, %v2594_v53  ;;  %v2460_v53 = vor.u32 1.1754944e-38, %v2459_v34 }
 0xedf   :  { %v2452_v56 = vadd.f32 %v6030_v35, %v2451_v54 }
 0xee0   :  { %v2596_v11 = vadd.f32 %v6032_v2, %v2595_v40  ;;  %v2617_v40 = vand.u32 2147483648, %v6028_v45 }
 0xee7   :  { %4543 = vrot.lane.b32.xlu0 %v5869_v60, %s6480_s17 }
 0xf08   :  { %v2273_v60 = vpop.xlane.xlu0 %2272 }
 0xf09   :  { %4719 = vrcp.f32 %v2273_v60  ;;  %v2299_v33 = vand.u32 2147483648, %v2273_v60  ;;  %v2297_v29 = vand.u32 2147483647, %v2273_v60  ;;  %vm2293_vm6 = vweird.f32 %v2273_v60 }
 0xf0a   :  { %4721 = vrcp.f32 %v6028_v45 }
 0xf0b   :  { %4723 = vrcp.f32 %v5975_v55  ;;  %v2300_v22 = vor.u32 1.1754944e-38, %v2299_v33  ;;  %vm2298_vm9 = vcmp.eq.f32.partialorder %v2297_v29, 8.507059e+37  ;;  %v2604_v33 = vor.u32 1.1754944e-38, %v2603_v41 }
 0xf0f   :  { %v4720_v42 = vpop.eup %4719 }
 0xf10   :  { %v2289_v18 = vmul.f32 %v4720_v42, %v2273_v60  ;;  %v6040_v52 = vpop.xlane.xlu1 %2748  ;;  %v6044_v36 = vpop.eup %4721  ;;  %vm2294_vm4 = vweird.f32 %v4720_v42  ;;  %v2457_v60 = vand.u32 2147483647, %v6023_v51 }
 0xf11   :  { %4725 = vrcp.f32 %v6040_v52  ;;  %v6054_v1 = vpop.eup %4723  ;;  %v2607_v13 = vmul.f32 %v6044_v36, %v6028_v45  ;;  %vm2295_vm1 = vmor %vm2293_vm6, %vm2294_vm4  ;;  %vm2453_vm4 = vweird.f32 %v6023_v51  ;;  %v4529_v51 = vpop.permute.xlu2 %4528 }
 0xf12   :  { %v2290_v32 = vsub.f32 1.0, %v2289_v18  ;;  %v2751_v43 = vmul.f32 %v6054_v1, %v5975_v55  ;;  %4727 = vrcp.f32 %v6016_v28  ;;  %vm6079_vm5 = vmor %vm2453_vm4, %vm2454_vm2  ;;  %v4530_v29 = vunpack.i.l.bf16 %v4529_v51 }
 0xf13   :  { %v2608_v25 = vsub.f32 1.0, %v2607_v13  ;;  %v2456_v63 = vsel %vm6079_vm5, %v6030_v35, %v2452_v56  ;;  %vm6095_vm6 = vmor %vm2597_vm15, %vm2598_vm3  ;;  %vm2602_vm15 = vcmp.eq.f32.partialorder %v2601_v27, 8.507059e+37  ;;  %vm2756_vm2 = vweird.f32 %v6054_v1 }
 0xf14   :  { %v2291_v15 = vmul.f32 %v4720_v42, %v2290_v32  ;;  %v2462_v32 = vmul.f32 %v5857_v5, %v2447_v20  ;;  %v2600_v35 = vsel %vm6095_vm6, %v6032_v2, %v2596_v11  ;;  %vm2611_vm3 = vweird.f32 %v6028_v45 }
 0xf15   :  { %v2609_v9 = vmul.f32 %v6044_v36, %v2608_v25  ;;  %v2605_v54 = vsel %vm2602_vm15, %v2604_v33, %v2600_v35  ;;  %v2761_v25 = vand.u32 2147483648, %v5975_v55  ;;  %vm2755_vm5 = vweird.f32 %v5975_v55 }
 0xf16   :  { %v2292_v19 = vadd.f32 %v4720_v42, %v2291_v15  ;;  %v2618_v11 = vor.u32 1.1754944e-38, %v2617_v40  ;;  %v2620_v41 = vmul.f32 %v5885_v58, %v2605_v54  ;;  %vm2757_vm6 = vmor %vm2755_vm5, %vm2756_vm2  ;;  %v2775_v58 = vand.u32 2147483648, %v6040_v52 }
 0xf17   :  { %v6068_v26 = vpop.eup %4725  ;;  %v2610_v5 = vadd.f32 %v6044_v36, %v2609_v9  ;;  %vm2769_vm2 = vweird.f32 %v6040_v52 }
 0xf18   :  { %v2296_v16 = vsel %vm2295_vm1, %v4720_v42, %v2292_v19  ;;  %v6064_v23 = vpop.xlane.xlu1 %2906  ;;  %v2752_v42 = vsub.f32 1.0, %v2751_v43  ;;  %vm2458_vm1 = vcmp.eq.f32.partialorder %v2457_v60, 8.507059e+37  ;;  %v6106_v3 = vpop.eup %4727  ;;  %v2615_v19 = vand.u32 2147483647, %v6028_v45 }
 0xf19   :  { %v2301_v14 = vsel %vm2298_vm9, %v2300_v22, %v2296_v16  ;;  %4729 = vrcp.f32 %v6064_v23  ;;  %v2461_v15 = vsel %vm2458_vm1, %v2460_v53, %v2456_v63  ;;  %vm2612_vm9 = vweird.f32 %v6044_v36  ;;  %v3223_v40 = vpop.xlane.xlu2 %3222 }
 0xf1a   :  { %v2303_v38 = vmul.f32 %v5980_v7, %v2301_v14  ;;  %v2765_v7 = vmul.f32 %v6068_v26, %v6040_v52  ;;  %v2753_v57 = vmul.f32 %v6054_v1, %v2752_v42  ;;  %v2463_v20 = vmul.f32 %v5966_v37, %v2461_v15  ;;  %vm6122_vm4 = vmor %vm2611_vm3, %vm2612_vm9 }
 0xf1b   :  { %v4519_v17 = vpop.permute.xlu0 %4518  ;;  %v2909_v27 = vmul.f32 %v6106_v3, %v6016_v28  ;;  %v4531_v16 = vunpack.i.h.bf16 %v4529_v51  ;;  %v2614_v45 = vsel %vm6122_vm4, %v6044_v36, %v2610_v5  ;;  %v2759_v14 = vand.u32 2147483647, %v5975_v55 }
 0xf1c   :  { %v4521_v18 = vunpack.i.h.bf16 %v4519_v17  ;;  %v4520_v50 = vunpack.i.l.bf16 %v4519_v17  ;;  %4130 = vmatmul.msk.f32.vlgmr.msrb.gmra.mxu1 %vm211_vm8, %v2303_v38  ;;  %v2766_v2 = vsub.f32 1.0, %v2765_v7  ;;  %v2754_v22 = vadd.f32 %v6054_v1, %v2753_v57 }
 0xf1d   :  { %vm2616_vm1 = vcmp.eq.f32.partialorder %v2615_v19, 8.507059e+37  ;;  %v2910_v34 = vsub.f32 1.0, %v2909_v27  ;;  %v2762_v17 = vor.u32 1.1754944e-38, %v2761_v25  ;;  %vm2770_vm15 = vweird.f32 %v6068_v26 }
 0xf1e   :  { %2511 = vmatpush.msra.mxu1 %v4521_v18  ;;  %2485 = vmatpush.msrb.mxu0 %v4520_v50  ;;  %v2767_v37 = vmul.f32 %v6068_v26, %v2766_v2  ;;  %v2758_v36 = vsel %vm2757_vm6, %v6054_v1, %v2754_v22  ;;  %v2619_v60 = vsel %vm2616_vm1, %v2618_v11, %v2614_v45  ;;  %vm2760_vm9 = vcmp.eq.f32.partialorder %v2759_v14, 8.507059e+37  ;;  %vm2771_vm3 = vmor %vm2769_vm2, %vm2770_vm15 }
 0xf1f   :  { %4135 = vmatmul.msk.f32.vlgmr.msrb.gmra.mxu0 %vm211_vm8, %v2462_v32  ;;  %v6112_v13 = vpop.eup %4729  ;;  %v2763_v42 = vsel %vm2760_vm9, %v2762_v17, %v2758_v36  ;;  %v2773_v1 = vand.u32 2147483647, %v6040_v52  ;;  %v2621_v47 = vmul.f32 %v5958_v0, %v2619_v60  ;;  %v2911_v18 = vmul.f32 %v6106_v3, %v2910_v34 }
 0xf20   :  { %2669 = vmatpush.msrb.mxu1 %v4526_v46  ;;  %2643 = vmatpush.msra.mxu0 %v4525_v4  ;;  %v6110_v12 = vpop.xlane.xlu1 %3064  ;;  %v2923_v56 = vmul.f32 %v6112_v13, %v6064_v23  ;;  %v2768_v38 = vadd.f32 %v6068_v26, %v2767_v37  ;;  %v2776_v7 = vor.u32 1.1754944e-38, %v2775_v58  ;;  %v2778_v50 = vmul.f32 %v5926_v6, %v2763_v42 }
 0xf21   :  { %4731 = vrcp.f32 %v6110_v12  ;;  %vm2774_vm4 = vcmp.eq.f32.partialorder %v2773_v1, 8.507059e+37  ;;  %v2912_v52 = vadd.f32 %v6106_v3, %v2911_v18  ;;  %vm2914_vm5 = vweird.f32 %v6106_v3 }
 0xf22   :  { %2801 = vmatpush.msrb.mxu0 %v4530_v29  ;;  %v2924_v55 = vsub.f32 1.0, %v2923_v56  ;;  %v2772_v9 = vsel %vm2771_vm3, %v6068_v26, %v2768_v38  ;;  %v2919_v26 = vand.u32 2147483648, %v6016_v28  ;;  %vm2928_vm6 = vweird.f32 %v6112_v13 }
 0xf23   :  { %v2777_v0 = vsel %vm2774_vm4, %v2776_v7, %v2772_v9  ;;  %vm2913_vm1 = vweird.f32 %v6016_v28  ;;  %v2917_v32 = vand.u32 2147483647, %v6016_v28  ;;  %v2933_v6 = vand.u32 2147483648, %v6064_v23 }
 0xf24   :  { %4136 = vmatmul.msk.f32.vlgmr.msra.gmra.mxu1 %vm211_vm8, %v2463_v20  ;;  %v2925_v63 = vmul.f32 %v6112_v13, %v2924_v55  ;;  %vm2915_vm15 = vmor %vm2913_vm1, %vm2914_vm5  ;;  %vm2927_vm9 = vweird.f32 %v6064_v23  ;;  %v2931_v35 = vand.u32 2147483647, %v6064_v23  ;;  %v2779_v4 = vmul.f32 %v5987_v30, %v2777_v0 }
 0xf25   :  { %2827 = vmatpush.msra.mxu1 %v4531_v16  ;;  %v2916_v33 = vsel %vm2915_vm15, %v6106_v3, %v2912_v52  ;;  %vm2929_vm2 = vmor %vm2927_vm9, %vm2928_vm6  ;;  %v2920_v57 = vor.u32 1.1754944e-38, %v2919_v26  ;;  %vm2918_vm3 = vcmp.eq.f32.partialorder %v2917_v32, 8.507059e+37  ;;  %v2934_v28 = vor.u32 1.1754944e-38, %v2933_v6 }
 0xf26   :  { %v2926_v62 = vadd.f32 %v6112_v13, %v2925_v63  ;;  %vm2932_vm4 = vcmp.eq.f32.partialorder %v2931_v35, 8.507059e+37  ;;  %v3091_v19 = vand.u32 2147483648, %v6110_v12  ;;  %vm3085_vm6 = vweird.f32 %v6110_v12 }
 0xf27   :  { %4141 = vmatmul.msk.f32.vlgmr.msra.gmra.mxu0 %vm211_vm8, %v2620_v41  ;;  %v6144_v46 = vpop.eup %4731  ;;  %v2921_v5 = vsel %vm2918_vm3, %v2920_v57, %v2916_v33  ;;  %v3089_v20 = vand.u32 2147483647, %v6110_v12  ;;  %4733 = vrcp.f32 %v3223_v40  ;;  %v3249_v42 = vand.u32 2147483648, %v3223_v40 }
 0xf28   :  { %v3081_v51 = vmul.f32 %v6144_v46, %v6110_v12  ;;  %v2930_v15 = vsel %vm2929_vm2, %v6112_v13, %v2926_v62  ;;  %vm3086_vm5 = vweird.f32 %v6144_v46  ;;  %v2936_v13 = vmul.f32 %v5940_v44, %v2921_v5 }
 0xf29   :  { %v2935_v2 = vsel %vm2932_vm4, %v2934_v28, %v2930_v15  ;;  %vm3087_vm1 = vmor %vm3085_vm6, %vm3086_vm5  ;;  %v3092_v43 = vor.u32 1.1754944e-38, %v3091_v19  ;;  %vm3090_vm15 = vcmp.eq.f32.partialorder %v3089_v20, 8.507059e+37  ;;  %4735 = vrcp.f32 %v6021_v8  ;;  %v2328_v28 = vpop.f32.mrf.mxu0 }
 0xf2a   :  { %v3082_v53 = vsub.f32 1.0, %v3081_v51  ;;  %v2937_v22 = vmul.f32 %v5994_v39, %v2935_v2  ;;  %vm3243_vm3 = vweird.f32 %v3223_v40  ;;  %v3235_v0 = vand.u32 2147483648, %v6021_v8 }
 0xf2b   :  { %v3233_v62 = vand.u32 2147483647, %v6021_v8 }
 0xf2c   :  { %4142 = vmatmul.msk.f32.vlgmr.msrb.gmra.mxu1 %vm211_vm8, %v2621_v47  ;;  %v3083_v29 = vmul.f32 %v6144_v46, %v3082_v53  ;;  %v3247_v47 = vand.u32 2147483647, %v3223_v40  ;;  %v3236_v57 = vor.u32 1.1754944e-38, %v3235_v0 }
 0xf2d   :  { %v4734_v45 = vpop.eup %4733 }
 0xf2e   :  { %v3084_v23 = vadd.f32 %v6144_v46, %v3083_v29  ;;  %v3239_v37 = vmul.f32 %v4734_v45, %v3223_v40  ;;  %vm3244_vm9 = vweird.f32 %v4734_v45  ;;  %vm3248_vm0 = vcmp.eq.f32.partialorder %v3247_v47, 8.507059e+37 }
 0xf2f   :  { %4147 = vmatmul.msk.f32.vlgmr.msrb.gmra.mxu0 %vm211_vm8, %v2778_v50  ;;  %v4736_v56 = vpop.eup %4735  ;;  %vm6187_vm4 = vmor %vm3243_vm3, %vm3244_vm9  ;;  %v3250_v50 = vor.u32 1.1754944e-38, %v3249_v42  ;;  %vm3229_vm9 = vweird.f32 %v6021_v8 }
 0xf30   :  { %v3088_v27 = vsel %vm3087_vm1, %v6144_v46, %v3084_v23  ;;  %v3225_v11 = vmul.f32 %v4736_v56, %v6021_v8  ;;  %v3240_v41 = vsub.f32 1.0, %v3239_v37  ;;  %vm3230_vm6 = vweird.f32 %v4736_v56  ;;  %v4394_v37 = vld [vmem:[%s6417_s2 + $0x30] sm:$0xff] }
 0xf31   :  { %v3093_v44 = vsel %vm3090_vm15, %v3092_v43, %v3088_v27  ;;  %vm3231_vm3 = vmor %vm3229_vm9, %vm3230_vm6 }
 0xf32   :  { %v3095_v39 = vmul.f32 %v5998_v48, %v3093_v44  ;;  %v3226_v34 = vsub.f32 1.0, %v3225_v11  ;;  %v3241_v60 = vmul.f32 %v4734_v45, %v3240_v41 }
 0xf34   :  { %4148 = vmatmul.msk.f32.vlgmr.msra.gmra.mxu1 %vm211_vm8, %v2779_v4  ;;  %v3227_v55 = vmul.f32 %v4736_v56, %v3226_v34  ;;  %v3242_v46 = vadd.f32 %v4734_v45, %v3241_v60 }
 0xf36   :  { %v3246_v63 = vsel %vm6187_vm4, %v4734_v45, %v3242_v46  ;;  %v3228_v7 = vadd.f32 %v4736_v56, %v3227_v55 }
 0xf37   :  { %v3251_v53 = vsel %vm3248_vm0, %v3250_v50, %v3246_v63  ;;  %vm6494_vm0 = vcmask 523264  }
 0xf38   :  { %v4534_v54 = vpop.permute.xlu1 %4533  ;;  %v3232_v35 = vsel %vm3231_vm3, %v4736_v56, %v3228_v7  ;;  %v3253_v15 = vmul.f32 %v5985_v21, %v3251_v53  ;;  %v4393_v56 = vld [vmem:[%s6417_s2 + $0x28] sm:$0xff]  ;;  %vm6501_vm9 = vmmov %vm6494_vm0 }
 0xf39   :  { %v4536_v30 = vunpack.i.h.bf16 %v4534_v54  ;;  %v4535_v3 = vunpack.i.l.bf16 %v4534_v54  ;;  %vm6502_vm3 = vmmov %vm6494_vm0 }
 0xf3b   :  { %2959 = vmatpush.msra.mxu0 %v4535_v3  ;;  %2985 = vmatpush.msrb.mxu1 %v4536_v30 }
 0xf3c   :  { %4153 = vmatmul.msk.f32.vlgmr.msra.gmra.mxu0 %vm211_vm8, %v2936_v13  ;;  %4154 = vmatmul.msk.f32.vlgmr.msrb.gmra.mxu1 %vm211_vm8, %v2937_v22 }
 0xf40   :  { %v4539_v16 = vpop.permute.xlu1 %4538 }
 0xf41   :  { %v4541_v25 = vunpack.i.h.bf16 %v4539_v16  ;;  %v4540_v12 = vunpack.i.l.bf16 %v4539_v16 }
 0xf43   :  { %3117 = vmatpush.msrb.mxu0 %v4540_v12  ;;  %3143 = vmatpush.msra.mxu1 %v4541_v25 }
 0xf44   :  { %4160 = vmatmul.msk.f32.vlgmr.msra.gmra.mxu1 %vm211_vm8, %v3095_v39  ;;  %v4395_v39 = vld [vmem:[%s6417_s2 + $0x38] sm:$0xff] }
 0xf45   :  { %3419 = vmatpush.bf16.msrb.mxu2 %v4395_v39  ;;  %v4229_v39 = vld [vmem:[%s6423_s8 + $0x78] sm:$0xf0] }
 0xf46   :  { %v3062_v14 = vpop.xlane.xlu0 %3061 }
 0xf47   :  { %4737 = vrcp.f32 %v3062_v14  ;;  %v3077_v58 = vand.u32 2147483648, %v3062_v14  ;;  %v3075_v1 = vand.u32 2147483647, %v3062_v14  ;;  %vm3071_vm5 = vweird.f32 %v3062_v14 }
 0xf49   :  { %v3078_v51 = vor.u32 1.1754944e-38, %v3077_v58  ;;  %vm3076_vm15 = vcmp.eq.f32.partialorder %v3075_v1, 8.507059e+37  ;;  %3420 = vmatpush.bf16.msrb.mxu2 %v4394_v37 }
 0xf4d   :  { %v4738_v36 = vpop.eup %4737  ;;  %3421 = vmatpush.bf16.msrb.mxu2 %v4393_v56  ;;  %v4219_v56 = vld [vmem:[%s6423_s8 + $0x60] sm:$0xf] }
 0xf4e   :  { %v3067_v17 = vmul.f32 %v4738_v36, %v3062_v14  ;;  %vm3072_vm2 = vweird.f32 %v4738_v36  ;;  %v4392_v14 = vld [vmem:[%s6417_s2 + $0x20] sm:$0xff] }
 0xf4f   :  { %vm3073_vm1 = vmor %vm3071_vm5, %vm3072_vm2  ;;  %vm3234_vm2 = vcmp.eq.f32.partialorder %v3233_v62, 8.507059e+37 }
 0xf50   :  { %v3068_v38 = vsub.f32 1.0, %v3067_v17  ;;  %v3237_v29 = vsel %vm3234_vm2, %v3236_v57, %v3232_v35  ;;  %vm6503_vm2 = vmmov %vm6494_vm0 }
 0xf51   :  { %v3252_v8 = vmul.f32 %v5954_v24, %v3237_v29  ;;  %3422 = vmatpush.bf16.msrb.mxu2 %v4392_v14  ;;  %v4401_v14 = vld [vmem:[%s6423_s8 + $0x64] sm:$0xf0] }
 0xf52   :  { %v3069_v48 = vmul.f32 %v4738_v36, %v3068_v38 }
 0xf54   :  { %v3070_v9 = vadd.f32 %v4738_v36, %v3069_v48 }
 0xf56   :  { %v3074_v52 = vsel %vm3073_vm1, %v4738_v36, %v3070_v9  ;;  %vm6499_vm1 = vmmov %vm6494_vm0 }
 0xf57   :  { %v3079_v26 = vsel %vm3076_vm15, %v3078_v51, %v3074_v52  ;;  %vm6500_vm15 = vmmov %vm6494_vm0 }
 0xf58   :  { %v3094_v32 = vmul.f32 %v6010_v31, %v3079_v26  ;;  %v2195_v31 = vpop.f32.mrf.mxu1 }
 0xf59   :  { %v4544_v6 = vpop.permute.xlu0 %4543 }
 0xf5a   :  { %v4546_v4 = vunpack.i.h.bf16 %v4544_v6  ;;  %v4545_v33 = vunpack.i.l.bf16 %v4544_v6  ;;  %4159 = vmatmul.msk.f32.vlgmr.msrb.gmra.mxu0 %vm211_vm8, %v3094_v32 }
 0xf5c   :  { %3275 = vmatpush.msra.mxu0 %v4545_v33  ;;  %3301 = vmatpush.msrb.mxu1 %v4546_v4 }
 0xf5d   :  { %4166 = vmatmul.msk.f32.vlgmr.msrb.gmra.mxu1 %vm211_vm8, %v3253_v15 }
 0xf62   :  { %4165 = vmatmul.msk.f32.vlgmr.msra.gmra.mxu0 %vm211_vm8, %v3252_v8 }
 0xf99   :  { %v2355_v5 = vpop.f32.mrf.mxu1 }
 0xf9a   :  { %v4547_v2 = vpack.i.bf16 %v2355_v5, %v2328_v28  ;;  %v4590_v28 = vld [vmem:[%s6418_s3 + $0x1] ss:$0 sm:$0xff]  ;;  %s4791_s3 = smov [#allocation2]  }
 0xf9b   :  { %s3866_s5 = sshll.u32 %s4791_s3, 4  ;;  %s3867_s5 = int_to_ptr.vmem [resolvable:$true] %s3866_s5 }
 0xf9c   :  { %v2487_v54 = vpop.f32.mrf.mxu0  ;;  %4548 = vrot.lane.b32.xlu1 %v4547_v2, %s6483_s1 }
 0xfa1   :  { %v2513_v40 = vpop.f32.mrf.mxu1 }
 0xfa2   :  { %v4552_v23 = vpack.i.bf16 %v2513_v40, %v2487_v54 }
 0xfa4   :  { %4553 = vrot.lane.b32.xlu2 %v4552_v23, %s6478_s0  ;;  %v2645_v21 = vpop.f32.mrf.mxu0 }
 0xfa9   :  { %v2671_v30 = vpop.f32.mrf.mxu1 }
 0xfaa   :  { %v4557_v3 = vpack.i.bf16 %v2671_v30, %v2645_v21 }
 0xfac   :  { %4558 = vrot.lane.b32.xlu1 %v4557_v3, %s6477_s30  ;;  %v2803_v19 = vpop.f32.mrf.mxu0 }
 0xfb1   :  { %v2829_v24 = vpop.f32.mrf.mxu1 }
 0xfb2   :  { %v4562_v13 = vpack.i.bf16 %v2829_v24, %v2803_v19 }
 0xfb4   :  { %4563 = vrot.lane.b32.xlu0 %v4562_v13, %s6481_s18 }
 0xfb9   :  { %v2961_v20 = vpop.f32.mrf.mxu0  ;;  %v2987_v22 = vpop.f32.mrf.mxu1 }
 0xfba   :  { %v4567_v27 = vpack.i.bf16 %v2987_v22, %v2961_v20 }
 0xfbc   :  { %4568 = vrot.lane.b32.xlu1 %v4567_v27, %s4780_s24 }
 0xfc1   :  { %v3145_v43 = vpop.f32.mrf.mxu1 }
 0xfd7   :  { %v3119_v44 = vpop.f32.mrf.mxu0 }
 0xfd8   :  { %v4572_v16 = vpack.i.bf16 %v3145_v43, %v3119_v44 }
 0xfda   :  { %4573 = vrot.lane.b32.xlu0 %v4572_v16, %s4781_s25  ;;  %v3303_v25 = vpop.f32.mrf.mxu1  ;;  %v4227_v16 = vld [vmem:[%s6423_s8 + $0x70] sm:$0xf] }
 0xfdf   :  { %v3277_v12 = vpop.f32.mrf.mxu0 }
 0xfe0   :  { %v4577_v45 = vpack.i.bf16 %v3303_v25, %v3277_v12  ;;  %v4403_v25 = vld [vmem:[%s6423_s8 + $0x74] sm:$0xf0]  ;;  %v4402_v12 = vld [vmem:[%s6423_s8 + $0x74] sm:$0xf] }
 0xfe1   :  { %v4232_v37 = vor.u32 %v4402_v12, %v4229_v39  ;;  %v4415_v39 = vld [vmem:[%s6425_s10 + $0xd8] sm:$0xff] }
 0xfe2   :  { %4578 = vrot.lane.b32.xlu1 %v4577_v45, %s4777_s20  ;;  %v4228_v45 = vor.u32 %v4403_v25, %v4227_v16  ;;  %s3868_s20 = sshll.u32 %s6431_s16, 4  ;;  %s3869_s20 = int_to_ptr.hbm [resolvable:$true] %s3868_s20 }
 0xfe3   :  { %3567 = vmatpush.bf16.msrb.mxu0 %v4232_v37  ;;  %v4414_v37 = vld [vmem:[%s6425_s10 + $0xd0] sm:$0xff] }
 0xfe4   :  { %3553 = vmatpush.bf16.msrb.mxu3 %v4228_v45 }
 0xffe   :  { %v4554_v38 = vpop.permute.xlu2 %4553 }
 0xfff   :  { %v4556_v1 = vunpack.i.h.bf16 %v4554_v38  ;;  %v4555_v47 = vunpack.i.l.bf16 %v4554_v38 }
0x100e   :  { %v4549_v11 = vpop.permute.xlu1 %4548 }
0x100f   :  { %v4551_v34 = vunpack.i.h.bf16 %v4549_v11  ;;  %v4550_v60 = vunpack.i.l.bf16 %v4549_v11  ;;  %v4400_v11 = vld [vmem:[%s6423_s8 + $0x64] sm:$0xf] }
0x1011   :  { %v3363_v55 = vsel %vm211_vm8, %v2195_v31, %v4551_v34  ;;  %v3362_v46 = vsel %vm211_vm8, %v5841_v59, %v4550_v60  ;;  %vm6495_vm8 = vmmov %vm6494_vm0  ;;  %v4221_v34 = vld [vmem:[%s6423_s8 + $0x68] sm:$0xf0] }
0x1012   :  { %v3364_v7 = vsel %vm1527_vm7, %v3362_v46, %v4555_v47  ;;  %v3365_v50 = vsel %vm1527_vm7, %v3363_v55, %v4556_v1  ;;  %vm6496_vm7 = vmmov %vm6494_vm0  ;;  %v4211_v55 = vld [vmem:[%s6423_s8 + $0x50] sm:$0xf]  ;;  %v4399_v46 = vld [vmem:[%s6423_s8 + $0x54] sm:$0xf0] }
0x1013   :  { %v4203_v47 = vld [vmem:[%s6423_s8 + $0x40] sm:$0xf] }
0x101e   :  { %v4559_v41 = vpop.permute.xlu1 %4558 }
0x101f   :  { %v4561_v58 = vunpack.i.h.bf16 %v4559_v41  ;;  %v4560_v42 = vunpack.i.l.bf16 %v4559_v41 }
0x1021   :  { %v3366_v26 = vsel %vm1530_vm10, %v3364_v7, %v4560_v42  ;;  %v3367_v62 = vsel %vm1530_vm10, %v3365_v50, %v4561_v58  ;;  %vm6497_vm10 = vmmov %vm6494_vm0  ;;  %v4212_v58 = vor.u32 %v4399_v46, %v4211_v55  ;;  %v4398_v42 = vld [vmem:[%s6423_s8 + $0x54] sm:$0xf] }
0x1026   :  { %v4564_v36 = vpop.permute.xlu0 %4563 }
0x1027   :  { %v4566_v18 = vunpack.i.h.bf16 %v4564_v36  ;;  %v4565_v9 = vunpack.i.l.bf16 %v4564_v36  ;;  %v4220_v36 = vor.u32 %v4401_v14, %v4219_v56  ;;  %v4407_v56 = vld [vmem:[%s6425_s10 + $0x98] sm:$0xff]  ;;  %v4413_v14 = vld [vmem:[%s6425_s10 + $0xc8] sm:$0xff] }
0x1029   :  { %v3368_v59 = vsel %vm1533_vm11, %v3366_v26, %v4565_v9  ;;  %v3369_v53 = vsel %vm1533_vm11, %v3367_v62, %v4566_v18  ;;  %vm6498_vm11 = vmmov %vm6494_vm0  ;;  %3554 = vmatpush.bf16.msrb.mxu3 %v4220_v36  ;;  %v4397_v18 = vld [vmem:[%s6423_s8 + $0x44] sm:$0xf0]  ;;  %v4396_v9 = vld [vmem:[%s6423_s8 + $0x44] sm:$0xf] }
0x102a   :  { %v4419_v62 = vld [vmem:[%s6425_s10 + $0xf8] sm:$0xff]  ;;  %v4405_v36 = vld [vmem:[%s6425_s10 + $0x88] sm:$0xff] }
0x102b   :  { %3728 = vmatpush.bf16.msra.mxu2 %v4419_v62 }
0x102d   :  { %3555 = vmatpush.bf16.msrb.mxu3 %v4212_v58 }
0x102e   :  { %v4569_v17 = vpop.permute.xlu1 %4568 }
0x102f   :  { %v4571_v63 = vunpack.i.h.bf16 %v4569_v17  ;;  %v4570_v51 = vunpack.i.l.bf16 %v4569_v17  ;;  %v4224_v17 = vor.u32 %v4400_v11, %v4221_v34  ;;  %v4406_v11 = vld [vmem:[%s6425_s10 + $0x90] sm:$0xff]  ;;  %v4404_v34 = vld [vmem:[%s6425_s10 + $0x80] sm:$0xff] }
0x1031   :  { %v3371_v6 = vsel %vm1536_vm12, %v3369_v53, %v4571_v63  ;;  %v3370_v35 = vsel %vm1536_vm12, %v3368_v59, %v4570_v51  ;;  %3568 = vmatpush.bf16.msrb.mxu0 %v4224_v17  ;;  %v4204_v63 = vor.u32 %v4397_v18, %v4203_v47  ;;  %v4205_v51 = vld [vmem:[%s6423_s8 + $0x48] sm:$0xf0]  ;;  %v4411_v59 = vld [vmem:[%s6425_s10 + $0xb8] sm:$0xff] }
0x1032   :  { %v4208_v7 = vor.u32 %v4396_v9, %v4205_v51  ;;  %3714 = vmatpush.bf16.msra.mxu1 %v4411_v59 }
0x1033   :  { %3556 = vmatpush.bf16.msrb.mxu3 %v4204_v63 }
0x104c   :  { %v4574_v48 = vpop.permute.xlu0 %4573 }
0x104d   :  { %v4576_v52 = vunpack.i.h.bf16 %v4574_v48  ;;  %v4575_v0 = vunpack.i.l.bf16 %v4574_v48  ;;  %v4213_v48 = vld [vmem:[%s6423_s8 + $0x58] sm:$0xf0] }
0x104e   :  { %v4216_v1 = vor.u32 %v4398_v42, %v4213_v48 }
0x104f   :  { %v3373_v57 = vsel %vm1539_vm13, %v3371_v6, %v4576_v52  ;;  %v3372_v15 = vsel %vm1539_vm13, %v3370_v35, %v4575_v0  ;;  %v4410_v6 = vld [vmem:[%s6425_s10 + $0xb0] sm:$0xff] }
0x1050   :  { %3569 = vmatpush.bf16.msrb.mxu0 %v4216_v1  ;;  %3715 = vmatpush.bf16.msra.mxu1 %v4410_v6 }
0x1054   :  { %v4579_v32 = vpop.permute.xlu1 %4578  ;;  %3570 = vmatpush.bf16.msrb.mxu0 %v4208_v7 }
0x1055   :  { %v4581_v4 = vunpack.i.h.bf16 %v4579_v32  ;;  %v4580_v33 = vunpack.i.l.bf16 %v4579_v32  ;;  %v4418_v32 = vld [vmem:[%s6425_s10 + $0xf0] sm:$0xff] }
0x1056   :  { %3729 = vmatpush.bf16.msra.mxu2 %v4418_v32 }
0x1057   :  { %v3375_v29 = vsel %vm1542_vm14, %v3373_v57, %v4581_v4  ;;  %v3374_v8 = vsel %vm1542_vm14, %v3372_v15, %v4580_v33  ;;  %v4417_v33 = vld [vmem:[%s6425_s10 + $0xe8] sm:$0xff] }
0x1058   :  { %v3376_v31 = vpack.c.bf16 %v3375_v29, %v3374_v8  ;;  %v4409_v57 = vld [vmem:[%s6425_s10 + $0xa8] sm:$0xff] }
0x1059   :  { %3716 = vmatpush.bf16.msra.mxu1 %v4409_v57 }
0x105a   :  { %4191 = vmatmul.msk.bf16.vlgmr.msrb.gmra.mxu2 %vm6494_vm0, %v3376_v31 }
0x105b   :  { %3730 = vmatpush.bf16.msra.mxu2 %v4417_v33 }
0x10dd   :  { %v3424_v5 = vpop.f32.mrf.mxu2 }
0x10de   :  { %v3425_v2 = vadd.f32 %v4590_v28, %v3424_v5 }
0x10e0   :  { %v6242_v54 = vadd.f32 %v3425_v2, %v5631_v49 }
0x10e2   :  { %v3433_v40 = vsel %vm6495_vm8, %v6242_v54, 0.0 }
0x10e3   :  { %3434 = vadd.xlane.f32.xlu2 %v3433_v40  ;;  %v4591_v40 = vld [vmem:[%s6421_s6 + $0x1] ss:$0 sm:$0xff] }
0x10e5   :  { %v3426_v23 = vpop.f32.mrf.mxu2 }
0x10e6   :  { %v3427_v21 = vadd.f32 %v4590_v28, %v3426_v23  ;;  %v4416_v28 = vld [vmem:[%s6425_s10 + $0xe0] sm:$0xff] }
0x10e7   :  { %3731 = vmatpush.bf16.msra.mxu2 %v4416_v28 }
0x10e8   :  { %v6247_v30 = vadd.f32 %v3427_v21, %v5636_v61 }
0x10ea   :  { %v3436_v3 = vsel %vm6496_vm7, %v6247_v30, 0.0 }
0x10eb   :  { %3437 = vadd.xlane.f32.xlu0 %v3436_v3  ;;  %3732 = vmatpush.bf16.msra.mxu2 %v4415_v39 }
0x10ef   :  { %3733 = vmatpush.bf16.msra.mxu2 %v4414_v37 }
0x10f3   :  { %3734 = vmatpush.bf16.msra.mxu2 %v4413_v14 }
0x1156   :  { %v3435_v19 = vpop.xlane.xlu2 %3434 }
0x1157   :  { %v3439_v24 = vmul.f32 %v3435_v19, %v4886_v10  ;;  %v4592_v19 = vld [vmem:[%s6422_s7 + $0x1] ss:$0 sm:$0xff] }
0x1159   :  { %v6253_v13 = vsub.f32 %v6242_v54, %v3439_v24 }
0x115b   :  { %v3443_v49 = vmul.f32 %v6253_v13, %v6253_v13 }
0x115d   :  { %v3445_v20 = vsel %vm6497_vm10, %v3443_v49, 0.0 }
0x115e   :  { %v3438_v22 = vpop.xlane.xlu0 %3437  ;;  %3446 = vadd.xlane.f32.xlu1 %v3445_v20 }
0x115f   :  { %v3440_v61 = vmul.f32 %v3438_v22, %v4886_v10 }
0x1161   :  { %v6260_v27 = vsub.f32 %v6247_v30, %v3440_v61 }
0x1163   :  { %v3444_v43 = vmul.f32 %v6260_v27, %v6260_v27 }
0x1165   :  { %v3448_v44 = vsel %vm6498_vm11, %v3444_v43, 0.0 }
0x1166   :  { %3449 = vadd.xlane.f32.xlu2 %v3448_v44 }
0x11d1   :  { %v3447_v41 = vpop.xlane.xlu1 %3446 }
0x11d2   :  { %v3451_v60 = vmul.f32 %v3447_v41, %v4886_v10  ;;  %v4412_v41 = vld [vmem:[%s6425_s10 + $0xc0] sm:$0xff] }
0x11d3   :  { %3735 = vmatpush.bf16.msra.mxu2 %v4412_v41 }
0x11d4   :  { %v3453_v38 = vadd.f32 1e-05, %v3451_v60  ;;  %v4200_v60 = vld [vmem:[%s6424_s9 + $0x1] ss:$2 sm:$0x3] }
0x11d5   :  { %v3497_v42 = vperm.slane %v4200_v60, 0 }
0x11d6   :  { %4739 = vrsqrt.f32 %v3453_v38  ;;  %vm3461_vm13 = vweird.f32 %v3453_v38 }
0x11d9   :  { %v3450_v50 = vpop.xlane.xlu2 %3449 }
0x11da   :  { %v3452_v52 = vmul.f32 %v3450_v50, %v4886_v10 }
0x11dc   :  { %v4740_v0 = vpop.eup %4739  ;;  %v3454_v26 = vadd.f32 1e-05, %v3452_v52 }
0x11dd   :  { %v3456_v53 = vmul.f32 %v4740_v0, %v3453_v38  ;;  %vm3462_vm12 = vweird.f32 %v4740_v0  ;;  %v3498_v38 = vperm.slane %v4200_v60, 1  ;;  %v4595_v60 = vld [vmem:[%s6428_s13] ss:$0 sm:$0xff] }
0x11de   :  { %4741 = vrsqrt.f32 %v3454_v26  ;;  %vm3463_vm14 = vmor %vm3461_vm13, %vm3462_vm12  ;;  %vm3471_vm5 = vweird.f32 %v3454_v26 }
0x11df   :  { %v3457_v35 = vmul.f32 %v4740_v0, %v3456_v53 }
0x11e1   :  { %v3458_v4 = vmul.f32 0.5, %v3457_v35 }
0x11e3   :  { %v3459_v15 = vsub.f32 1.5, %v3458_v4 }
0x11e4   :  { %v4742_v29 = vpop.eup %4741 }
0x11e5   :  { %v3460_v8 = vmul.f32 %v4740_v0, %v3459_v15  ;;  %v3466_v31 = vmul.f32 %v4742_v29, %v3454_v26  ;;  %vm3472_vm4 = vweird.f32 %v4742_v29 }
0x11e6   :  { %vm3473_vm6 = vmor %vm3471_vm5, %vm3472_vm4 }
0x11e7   :  { %v3464_v5 = vsel %vm3463_vm14, %v4740_v0, %v3460_v8  ;;  %v3467_v2 = vmul.f32 %v4742_v29, %v3466_v31  ;;  %v4593_v0 = vld [vmem:[%s6426_s11 + $0x1] ss:$0 sm:$0xff]  ;;  %vm6504_vm14 = vmmov %vm6494_vm0 }
0x11e8   :  { %v3475_v23 = vmul.f32 %v3464_v5, %v6253_v13 }
0x11e9   :  { %v3468_v21 = vmul.f32 0.5, %v3467_v2 }
0x11ea   :  { %v3478_v24 = vmul.f32 %v4591_v40, %v3475_v23 }
0x11eb   :  { %v3469_v3 = vsub.f32 1.5, %v3468_v21 }
0x11ec   :  { %v3481_v22 = vadd.f32 %v4592_v19, %v3478_v24  ;;  %v4422_v24 = vld [vmem:[%s6429_s14 + $0x10] sm:$0xff] }
0x11ed   :  { %v3470_v49 = vmul.f32 %v4742_v29, %v3469_v3 }
0x11ee   :  { %v3483_v44 = vpack.c.bf16 %v3481_v22, %v3481_v22  ;;  %v4421_v22 = vld [vmem:[%s6429_s14 + $0x8] sm:$0xff] }
0x11ef   :  { %v3474_v20 = vsel %vm3473_vm6, %v4742_v29, %v3470_v49 }
0x11f0   :  { %v3476_v61 = vmul.f32 %v3474_v20, %v6260_v27  ;;  %v3503_v25 = vunpack.c.l.b16 %v3483_v44  ;;  %v4408_v27 = vld [vmem:[%s6425_s10 + $0xa0] sm:$0xff] }
0x11f1   :  { %3717 = vmatpush.bf16.msra.mxu1 %v4408_v27 }
0x11f2   :  { %v3479_v43 = vmul.f32 %v4591_v40, %v3476_v61  ;;  %v4420_v61 = vld [vmem:[%s6429_s14] sm:$0xff] }
0x11f4   :  { %v3482_v16 = vadd.f32 %v4592_v19, %v3479_v43 }
0x11f5   :  { %3718 = vmatpush.bf16.msra.mxu1 %v4407_v56 }
0x11f6   :  { %v3484_v13 = vpack.c.bf16 %v3482_v16, %v3482_v16 }
0x11f8   :  { %v3504_v12 = vunpack.c.l.b16 %v3484_v13 }
0x11f9   :  { %3719 = vmatpush.bf16.msra.mxu1 %v4406_v11 }
0x11fa   :  { %v3505_v45 = vpack.c.b16 %v3504_v12, %v3503_v25 }
0x11fc   :  { %4233 = vmatmul.msk.bf16.vlgmr.msrb.gmra.mxu3 %vm6499_vm1, %v3505_v45  ;;  %4234 = vmatmul.msk.bf16.vlgmr.msrb.gmra.mxu0 %vm6500_vm15, %v3505_v45 }
0x11fd   :  { %3720 = vmatpush.bf16.msra.mxu1 %v4405_v36 }
0x1201   :  { %3721 = vmatpush.bf16.msra.mxu1 %v4404_v34 }
0x1279   :  { %v3572_v17 = vpop.f32.mrf.mxu0 }
0x127a   :  { %v3573_v46 = vadd.f32 %v3572_v17, %v3498_v38 }
0x127c   :  { %v3578_v1 = vmax.f32 %v3573_v46, 0.0 }
0x127f   :  { %v3558_v55 = vpop.f32.mrf.mxu3 }
0x1280   :  { %v3559_v18 = vadd.f32 %v3558_v55, %v3497_v42 }
0x1281   :  { %v3574_v58 = vpop.f32.mrf.mxu0 }
0x1282   :  { %v3575_v48 = vadd.f32 %v3574_v58, %v3498_v38  ;;  %v3577_v7 = vmax.f32 %v3559_v18, 0.0 }
0x1284   :  { %v3580_v47 = vmax.f32 %v3575_v48, 0.0 }
0x1286   :  { %v3582_v9 = vpack.c.bf16 %v3580_v47, %v3578_v1 }
0x1287   :  { %v3560_v63 = vpop.f32.mrf.mxu3 }
0x1288   :  { %v3561_v51 = vadd.f32 %v3560_v63, %v3497_v42  ;;  %3736 = vmatmul.bf16.vlgmr.msra.gmra.mxu2 %v3582_v9 }
0x128a   :  { %v3579_v50 = vmax.f32 %v3561_v51, 0.0  ;;  %v4596_v51 = vld [vmem:[%s6430_s15] ss:$0 sm:$0xff] }
0x128c   :  { %v3581_v52 = vpack.c.bf16 %v3579_v50, %v3577_v7 }
0x128e   :  { %3722 = vmatmul.bf16.vlgmr.msra.gmra.mxu1 %v3581_v52 }
0x130b   :  { %v3723_v26 = vpop.f32.mrf.mxu1  ;;  %v3737_v62 = vpop.f32.mrf.mxu2 }
0x130c   :  { %v3724_v59 = vadd.f32 %v4593_v0, %v3723_v26 }
0x130e   :  { %v3738_v53 = vadd.f32 %v3737_v62, %v3724_v59 }
0x1310   :  { %v3742_v32 = vadd.f32 %v3738_v53, %v6242_v54 }
0x1312   :  { %v3746_v6 = vsel %vm6501_vm9, %v3742_v32, 0.0 }
0x1313   :  { %v3725_v35 = vpop.f32.mrf.mxu1  ;;  %3747 = vadd.xlane.f32.xlu0 %v3746_v6  ;;  %v3739_v33 = vpop.f32.mrf.mxu2 }
0x1314   :  { %v3726_v4 = vadd.f32 %v4593_v0, %v3725_v35 }
0x1316   :  { %v3740_v57 = vadd.f32 %v3739_v33, %v3726_v4 }
0x1318   :  { %v3743_v15 = vadd.f32 %v3740_v57, %v6247_v30  ;;  %v4423_v30 = vld [vmem:[%s6429_s14 + $0x18] sm:$0xff] }
0x1319   :  { %3850 = vmatpush.bf16.msra.mxu3 %v4423_v30 }
0x131a   :  { %v3749_v29 = vsel %vm6502_vm3, %v3743_v15, 0.0 }
0x131b   :  { %3750 = vadd.xlane.f32.xlu2 %v3749_v29 }
0x131d   :  { %3851 = vmatpush.bf16.msra.mxu3 %v4422_v24 }
0x1321   :  { %3852 = vmatpush.bf16.msra.mxu3 %v4421_v22 }
0x1325   :  { %3853 = vmatpush.bf16.msra.mxu3 %v4420_v61 }
0x1386   :  { %v3748_v8 = vpop.xlane.xlu0 %3747 }
0x1387   :  { %v3752_v31 = vmul.f32 %v3748_v8, %v4886_v10 }
0x1389   :  { %v3754_v28 = vsub.f32 %v3742_v32, %v3752_v31 }
0x138b   :  { %v3756_v5 = vmul.f32 %v3754_v28, %v3754_v28 }
0x138d   :  { %v3758_v2 = vsel %vm6503_vm2, %v3756_v5, 0.0 }
0x138e   :  { %v3751_v54 = vpop.xlane.xlu2 %3750  ;;  %3759 = vadd.xlane.f32.xlu1 %v3758_v2 }
0x138f   :  { %v3753_v40 = vmul.f32 %v3751_v54, %v4886_v10 }
0x1391   :  { %v3755_v23 = vsub.f32 %v3743_v15, %v3753_v40 }
0x1393   :  { %v3757_v21 = vmul.f32 %v3755_v23, %v3755_v23 }
0x1395   :  { %v3761_v3 = vsel %vm6494_vm0, %v3757_v21, 0.0 }
0x1396   :  { %3762 = vadd.xlane.f32.xlu0 %v3761_v3 }
0x1401   :  { %v3760_v19 = vpop.xlane.xlu1 %3759 }
0x1402   :  { %v3764_v49 = vmul.f32 %v3760_v19, %v4886_v10 }
0x1404   :  { %v3766_v20 = vadd.f32 1e-05, %v3764_v49 }
0x1406   :  { %4743 = vrsqrt.f32 %v3766_v20  ;;  %vm3774_vm7 = vweird.f32 %v3766_v20 }
0x1409   :  { %v3763_v43 = vpop.xlane.xlu0 %3762 }
0x140a   :  { %v3765_v44 = vmul.f32 %v3763_v43, %v4886_v10  ;;  %v4594_v10 = vld [vmem:[%s6427_s12] ss:$0 sm:$0xff] }
0x140c   :  { %v4744_v16 = vpop.eup %4743  ;;  %v3767_v13 = vadd.f32 1e-05, %v3765_v44 }
0x140d   :  { %v3769_v25 = vmul.f32 %v4744_v16, %v3766_v20  ;;  %vm3775_vm8 = vweird.f32 %v4744_v16 }
0x140e   :  { %4745 = vrsqrt.f32 %v3767_v13  ;;  %vm3776_vm10 = vmor %vm3774_vm7, %vm3775_vm8  ;;  %vm3784_vm12 = vweird.f32 %v3767_v13 }
0x140f   :  { %v3770_v12 = vmul.f32 %v4744_v16, %v3769_v25 }
0x1411   :  { %v3771_v45 = vmul.f32 0.5, %v3770_v12 }
0x1413   :  { %v3772_v39 = vsub.f32 1.5, %v3771_v45 }
0x1414   :  { %v4746_v27 = vpop.eup %4745 }
0x1415   :  { %v3773_v37 = vmul.f32 %v4744_v16, %v3772_v39  ;;  %v3779_v56 = vmul.f32 %v4746_v27, %v3767_v13  ;;  %vm3785_vm11 = vweird.f32 %v4746_v27 }
0x1416   :  { %vm3786_vm13 = vmor %vm3784_vm12, %vm3785_vm11 }
0x1417   :  { %v3777_v14 = vsel %vm3776_vm10, %v4744_v16, %v3773_v37  ;;  %v3780_v11 = vmul.f32 %v4746_v27, %v3779_v56 }
0x1418   :  { %v3788_v41 = vmul.f32 %v3777_v14, %v3754_v28 }
0x1419   :  { %v3781_v36 = vmul.f32 0.5, %v3780_v11 }
0x141a   :  { %v3793_v17 = vmul.f32 %v4594_v10, %v3788_v41 }
0x141b   :  { %v3782_v34 = vsub.f32 1.5, %v3781_v36 }
0x141c   :  { %v3798_v46 = vadd.f32 %v4595_v60, %v3793_v17 }
0x141d   :  { %v3783_v38 = vmul.f32 %v4746_v27, %v3782_v34 }
0x141e   :  { %v3800_v48 = vpack.c.bf16 %v3798_v46, %v3798_v46 }
0x141f   :  { %v3787_v55 = vsel %vm3786_vm13, %v4746_v27, %v3783_v38 }
0x1420   :  { %v3789_v58 = vmul.f32 %v3787_v55, %v3755_v23  ;;  %v3816_v18 = vunpack.c.l.b16 %v3800_v48 }
0x1422   :  { %v3794_v42 = vmul.f32 %v4594_v10, %v3789_v58 }
0x1424   :  { %v3799_v1 = vadd.f32 %v4595_v60, %v3794_v42 }
0x1426   :  { %v3801_v47 = vpack.c.bf16 %v3799_v1, %v3799_v1 }
0x1428   :  { %v3817_v9 = vunpack.c.l.b16 %v3801_v47 }
0x142a   :  { %v3818_v63 = vpack.c.b16 %v3817_v9, %v3816_v18 }
0x142c   :  { %4347 = vmatmul.msk.bf16.vlgmr.msra.gmra.mxu3 %vm6504_vm14, %v3818_v63 }
0x14af   :  { %v3855_v7 = vpop.f32.mrf.mxu3 }
0x14b0   :  { %v3856_v50 = vadd.f32 %v4596_v51, %v3855_v7 }
0x14b2   :  { %3860 = vst [vmem:[#allocation2] sm:$0xff] %v3856_v50 }
0x14b7   :  { %v3857_v52 = vpop.f32.mrf.mxu3 }
0x14b8   :  { %v3858_v0 = vadd.f32 %v4596_v51, %v3857_v52 }
0x14ba   :  { %3861 = vst [vmem:[#allocation2 + $0x8] sm:$0xff] %v3858_v0 }
0x14bb   :  { %3874 = dma.vmem_to_hbm [thread:$0]  %s3867_s5, 256, %s3869_s20, [#allocation3], %s4792_s29, %s4792_s29, %s6483_s1  }
0x14bc   :  { %4773 = dma.done.wait [#allocation3], 256  }
0x14bd   :  { %4774 = vsyncadd [#allocation3], 4294967040 }
0x14be   :  { %3879 = vsyncpa [#allocation3], 1 }

</bundles_post_ra>
